<compile_context>
chip_gen: v7x
topology: tpu7x:2x2x1
jax: 0.10.0
libtpu: 0.0.40
codegen_flags: <defaults>
</compile_context>

<pallas_src>
import math

import jax
import jax.numpy as jnp
from jax.experimental import pallas as pl
from jax.experimental.pallas import tpu as pltpu

# ---------------- small synthetic dims (stand-ins for real sizes) -----------
B = 2                    # batch
N_VIEWS = 6              # camera views fed to GPA (the "6x768" in the docstring)
VIT_SEQ = 8              # stand-in for VIT_SEQ_LENGTH = 49
E = 128                  # stand-in for VIT_HIDDEN_STATE = 768 == T5-Base d_model (lane-dense)
HIDDEN = E               # 'T5-Base' path -> no img projection layer
GPA_HID = 128            # stand-in for config.gpa_hidden_size (lane-dense)
TXT_SEQ = 8              # text sequence length
VOCAB = 256              # stand-in for T5 vocab 32128 (multiple of 128)
NUM_HEADS = 4
HEAD_DIM = E // NUM_HEADS
F = VIT_SEQ * E          # flattened per-view feature (49*768 in the real model)
BV = B * N_VIEWS
S_TOT = TXT_SEQ + VIT_SEQ
CLS_H1, CLS_H2, N_CLASSES = 256, 64, 2

# tiling
TF = 256                 # GPA reduction tile along F (multiple of 128)
TN = 128                 # LM-head / classifier-fc1 vocab tile (multiple of 128)
NV_TILES = VOCAB // TN


# --------------------- 1) GPA attention-weight kernel ------------------------
def _gpa_weights_kernel(x_ref, wz_ref, wg_ref, ww_ref, wb_ref, a_ref, zacc, gacc):
    k = pl.program_id(0)

    @pl.when(k == 0)
    def _():
        zacc[...] = jnp.zeros_like(zacc)
        gacc[...] = jnp.zeros_like(gacc)

    xt = x_ref[...].astype(jnp.bfloat16)                      # (B*N_VIEWS, TF)
    zacc[...] += jnp.dot(xt, wz_ref[...], preferred_element_type=jnp.float32)
    gacc[...] += jnp.dot(xt, wg_ref[...], preferred_element_type=jnp.float32)

    @pl.when(k == pl.num_programs(0) - 1)
    def _():
        z = jnp.tanh(zacc[...])                               # f32 elementwise
        g = jax.nn.sigmoid(gacc[...])
        # score = (z*g) @ ww  done as an XLU lane-reduce (an N=1 matmul wastes the MXU)
        s = jnp.sum(z * g * ww_ref[...], axis=-1, keepdims=True) + wb_ref[...]  # (BV, 1)
        s = jnp.broadcast_to(s, (BV, E))                      # lane-broadcast once
        for bb in range(B):                                   # per-sample softmax over views
            sb = s[bb * N_VIEWS:(bb + 1) * N_VIEWS, :]        # (N_VIEWS, E)
            m = jnp.max(sb, axis=0, keepdims=True)
            eb = jnp.exp(sb - m)
            a_ref[bb] = eb / jnp.sum(eb, axis=0, keepdims=True)


def gpa_weights(x_flat, p):
    cost = pl.CostEstimate(
        flops=2 * 2 * BV * F * GPA_HID,
        transcendentals=3 * BV * GPA_HID,
        bytes_accessed=BV * F * 4 + 2 * F * GPA_HID * 2 + B * N_VIEWS * E * 4,
    )
    return pl.pallas_call(
        _gpa_weights_kernel,
        out_shape=jax.ShapeDtypeStruct((B, N_VIEWS, E), jnp.float32),
        grid=(F // TF,),
        in_specs=[
            pl.BlockSpec((BV, TF), lambda k: (0, k)),
            pl.BlockSpec((TF, GPA_HID), lambda k: (k, 0)),
            pl.BlockSpec((TF, GPA_HID), lambda k: (k, 0)),
            pl.BlockSpec((1, GPA_HID), lambda k: (0, 0)),
            pl.BlockSpec((1, 1), lambda k: (0, 0)),
        ],
        out_specs=pl.BlockSpec((B, N_VIEWS, E), lambda k: (0, 0, 0)),
        scratch_shapes=[pltpu.VMEM((BV, GPA_HID), jnp.float32),
                        pltpu.VMEM((BV, GPA_HID), jnp.float32)],
        compiler_params=pltpu.CompilerParams(dimension_semantics=("arbitrary",)),
        cost_estimate=cost,
    )(x_flat, p["wz"], p["wg"], p["ww"], p["wb"])


# ------- 2) fused view-sum + modal + MHA + LM head + classifier kernel -------
def _fused_forward_kernel(
        a_ref, img_ref, txt_ref, modal_ref,
        wi_ref, bi_ref, wt_ref, bt_ref,
        wqkv_ref, bqkv_ref, wo_ref, bo_ref, wp_ref, bp_ref,
        wlm_ref, blm_ref,
        w1_ref, b1_ref, w2_ref, b2_ref, w3_ref, b3_ref,
        logits_ref, intout_ref,
        merged_sc, q_sc, k_sc, v_sc, h1_acc):
    j = pl.program_id(1)

    @pl.when(j == 0)
    def _():
        h1_acc[...] = jnp.zeros_like(h1_acc)

        modal = modal_ref[...]                                # (2, E) f32
        # GPA-weighted fusion of the per-view ViT embeddings + modal embedding adds
        x = img_ref[0]                                        # (N_VIEWS, VIT_SEQ, E)
        aw = a_ref[0]                                         # (N_VIEWS, E) per-view weights
        img = aw[0:1, :] * x[0]
        for v in range(1, N_VIEWS):
            img = img + aw[v:v + 1, :] * x[v]                 # (VIT_SEQ, E)
        img = img + modal[1:2, :]                             # modal id 1 -> images
        txt = txt_ref[0] + modal[0:1, :]                      # modal id 0 -> text

        # image/text projections (bf16 MXU, f32 accumulate)
        ip = jnp.dot(img.astype(jnp.bfloat16), wi_ref[...],
                     preferred_element_type=jnp.float32) + bi_ref[...]
        tp = jnp.dot(txt.astype(jnp.bfloat16), wt_ref[...],
                     preferred_element_type=jnp.float32) + bt_ref[...]
        c = jnp.concatenate([ip, tp], axis=0)                 # (S_TOT, E), image first

        # MHA: single fused QKV matmul, heads batched into one einsum pair
        qkv = jnp.dot(c.astype(jnp.bfloat16), wqkv_ref[...],
                      preferred_element_type=jnp.float32) + bqkv_ref[...]   # (S_TOT, 3E)
        for h in range(NUM_HEADS):
            lo = h * HEAD_DIM
            q_sc[h] = qkv[:, lo:lo + HEAD_DIM].astype(jnp.bfloat16)
            k_sc[h] = qkv[:, E + lo:E + lo + HEAD_DIM].astype(jnp.bfloat16)
            v_sc[h] = qkv[:, 2 * E + lo:2 * E + lo + HEAD_DIM].astype(jnp.bfloat16)
        scale = 1.0 / math.sqrt(HEAD_DIM)
        sc = jnp.einsum('hqd,hkd->hqk', q_sc[...], k_sc[...],
                        preferred_element_type=jnp.float32) * scale
        pr = jax.nn.softmax(sc, axis=-1)                      # f32
        o = jnp.einsum('hqk,hkd->hqd', pr.astype(jnp.bfloat16), v_sc[...],
                       preferred_element_type=jnp.float32)    # (H, S_TOT, HEAD_DIM)
        o = jnp.concatenate([o[h] for h in range(NUM_HEADS)], axis=-1)       # (S_TOT, E)

        o = jnp.dot(o.astype(jnp.bfloat16), wo_ref[...],
                    preferred_element_type=jnp.float32) + bo_ref[...]        # mha out_proj
        o = jnp.dot(o.astype(jnp.bfloat16), wp_ref[...],
                    preferred_element_type=jnp.float32) + bp_ref[...]        # output_proj

        # merged = cat([text, image], dim=1) -- resident in VMEM across vocab tiles
        merged_sc[...] = jnp.concatenate([o[VIT_SEQ:], o[:VIT_SEQ]],
                                         axis=0).astype(jnp.bfloat16)

    # ---- LM head for this vocab tile (stand-in for the T5 decoder stack) ----
    lg = jnp.dot(merged_sc[...], wlm_ref[...],
                 preferred_element_type=jnp.float32) + blm_ref[...]          # (S_TOT, TN)
    logits_ref[0] = lg

    # ---- fused PedestrianCrossingClassifier: seq mean-pool + fc1 partial sum ----
    pooled = jnp.mean(lg, axis=0, keepdims=True)                             # (1, TN)
    h1_acc[...] += jnp.dot(pooled.astype(jnp.bfloat16), w1_ref[...],
                           preferred_element_type=jnp.float32)

    @pl.when(j == pl.num_programs(1) - 1)
    def _():
        h1 = jnp.maximum(h1_acc[...] + b1_ref[...], 0.0)
        h2 = jnp.maximum(jnp.dot(h1.astype(jnp.bfloat16), w2_ref[...],
                                 preferred_element_type=jnp.float32) + b2_ref[...], 0.0)
        h3 = jnp.dot(h2.astype(jnp.bfloat16), w3_ref[...],
                     preferred_element_type=jnp.float32) + b3_ref[...]       # (1, 2)
        intout_ref[0] = jax.nn.softmax(h3, axis=-1)


def fused_forward(a_w, imgs, txt_emb, p):
    full = lambda shape: pl.BlockSpec(shape, lambda b, j: (0, 0))
    flops_b = (2 * N_VIEWS * VIT_SEQ * E
               + 2 * (VIT_SEQ + TXT_SEQ) * E * E
               + 2 * S_TOT * E * 3 * E
               + 4 * S_TOT * S_TOT * E
               + 4 * S_TOT * E * E
               + 2 * S_TOT * E * VOCAB
               + 2 * VOCAB * CLS_H1 + 2 * CLS_H1 * CLS_H2 + 2 * CLS_H2 * N_CLASSES)
    bytes_acc = (B * N_VIEWS * E * 4 + B * N_VIEWS * VIT_SEQ * E * 4
                 + B * TXT_SEQ * E * 4
                 + (5 * E * E + E * 3 * E + E * VOCAB + VOCAB * CLS_H1
                    + CLS_H1 * CLS_H2 + CLS_H2 * N_CLASSES) * 2
                 + B * S_TOT * VOCAB * 4 + B * N_CLASSES * 4)
    cost = pl.CostEstimate(
        flops=B * flops_b,
        transcendentals=B * (NUM_HEADS * S_TOT * S_TOT + N_CLASSES),
        bytes_accessed=bytes_acc,
    )
    return pl.pallas_call(
        _fused_forward_kernel,
        out_shape=(jax.ShapeDtypeStruct((B, S_TOT, VOCAB), jnp.float32),
                   jax.ShapeDtypeStruct((B, 1, N_CLASSES), jnp.float32)),
        grid=(B, NV_TILES),
        in_specs=[
            pl.BlockSpec((1, N_VIEWS, E), lambda b, j: (b, 0, 0)),              # GPA weights
            pl.BlockSpec((1, N_VIEWS, VIT_SEQ, E), lambda b, j: (b, 0, 0, 0)),  # per-view ViT emb
            pl.BlockSpec((1, TXT_SEQ, E), lambda b, j: (b, 0, 0)),              # text embeddings
            full((2, E)),                                                        # modal embeddings
            full((E, E)), full((1, E)),                                          # image_proj
            full((E, E)), full((1, E)),                                          # text_proj
            full((E, 3 * E)), full((1, 3 * E)),                                  # mha in_proj (qkv)
            full((E, E)), full((1, E)),                                          # mha out_proj
            full((E, E)), full((1, E)),                                          # output_proj
            pl.BlockSpec((HIDDEN, TN), lambda b, j: (0, j)),                     # lm-head W tile
            pl.BlockSpec((1, TN), lambda b, j: (0, j)),                          # lm-head b tile
            pl.BlockSpec((TN, CLS_H1), lambda b, j: (j, 0)),                     # classifier fc1 W tile
            full((1, CLS_H1)),
            full((CLS_H1, CLS_H2)), full((1, CLS_H2)),
            full((CLS_H2, N_CLASSES)), full((1, N_CLASSES)),
        ],
        out_specs=(
            pl.BlockSpec((1, S_TOT, TN), lambda b, j: (b, 0, j)),
            pl.BlockSpec((1, 1, N_CLASSES), lambda b, j: (b, 0, 0)),
        ),
        scratch_shapes=[
            pltpu.VMEM((S_TOT, HIDDEN), jnp.bfloat16),                 # merged embeddings
            pltpu.VMEM((NUM_HEADS, S_TOT, HEAD_DIM), jnp.bfloat16),    # q
            pltpu.VMEM((NUM_HEADS, S_TOT, HEAD_DIM), jnp.bfloat16),    # k
            pltpu.VMEM((NUM_HEADS, S_TOT, HEAD_DIM), jnp.bfloat16),    # v
            pltpu.VMEM((1, CLS_H1), jnp.float32),                      # classifier fc1 accumulator
        ],
        compiler_params=pltpu.CompilerParams(
            dimension_semantics=("parallel", "arbitrary")),
        cost_estimate=cost,
    )(a_w, imgs, txt_emb, p["modal"],
      p["att_wi"], p["att_bi"], p["att_wt"], p["att_bt"],
      p["att_wqkv"], p["att_bqkv"], p["att_wo"], p["att_bo"], p["att_wp"], p["att_bp"],
      p["w_lm"], p["b_lm"],
      p["cls_w1"], p["cls_b1"], p["cls_w2"], p["cls_b2"], p["cls_w3"], p["cls_b3"])


# ------------------------------- parameters ----------------------------------
def init_params(key):
    ks = iter(jax.random.split(key, 40))

    def n(shape, dtype=jnp.float32, s=0.02):
        return (s * jax.random.normal(next(ks), shape, jnp.float32)).astype(dtype)

    bf = jnp.bfloat16
    return {
        # TODO(synk): pretrained T5 shared token embedding replaced by a random table.
        "tok_emb": n((VOCAB, HIDDEN)),
        "modal": n((2, HIDDEN)),                           # nn.Embedding(2, hidden), std=0.02
        # GPA: Z, G (no bias) as bf16 MXU weights; w (with bias) as f32 lane-reduce row
        "wz": n((F, GPA_HID), bf), "wg": n((F, GPA_HID), bf),
        "ww": n((1, GPA_HID)), "wb": n((1, 1)),
        # attention block: image_proj / text_proj / mha(in_proj qkv + out_proj) / output_proj
        "att_wi": n((E, E), bf), "att_bi": n((1, E)),
        "att_wt": n((E, E), bf), "att_bt": n((1, E)),
        "att_wqkv": n((E, 3 * E), bf), "att_bqkv": n((1, 3 * E)),
        "att_wo": n((E, E), bf), "att_bo": n((1, E)),
        "att_wp": n((E, E), bf), "att_bp": n((1, E)),
        # TODO(synk): full T5ForConditionalGeneration forward replaced by a single LM head.
        "w_lm": n((HIDDEN, VOCAB), bf), "b_lm": n((1, VOCAB)),
        # PedestrianCrossingClassifier
        "cls_w1": n((VOCAB, CLS_H1), bf), "cls_b1": n((1, CLS_H1)),
        "cls_w2": n((CLS_H1, CLS_H2), bf), "cls_b2": n((1, CLS_H2)),
        "cls_w3": n((CLS_H2, N_CLASSES), bf), "cls_b3": n((1, N_CLASSES)),
    }


# ------------------------------- forward -------------------------------------
@jax.jit
def ped_vlm_forward(params, text_enc, imgs):
    """text_enc: (B, TXT_SEQ) int32 token ids
       imgs:     (B, N_VIEWS, VIT_SEQ, E) f32 per-view ViT patch embeddings
    Returns (logits, int_output) mirroring (out_t5.logits, int_output)."""
    # TODO(synk): pretrained vit_b_32 backbone (_process_input / class token / pos embedding)
    # is not translatable; inputs are taken as its per-view patch embeddings.
    x_flat = imgs.reshape(B * N_VIEWS, F)
    a_w = gpa_weights(x_flat, params)                              # (B, N_VIEWS, E)
    # TODO(synk): token-embedding gather kept in XLA (data-dependent gather).
    txt_emb = jnp.take(params["tok_emb"], text_enc, axis=0)        # (B, TXT_SEQ, E)
    logits, int_out = fused_forward(a_w, imgs, txt_emb, params)
    return logits, int_out[:, 0, :]


# --------------------------------- main ---------------------------------------
if __name__ == "__main__":
    key = jax.random.PRNGKey(0)
    k_param, k_txt, k_img = jax.random.split(key, 3)
    params = init_params(k_param)
    text_enc = jax.random.randint(k_txt, (B, TXT_SEQ), 0, VOCAB, dtype=jnp.int32)
    imgs = jax.random.normal(k_img, (B, N_VIEWS, VIT_SEQ, E), jnp.float32)

    logits, int_output = ped_vlm_forward(params, text_enc, imgs)
    jax.block_until_ready((logits, int_output))

    assert logits.shape == (B, S_TOT, VOCAB)
    assert int_output.shape == (B, N_CLASSES)
    assert bool(jnp.all(jnp.isfinite(logits)))
    assert bool(jnp.allclose(jnp.sum(int_output, axis=1), 1.0, atol=1e-4))
    print("KERNEL_OK")
</pallas_src>

<mosaic_0001>
module attributes {stable_mosaic.version = 11 : i64} {
  func.func @_gpa_weights_kernel(%arg0: i32, %arg1: memref<12x256xf32, #tpu.memory_space<vmem>>, %arg2: memref<256x128xbf16, #tpu.memory_space<vmem>>, %arg3: memref<256x128xbf16, #tpu.memory_space<vmem>>, %arg4: memref<1x128xf32, #tpu.memory_space<vmem>>, %arg5: memref<1x1xf32, #tpu.memory_space<vmem>>, %arg6: memref<2x6x128xf32, #tpu.memory_space<vmem>>, %arg7: memref<12x128xf32, #tpu.memory_space<vmem>>, %arg8: memref<12x128xf32, #tpu.memory_space<vmem>>) attributes {dimension_semantics = [#tpu.dimension_semantics<arbitrary>], iteration_bounds = array<i64: 4>, scalar_prefetch = 0 : i64, scratch_operands = 2 : i64, tpu.core_type = #tpu.core_type<tc>, window_params = [{transform_indices = @transform_0, window_bounds = array<i64: 12, 256>}, {transform_indices = @transform_1, window_bounds = array<i64: 256, 128>}, {transform_indices = @transform_2, window_bounds = array<i64: 256, 128>}, {pipeline_mode = #tpu.pipeline_mode<synchronous>, transform_indices = @transform_3, window_bounds = array<i64: 1, 128>}, {pipeline_mode = #tpu.pipeline_mode<synchronous>, transform_indices = @transform_4, window_bounds = array<i64: 1, 1>}, {pipeline_mode = #tpu.pipeline_mode<synchronous>, transform_indices = @transform_5, window_bounds = array<i64: 2, 6, 128>}]} {
    %c0_i32 = arith.constant 0 : i32
    %0 = arith.cmpi eq, %arg0, %c0_i32 : i32
    %1 = arith.extui %0 : i1 to i32
    %c0_i32_0 = arith.constant 0 : i32
    %2 = arith.cmpi ne, %1, %c0_i32_0 : i32
    scf.if %2 {
      %cst_16 = arith.constant 0.000000e+00 : f32
      %18 = vector.broadcast %cst_16 : f32 to vector<12x128xf32>
      %c0_17 = arith.constant 0 : index
      %c0_18 = arith.constant 0 : index
      %19 = vector.load %arg7[%c0_17, %c0_18] : memref<12x128xf32, #tpu.memory_space<vmem>>, vector<12x128xf32>
      tpu.vector_store %arg7[%c0_17, %c0_18], %18 {strides = array<i32>} : memref<12x128xf32, #tpu.memory_space<vmem>>, vector<12x128xf32>,
      %cst_19 = arith.constant 0.000000e+00 : f32
      %20 = vector.broadcast %cst_19 : f32 to vector<12x128xf32>
      %c0_20 = arith.constant 0 : index
      %c0_21 = arith.constant 0 : index
      %21 = vector.load %arg8[%c0_20, %c0_21] : memref<12x128xf32, #tpu.memory_space<vmem>>, vector<12x128xf32>
      tpu.vector_store %arg8[%c0_20, %c0_21], %20 {strides = array<i32>} : memref<12x128xf32, #tpu.memory_space<vmem>>, vector<12x128xf32>,
    } else {
    }
    %c0 = arith.constant 0 : index
    %c0_1 = arith.constant 0 : index
    %3 = vector.load %arg1[%c0, %c0_1] : memref<12x256xf32, #tpu.memory_space<vmem>>, vector<12x256xf32>
    %4 = arith.truncf %3 : vector<12x256xf32> to vector<12x256xbf16>
    %c0_2 = arith.constant 0 : index
    %c0_3 = arith.constant 0 : index
    %5 = vector.load %arg7[%c0_2, %c0_3] : memref<12x128xf32, #tpu.memory_space<vmem>>, vector<12x128xf32>
    %c0_4 = arith.constant 0 : index
    %c0_5 = arith.constant 0 : index
    %6 = vector.load %arg2[%c0_4, %c0_5] : memref<256x128xbf16, #tpu.memory_space<vmem>>, vector<256x128xbf16>
    %cst = arith.constant dense<0.000000e+00> : vector<12x128xf32>
    %7 = tpu.matmul %4, %6, %cst {dimension_numbers = #tpu.dot_dimension_numbers<[1], [0], [0], [1], [0, 0, 1, 1], [], []>} : vector<12x256xbf16>, vector<256x128xbf16>, vector<12x128xf32> -> vector<12x128xf32>
    %8 = arith.addf %5, %7 : vector<12x128xf32>
    %c0_6 = arith.constant 0 : index
    %c0_7 = arith.constant 0 : index
    %9 = vector.load %arg7[%c0_6, %c0_7] : memref<12x128xf32, #tpu.memory_space<vmem>>, vector<12x128xf32>
    tpu.vector_store %arg7[%c0_6, %c0_7], %8 {strides = array<i32>} : memref<12x128xf32, #tpu.memory_space<vmem>>, vector<12x128xf32>,
    %c0_8 = arith.constant 0 : index
    %c0_9 = arith.constant 0 : index
    %10 = vector.load %arg8[%c0_8, %c0_9] : memref<12x128xf32, #tpu.memory_space<vmem>>, vector<12x128xf32>
    %c0_10 = arith.constant 0 : index
    %c0_11 = arith.constant 0 : index
    %11 = vector.load %arg3[%c0_10, %c0_11] : memref<256x128xbf16, #tpu.memory_space<vmem>>, vector<256x128xbf16>
    %cst_12 = arith.constant dense<0.000000e+00> : vector<12x128xf32>
    %12 = tpu.matmul %4, %11, %cst_12 {dimension_numbers = #tpu.dot_dimension_numbers<[1], [0], [0], [1], [0, 0, 1, 1], [], []>} : vector<12x256xbf16>, vector<256x128xbf16>, vector<12x128xf32> -> vector<12x128xf32>
    %13 = arith.addf %10, %12 : vector<12x128xf32>
    %c0_13 = arith.constant 0 : index
    %c0_14 = arith.constant 0 : index
    %14 = vector.load %arg8[%c0_13, %c0_14] : memref<12x128xf32, #tpu.memory_space<vmem>>, vector<12x128xf32>
    tpu.vector_store %arg8[%c0_13, %c0_14], %13 {strides = array<i32>} : memref<12x128xf32, #tpu.memory_space<vmem>>, vector<12x128xf32>,
    %c3_i32 = arith.constant 3 : i32
    %15 = arith.cmpi eq, %arg0, %c3_i32 : i32
    %16 = arith.extui %15 : i1 to i32
    %c0_i32_15 = arith.constant 0 : i32
    %17 = arith.cmpi ne, %16, %c0_i32_15 : i32
    scf.if %17 {
      %c0_16 = arith.constant 0 : index
      %c0_17 = arith.constant 0 : index
      %18 = vector.load %arg7[%c0_16, %c0_17] : memref<12x128xf32, #tpu.memory_space<vmem>>, vector<12x128xf32>
      %19 = math.tanh %18 : vector<12x128xf32>
      %c0_18 = arith.constant 0 : index
      %c0_19 = arith.constant 0 : index
      %20 = vector.load %arg8[%c0_18, %c0_19] : memref<12x128xf32, #tpu.memory_space<vmem>>, vector<12x128xf32>
      %21 = arith.negf %20 : vector<12x128xf32>
      %22 = math.exp %21 : vector<12x128xf32>
      %cst_20 = arith.constant 1.000000e+00 : f32
      %23 = vector.broadcast %cst_20 : f32 to vector<12x128xf32>
      %24 = arith.addf %23, %22 : vector<12x128xf32>
      %25 = arith.divf %23, %24 : vector<12x128xf32>
      %26 = arith.mulf %19, %25 : vector<12x128xf32>
      %c0_21 = arith.constant 0 : index
      %c0_22 = arith.constant 0 : index
      %27 = vector.load %arg4[%c0_21, %c0_22] : memref<1x128xf32, #tpu.memory_space<vmem>>, vector<1x128xf32>
      %28 = vector.broadcast %27 : vector<1x128xf32> to vector<12x128xf32>
      %29 = arith.mulf %26, %28 : vector<12x128xf32>
      %cst_23 = arith.constant dense<0.000000e+00> : vector<12xf32>
      %30 = vector.multi_reduction <add>, %29, %cst_23 [1] : vector<12x128xf32> to vector<12xf32>
      %31 = vector.shape_cast %30 : vector<12xf32> to vector<12x1xf32>
      %c0_24 = arith.constant 0 : index
      %c0_25 = arith.constant 0 : index
      %32 = vector.load %arg5[%c0_24, %c0_25] : memref<1x1xf32, #tpu.memory_space<vmem>>, vector<1x1xf32>
      %33 = vector.broadcast %32 : vector<1x1xf32> to vector<12x1xf32>
      %34 = arith.addf %31, %33 : vector<12x1xf32>
      %35 = vector.shape_cast %34 : vector<12x1xf32> to vector<12x1xf32>
      %36 = vector.broadcast %35 : vector<12x1xf32> to vector<12x128xf32>
      %37 = vector.extract_strided_slice %36 {offsets = [0, 0], sizes = [6, 128], strides = [1, 1]} : vector<12x128xf32> to vector<6x128xf32>
      %cst_26 = arith.constant dense<0xFF800000> : vector<128xf32>
      %38 = vector.multi_reduction <maximumf>, %37, %cst_26 [0] : vector<6x128xf32> to vector<128xf32>
      %39 = vector.shape_cast %38 : vector<128xf32> to vector<1x128xf32>
      %40 = vector.broadcast %39 : vector<1x128xf32> to vector<6x128xf32>
      %41 = arith.subf %37, %40 : vector<6x128xf32>
      %42 = math.exp %41 : vector<6x128xf32>
      %cst_27 = arith.constant dense<0.000000e+00> : vector<128xf32>
      %43 = vector.multi_reduction <add>, %42, %cst_27 [0] : vector<6x128xf32> to vector<128xf32>
      %44 = vector.shape_cast %43 : vector<128xf32> to vector<1x128xf32>
      %45 = vector.broadcast %44 : vector<1x128xf32> to vector<6x128xf32>
      %46 = arith.divf %42, %45 : vector<6x128xf32>
      %c0_28 = arith.constant 0 : index
      %c0_29 = arith.constant 0 : index
      %c0_30 = arith.constant 0 : index
      %47 = vector.load %arg6[%c0_28, %c0_29, %c0_30] : memref<2x6x128xf32, #tpu.memory_space<vmem>>, vector<1x6x128xf32>
      %48 = vector.shape_cast %47 : vector<1x6x128xf32> to vector<6x128xf32>
      %49 = vector.shape_cast %46 : vector<6x128xf32> to vector<1x6x128xf32>
      tpu.vector_store %arg6[%c0_28, %c0_29, %c0_30], %49 {strides = array<i32>} : memref<2x6x128xf32, #tpu.memory_space<vmem>>, vector<1x6x128xf32>,
      %50 = vector.extract_strided_slice %36 {offsets = [6, 0], sizes = [6, 128], strides = [1, 1]} : vector<12x128xf32> to vector<6x128xf32>
      %cst_31 = arith.constant dense<0xFF800000> : vector<128xf32>
      %51 = vector.multi_reduction <maximumf>, %50, %cst_31 [0] : vector<6x128xf32> to vector<128xf32>
      %52 = vector.shape_cast %51 : vector<128xf32> to vector<1x128xf32>
      %53 = vector.broadcast %52 : vector<1x128xf32> to vector<6x128xf32>
      %54 = arith.subf %50, %53 : vector<6x128xf32>
      %55 = math.exp %54 : vector<6x128xf32>
      %cst_32 = arith.constant dense<0.000000e+00> : vector<128xf32>
      %56 = vector.multi_reduction <add>, %55, %cst_32 [0] : vector<6x128xf32> to vector<128xf32>
      %57 = vector.shape_cast %56 : vector<128xf32> to vector<1x128xf32>
      %58 = vector.broadcast %57 : vector<1x128xf32> to vector<6x128xf32>
      %59 = arith.divf %55, %58 : vector<6x128xf32>
      %c1 = arith.constant 1 : index
      %c0_33 = arith.constant 0 : index
      %c0_34 = arith.constant 0 : index
      %60 = vector.load %arg6[%c1, %c0_33, %c0_34] : memref<2x6x128xf32, #tpu.memory_space<vmem>>, vector<1x6x128xf32>
      %61 = vector.shape_cast %60 : vector<1x6x128xf32> to vector<6x128xf32>
      %62 = vector.shape_cast %59 : vector<6x128xf32> to vector<1x6x128xf32>
      tpu.vector_store %arg6[%c1, %c0_33, %c0_34], %62 {strides = array<i32>} : memref<2x6x128xf32, #tpu.memory_space<vmem>>, vector<1x6x128xf32>,
    } else {
    }
    return
  }
  func.func @transform_0(%arg0: i32) -> (i32, i32) {
    %c0_i32 = arith.constant 0 : i32
    %c0_i32_0 = arith.constant 0 : i32
    return %c0_i32, %arg0 : i32, i32
  }
  func.func @transform_1(%arg0: i32) -> (i32, i32) {
    %c0_i32 = arith.constant 0 : i32
    %c0_i32_0 = arith.constant 0 : i32
    return %arg0, %c0_i32 : i32, i32
  }
  func.func @transform_2(%arg0: i32) -> (i32, i32) {
    %c0_i32 = arith.constant 0 : i32
    %c0_i32_0 = arith.constant 0 : i32
    return %arg0, %c0_i32 : i32, i32
  }
  func.func @transform_3(%arg0: i32) -> (i32, i32) {
    %c0_i32 = arith.constant 0 : i32
    %c0_i32_0 = arith.constant 0 : i32
    %c0_i32_1 = arith.constant 0 : i32
    return %c0_i32, %c0_i32_0 : i32, i32
  }
  func.func @transform_4(%arg0: i32) -> (i32, i32) {
    %c0_i32 = arith.constant 0 : i32
    %c0_i32_0 = arith.constant 0 : i32
    %c0_i32_1 = arith.constant 0 : i32
    return %c0_i32, %c0_i32_0 : i32, i32
  }
  func.func @transform_5(%arg0: i32) -> (i32, i32, i32) {
    %c0_i32 = arith.constant 0 : i32
    %c0_i32_0 = arith.constant 0 : i32
    %c0_i32_1 = arith.constant 0 : i32
    %c0_i32_2 = arith.constant 0 : i32
    return %c0_i32, %c0_i32_0, %c0_i32_1 : i32, i32, i32
  }
}

module attributes {stable_mosaic.version = 11 : i64} {
  func.func @_fused_forward_kernel(%arg0: i32, %arg1: i32, %arg2: memref<1x6x128xf32, #tpu.memory_space<vmem>>, %arg3: memref<1x6x8x128xf32, #tpu.memory_space<vmem>>, %arg4: memref<1x8x128xf32, #tpu.memory_space<vmem>>, %arg5: memref<2x128xf32, #tpu.memory_space<vmem>>, %arg6: memref<128x128xbf16, #tpu.memory_space<vmem>>, %arg7: memref<1x128xf32, #tpu.memory_space<vmem>>, %arg8: memref<128x128xbf16, #tpu.memory_space<vmem>>, %arg9: memref<1x128xf32, #tpu.memory_space<vmem>>, %arg10: memref<128x384xbf16, #tpu.memory_space<vmem>>, %arg11: memref<1x384xf32, #tpu.memory_space<vmem>>, %arg12: memref<128x128xbf16, #tpu.memory_space<vmem>>, %arg13: memref<1x128xf32, #tpu.memory_space<vmem>>, %arg14: memref<128x128xbf16, #tpu.memory_space<vmem>>, %arg15: memref<1x128xf32, #tpu.memory_space<vmem>>, %arg16: memref<128x128xbf16, #tpu.memory_space<vmem>>, %arg17: memref<1x128xf32, #tpu.memory_space<vmem>>, %arg18: memref<128x256xbf16, #tpu.memory_space<vmem>>, %arg19: memref<1x256xf32, #tpu.memory_space<vmem>>, %arg20: memref<256x64xbf16, #tpu.memory_space<vmem>>, %arg21: memref<1x64xf32, #tpu.memory_space<vmem>>, %arg22: memref<64x2xbf16, #tpu.memory_space<vmem>>, %arg23: memref<1x2xf32, #tpu.memory_space<vmem>>, %arg24: memref<1x16x128xf32, #tpu.memory_space<vmem>>, %arg25: memref<1x1x2xf32, #tpu.memory_space<vmem>>, %arg26: memref<16x128xbf16, #tpu.memory_space<vmem>>, %arg27: memref<4x16x32xbf16, #tpu.memory_space<vmem>>, %arg28: memref<4x16x32xbf16, #tpu.memory_space<vmem>>, %arg29: memref<4x16x32xbf16, #tpu.memory_space<vmem>>, %arg30: memref<1x256xf32, #tpu.memory_space<vmem>>) attributes {dimension_semantics = [#tpu.dimension_semantics<parallel>, #tpu.dimension_semantics<arbitrary>], iteration_bounds = array<i64: 2, 2>, scalar_prefetch = 0 : i64, scratch_operands = 5 : i64, tpu.core_type = #tpu.core_type<tc>, window_params = [{transform_indices = @transform_0, window_bounds = array<i64: 1, 6, 128>}, {transform_indices = @transform_1, window_bounds = array<i64: 1, 6, 8, 128>}, {transform_indices = @transform_2, window_bounds = array<i64: 1, 8, 128>}, {pipeline_mode = #tpu.pipeline_mode<synchronous>, transform_indices = @transform_3, window_bounds = array<i64: 2, 128>}, {pipeline_mode = #tpu.pipeline_mode<synchronous>, transform_indices = @transform_4, window_bounds = array<i64: 128, 128>}, {pipeline_mode = #tpu.pipeline_mode<synchronous>, transform_indices = @transform_5, window_bounds = array<i64: 1, 128>}, {pipeline_mode = #tpu.pipeline_mode<synchronous>, transform_indices = @transform_6, window_bounds = array<i64: 128, 128>}, {pipeline_mode = #tpu.pipeline_mode<synchronous>, transform_indices = @transform_7, window_bounds = array<i64: 1, 128>}, {pipeline_mode = #tpu.pipeline_mode<synchronous>, transform_indices = @transform_8, window_bounds = array<i64: 128, 384>}, {pipeline_mode = #tpu.pipeline_mode<synchronous>, transform_indices = @transform_9, window_bounds = array<i64: 1, 384>}, {pipeline_mode = #tpu.pipeline_mode<synchronous>, transform_indices = @transform_10, window_bounds = array<i64: 128, 128>}, {pipeline_mode = #tpu.pipeline_mode<synchronous>, transform_indices = @transform_11, window_bounds = array<i64: 1, 128>}, {pipeline_mode = #tpu.pipeline_mode<synchronous>, transform_indices = @transform_12, window_bounds = array<i64: 128, 128>}, {pipeline_mode = #tpu.pipeline_mode<synchronous>, transform_indices = @transform_13, window_bounds = array<i64: 1, 128>}, {transform_indices = @transform_14, window_bounds = array<i64: 128, 128>}, {transform_indices = @transform_15, window_bounds = array<i64: 1, 128>}, {transform_indices = @transform_16, window_bounds = array<i64: 128, 256>}, {pipeline_mode = #tpu.pipeline_mode<synchronous>, transform_indices = @transform_17, window_bounds = array<i64: 1, 256>}, {pipeline_mode = #tpu.pipeline_mode<synchronous>, transform_indices = @transform_18, window_bounds = array<i64: 256, 64>}, {pipeline_mode = #tpu.pipeline_mode<synchronous>, transform_indices = @transform_19, window_bounds = array<i64: 1, 64>}, {pipeline_mode = #tpu.pipeline_mode<synchronous>, transform_indices = @transform_20, window_bounds = array<i64: 64, 2>}, {pipeline_mode = #tpu.pipeline_mode<synchronous>, transform_indices = @transform_21, window_bounds = array<i64: 1, 2>}, {transform_indices = @transform_22, window_bounds = array<i64: 1, 16, 128>}, {transform_indices = @transform_23, window_bounds = array<i64: 1, 1, 2>}]} {
    %c0_i32 = arith.constant 0 : i32
    %0 = arith.cmpi eq, %arg1, %c0_i32 : i32
    %1 = arith.extui %0 : i1 to i32
    %c0_i32_0 = arith.constant 0 : i32
    %2 = arith.cmpi ne, %1, %c0_i32_0 : i32
    scf.if %2 {
      %cst_19 = arith.constant 0.000000e+00 : f32
      %25 = vector.broadcast %cst_19 : f32 to vector<1x256xf32>
      %c0_20 = arith.constant 0 : index
      %c0_21 = arith.constant 0 : index
      %26 = vector.load %arg30[%c0_20, %c0_21] : memref<1x256xf32, #tpu.memory_space<vmem>>, vector<1x256xf32>
      tpu.vector_store %arg30[%c0_20, %c0_21], %25 {strides = array<i32>} : memref<1x256xf32, #tpu.memory_space<vmem>>, vector<1x256xf32>,
      %c0_22 = arith.constant 0 : index
      %c0_23 = arith.constant 0 : index
      %27 = vector.load %arg5[%c0_22, %c0_23] : memref<2x128xf32, #tpu.memory_space<vmem>>, vector<2x128xf32>
      %c0_24 = arith.constant 0 : index
      %c0_25 = arith.constant 0 : index
      %c0_26 = arith.constant 0 : index
      %c0_27 = arith.constant 0 : index
      %28 = vector.load %arg3[%c0_24, %c0_25, %c0_26, %c0_27] : memref<1x6x8x128xf32, #tpu.memory_space<vmem>>, vector<1x6x8x128xf32>
      %29 = vector.shape_cast %28 : vector<1x6x8x128xf32> to vector<6x8x128xf32>
      %c0_28 = arith.constant 0 : index
      %c0_29 = arith.constant 0 : index
      %c0_30 = arith.constant 0 : index
      %30 = vector.load %arg2[%c0_28, %c0_29, %c0_30] : memref<1x6x128xf32, #tpu.memory_space<vmem>>, vector<1x6x128xf32>
      %31 = vector.shape_cast %30 : vector<1x6x128xf32> to vector<6x128xf32>
      %32 = vector.extract_strided_slice %31 {offsets = [0, 0], sizes = [1, 128], strides = [1, 1]} : vector<6x128xf32> to vector<1x128xf32>
      %33 = vector.extract_strided_slice %29 {offsets = [0, 0, 0], sizes = [1, 8, 128], strides = [1, 1, 1]} : vector<6x8x128xf32> to vector<1x8x128xf32>
      %34 = vector.shape_cast %33 : vector<1x8x128xf32> to vector<8x128xf32>
      %35 = vector.broadcast %32 : vector<1x128xf32> to vector<8x128xf32>
      %36 = arith.mulf %35, %34 : vector<8x128xf32>
      %37 = vector.extract_strided_slice %31 {offsets = [1, 0], sizes = [1, 128], strides = [1, 1]} : vector<6x128xf32> to vector<1x128xf32>
      %38 = vector.extract_strided_slice %29 {offsets = [1, 0, 0], sizes = [1, 8, 128], strides = [1, 1, 1]} : vector<6x8x128xf32> to vector<1x8x128xf32>
      %39 = vector.shape_cast %38 : vector<1x8x128xf32> to vector<8x128xf32>
      %40 = vector.broadcast %37 : vector<1x128xf32> to vector<8x128xf32>
      %41 = arith.mulf %40, %39 : vector<8x128xf32>
      %42 = arith.addf %36, %41 : vector<8x128xf32>
      %43 = vector.extract_strided_slice %31 {offsets = [2, 0], sizes = [1, 128], strides = [1, 1]} : vector<6x128xf32> to vector<1x128xf32>
      %44 = vector.extract_strided_slice %29 {offsets = [2, 0, 0], sizes = [1, 8, 128], strides = [1, 1, 1]} : vector<6x8x128xf32> to vector<1x8x128xf32>
      %45 = vector.shape_cast %44 : vector<1x8x128xf32> to vector<8x128xf32>
      %46 = vector.broadcast %43 : vector<1x128xf32> to vector<8x128xf32>
      %47 = arith.mulf %46, %45 : vector<8x128xf32>
      %48 = arith.addf %42, %47 : vector<8x128xf32>
      %49 = vector.extract_strided_slice %31 {offsets = [3, 0], sizes = [1, 128], strides = [1, 1]} : vector<6x128xf32> to vector<1x128xf32>
      %50 = vector.extract_strided_slice %29 {offsets = [3, 0, 0], sizes = [1, 8, 128], strides = [1, 1, 1]} : vector<6x8x128xf32> to vector<1x8x128xf32>
      %51 = vector.shape_cast %50 : vector<1x8x128xf32> to vector<8x128xf32>
      %52 = vector.broadcast %49 : vector<1x128xf32> to vector<8x128xf32>
      %53 = arith.mulf %52, %51 : vector<8x128xf32>
      %54 = arith.addf %48, %53 : vector<8x128xf32>
      %55 = vector.extract_strided_slice %31 {offsets = [4, 0], sizes = [1, 128], strides = [1, 1]} : vector<6x128xf32> to vector<1x128xf32>
      %56 = vector.extract_strided_slice %29 {offsets = [4, 0, 0], sizes = [1, 8, 128], strides = [1, 1, 1]} : vector<6x8x128xf32> to vector<1x8x128xf32>
      %57 = vector.shape_cast %56 : vector<1x8x128xf32> to vector<8x128xf32>
      %58 = vector.broadcast %55 : vector<1x128xf32> to vector<8x128xf32>
      %59 = arith.mulf %58, %57 : vector<8x128xf32>
      %60 = arith.addf %54, %59 : vector<8x128xf32>
      %61 = vector.extract_strided_slice %31 {offsets = [5, 0], sizes = [1, 128], strides = [1, 1]} : vector<6x128xf32> to vector<1x128xf32>
      %62 = vector.extract_strided_slice %29 {offsets = [5, 0, 0], sizes = [1, 8, 128], strides = [1, 1, 1]} : vector<6x8x128xf32> to vector<1x8x128xf32>
      %63 = vector.shape_cast %62 : vector<1x8x128xf32> to vector<8x128xf32>
      %64 = vector.broadcast %61 : vector<1x128xf32> to vector<8x128xf32>
      %65 = arith.mulf %64, %63 : vector<8x128xf32>
      %66 = arith.addf %60, %65 : vector<8x128xf32>
      %67 = vector.extract_strided_slice %27 {offsets = [1, 0], sizes = [1, 128], strides = [1, 1]} : vector<2x128xf32> to vector<1x128xf32>
      %68 = vector.broadcast %67 : vector<1x128xf32> to vector<8x128xf32>
      %69 = arith.addf %66, %68 : vector<8x128xf32>
      %c0_31 = arith.constant 0 : index
      %c0_32 = arith.constant 0 : index
      %c0_33 = arith.constant 0 : index
      %70 = vector.load %arg4[%c0_31, %c0_32, %c0_33] : memref<1x8x128xf32, #tpu.memory_space<vmem>>, vector<1x8x128xf32>
      %71 = vector.shape_cast %70 : vector<1x8x128xf32> to vector<8x128xf32>
      %72 = vector.extract_strided_slice %27 {offsets = [0, 0], sizes = [1, 128], strides = [1, 1]} : vector<2x128xf32> to vector<1x128xf32>
      %73 = vector.broadcast %72 : vector<1x128xf32> to vector<8x128xf32>
      %74 = arith.addf %71, %73 : vector<8x128xf32>
      %75 = arith.truncf %69 : vector<8x128xf32> to vector<8x128xbf16>
      %c0_34 = arith.constant 0 : index
      %c0_35 = arith.constant 0 : index
      %76 = vector.load %arg6[%c0_34, %c0_35] : memref<128x128xbf16, #tpu.memory_space<vmem>>, vector<128x128xbf16>
      %cst_36 = arith.constant dense<0.000000e+00> : vector<8x128xf32>
      %77 = tpu.matmul %75, %76, %cst_36 {dimension_numbers = #tpu.dot_dimension_numbers<[1], [0], [0], [1], [0, 0, 1, 1], [], []>} : vector<8x128xbf16>, vector<128x128xbf16>, vector<8x128xf32> -> vector<8x128xf32>
      %c0_37 = arith.constant 0 : index
      %c0_38 = arith.constant 0 : index
      %78 = vector.load %arg7[%c0_37, %c0_38] : memref<1x128xf32, #tpu.memory_space<vmem>>, vector<1x128xf32>
      %79 = vector.broadcast %78 : vector<1x128xf32> to vector<8x128xf32>
      %80 = arith.addf %77, %79 : vector<8x128xf32>
      %81 = arith.truncf %74 : vector<8x128xf32> to vector<8x128xbf16>
      %c0_39 = arith.constant 0 : index
      %c0_40 = arith.constant 0 : index
      %82 = vector.load %arg8[%c0_39, %c0_40] : memref<128x128xbf16, #tpu.memory_space<vmem>>, vector<128x128xbf16>
      %cst_41 = arith.constant dense<0.000000e+00> : vector<8x128xf32>
      %83 = tpu.matmul %81, %82, %cst_41 {dimension_numbers = #tpu.dot_dimension_numbers<[1], [0], [0], [1], [0, 0, 1, 1], [], []>} : vector<8x128xbf16>, vector<128x128xbf16>, vector<8x128xf32> -> vector<8x128xf32>
      %c0_42 = arith.constant 0 : index
      %c0_43 = arith.constant 0 : index
      %84 = vector.load %arg9[%c0_42, %c0_43] : memref<1x128xf32, #tpu.memory_space<vmem>>, vector<1x128xf32>
      %85 = vector.broadcast %84 : vector<1x128xf32> to vector<8x128xf32>
      %86 = arith.addf %83, %85 : vector<8x128xf32>
      %87 = tpu.concatenate %80, %86 in 0 : vector<8x128xf32>, vector<8x128xf32> -> vector<16x128xf32>
      %88 = arith.truncf %87 : vector<16x128xf32> to vector<16x128xbf16>
      %c0_44 = arith.constant 0 : index
      %c0_45 = arith.constant 0 : index
      %89 = vector.load %arg10[%c0_44, %c0_45] : memref<128x384xbf16, #tpu.memory_space<vmem>>, vector<128x384xbf16>
      %cst_46 = arith.constant dense<0.000000e+00> : vector<16x384xf32>
      %90 = tpu.matmul %88, %89, %cst_46 {dimension_numbers = #tpu.dot_dimension_numbers<[1], [0], [0], [1], [0, 0, 1, 1], [], []>} : vector<16x128xbf16>, vector<128x384xbf16>, vector<16x384xf32> -> vector<16x384xf32>
      %c0_47 = arith.constant 0 : index
      %c0_48 = arith.constant 0 : index
      %91 = vector.load %arg11[%c0_47, %c0_48] : memref<1x384xf32, #tpu.memory_space<vmem>>, vector<1x384xf32>
      %92 = vector.broadcast %91 : vector<1x384xf32> to vector<16x384xf32>
      %93 = arith.addf %90, %92 : vector<16x384xf32>
      %94 = vector.extract_strided_slice %93 {offsets = [0, 0], sizes = [16, 32], strides = [1, 1]} : vector<16x384xf32> to vector<16x32xf32>
      %95 = arith.truncf %94 : vector<16x32xf32> to vector<16x32xbf16>
      %c0_49 = arith.constant 0 : index
      %c0_50 = arith.constant 0 : index
      %c0_51 = arith.constant 0 : index
      %96 = vector.load %arg27[%c0_49, %c0_50, %c0_51] : memref<4x16x32xbf16, #tpu.memory_space<vmem>>, vector<1x16x32xbf16>
      %97 = vector.shape_cast %96 : vector<1x16x32xbf16> to vector<16x32xbf16>
      %98 = vector.shape_cast %95 : vector<16x32xbf16> to vector<1x16x32xbf16>
      tpu.vector_store %arg27[%c0_49, %c0_50, %c0_51], %98 {strides = array<i32>} : memref<4x16x32xbf16, #tpu.memory_space<vmem>>, vector<1x16x32xbf16>,
      %99 = vector.extract_strided_slice %93 {offsets = [0, 128], sizes = [16, 32], strides = [1, 1]} : vector<16x384xf32> to vector<16x32xf32>
      %100 = arith.truncf %99 : vector<16x32xf32> to vector<16x32xbf16>
      %c0_52 = arith.constant 0 : index
      %c0_53 = arith.constant 0 : index
      %c0_54 = arith.constant 0 : index
      %101 = vector.load %arg28[%c0_52, %c0_53, %c0_54] : memref<4x16x32xbf16, #tpu.memory_space<vmem>>, vector<1x16x32xbf16>
      %102 = vector.shape_cast %101 : vector<1x16x32xbf16> to vector<16x32xbf16>
      %103 = vector.shape_cast %100 : vector<16x32xbf16> to vector<1x16x32xbf16>
      tpu.vector_store %arg28[%c0_52, %c0_53, %c0_54], %103 {strides = array<i32>} : memref<4x16x32xbf16, #tpu.memory_space<vmem>>, vector<1x16x32xbf16>,
      %104 = vector.extract_strided_slice %93 {offsets = [0, 256], sizes = [16, 32], strides = [1, 1]} : vector<16x384xf32> to vector<16x32xf32>
      %105 = arith.truncf %104 : vector<16x32xf32> to vector<16x32xbf16>
      %c0_55 = arith.constant 0 : index
      %c0_56 = arith.constant 0 : index
      %c0_57 = arith.constant 0 : index
      %106 = vector.load %arg29[%c0_55, %c0_56, %c0_57] : memref<4x16x32xbf16, #tpu.memory_space<vmem>>, vector<1x16x32xbf16>
      %107 = vector.shape_cast %106 : vector<1x16x32xbf16> to vector<16x32xbf16>
      %108 = vector.shape_cast %105 : vector<16x32xbf16> to vector<1x16x32xbf16>
      tpu.vector_store %arg29[%c0_55, %c0_56, %c0_57], %108 {strides = array<i32>} : memref<4x16x32xbf16, #tpu.memory_space<vmem>>, vector<1x16x32xbf16>,
      %109 = vector.extract_strided_slice %93 {offsets = [0, 32], sizes = [16, 32], strides = [1, 1]} : vector<16x384xf32> to vector<16x32xf32>
      %110 = arith.truncf %109 : vector<16x32xf32> to vector<16x32xbf16>
      %c1 = arith.constant 1 : index
      %c0_58 = arith.constant 0 : index
      %c0_59 = arith.constant 0 : index
      %111 = vector.load %arg27[%c1, %c0_58, %c0_59] : memref<4x16x32xbf16, #tpu.memory_space<vmem>>, vector<1x16x32xbf16>
      %112 = vector.shape_cast %111 : vector<1x16x32xbf16> to vector<16x32xbf16>
      %113 = vector.shape_cast %110 : vector<16x32xbf16> to vector<1x16x32xbf16>
      tpu.vector_store %arg27[%c1, %c0_58, %c0_59], %113 {strides = array<i32>} : memref<4x16x32xbf16, #tpu.memory_space<vmem>>, vector<1x16x32xbf16>,
      %114 = vector.extract_strided_slice %93 {offsets = [0, 160], sizes = [16, 32], strides = [1, 1]} : vector<16x384xf32> to vector<16x32xf32>
      %115 = arith.truncf %114 : vector<16x32xf32> to vector<16x32xbf16>
      %c1_60 = arith.constant 1 : index
      %c0_61 = arith.constant 0 : index
      %c0_62 = arith.constant 0 : index
      %116 = vector.load %arg28[%c1_60, %c0_61, %c0_62] : memref<4x16x32xbf16, #tpu.memory_space<vmem>>, vector<1x16x32xbf16>
      %117 = vector.shape_cast %116 : vector<1x16x32xbf16> to vector<16x32xbf16>
      %118 = vector.shape_cast %115 : vector<16x32xbf16> to vector<1x16x32xbf16>
      tpu.vector_store %arg28[%c1_60, %c0_61, %c0_62], %118 {strides = array<i32>} : memref<4x16x32xbf16, #tpu.memory_space<vmem>>, vector<1x16x32xbf16>,
      %119 = vector.extract_strided_slice %93 {offsets = [0, 288], sizes = [16, 32], strides = [1, 1]} : vector<16x384xf32> to vector<16x32xf32>
      %120 = arith.truncf %119 : vector<16x32xf32> to vector<16x32xbf16>
      %c1_63 = arith.constant 1 : index
      %c0_64 = arith.constant 0 : index
      %c0_65 = arith.constant 0 : index
      %121 = vector.load %arg29[%c1_63, %c0_64, %c0_65] : memref<4x16x32xbf16, #tpu.memory_space<vmem>>, vector<1x16x32xbf16>
      %122 = vector.shape_cast %121 : vector<1x16x32xbf16> to vector<16x32xbf16>
      %123 = vector.shape_cast %120 : vector<16x32xbf16> to vector<1x16x32xbf16>
      tpu.vector_store %arg29[%c1_63, %c0_64, %c0_65], %123 {strides = array<i32>} : memref<4x16x32xbf16, #tpu.memory_space<vmem>>, vector<1x16x32xbf16>,
      %124 = vector.extract_strided_slice %93 {offsets = [0, 64], sizes = [16, 32], strides = [1, 1]} : vector<16x384xf32> to vector<16x32xf32>
      %125 = arith.truncf %124 : vector<16x32xf32> to vector<16x32xbf16>
      %c2 = arith.constant 2 : index
      %c0_66 = arith.constant 0 : index
      %c0_67 = arith.constant 0 : index
      %126 = vector.load %arg27[%c2, %c0_66, %c0_67] : memref<4x16x32xbf16, #tpu.memory_space<vmem>>, vector<1x16x32xbf16>
      %127 = vector.shape_cast %126 : vector<1x16x32xbf16> to vector<16x32xbf16>
      %128 = vector.shape_cast %125 : vector<16x32xbf16> to vector<1x16x32xbf16>
      tpu.vector_store %arg27[%c2, %c0_66, %c0_67], %128 {strides = array<i32>} : memref<4x16x32xbf16, #tpu.memory_space<vmem>>, vector<1x16x32xbf16>,
      %129 = vector.extract_strided_slice %93 {offsets = [0, 192], sizes = [16, 32], strides = [1, 1]} : vector<16x384xf32> to vector<16x32xf32>
      %130 = arith.truncf %129 : vector<16x32xf32> to vector<16x32xbf16>
      %c2_68 = arith.constant 2 : index
      %c0_69 = arith.constant 0 : index
      %c0_70 = arith.constant 0 : index
      %131 = vector.load %arg28[%c2_68, %c0_69, %c0_70] : memref<4x16x32xbf16, #tpu.memory_space<vmem>>, vector<1x16x32xbf16>
      %132 = vector.shape_cast %131 : vector<1x16x32xbf16> to vector<16x32xbf16>
      %133 = vector.shape_cast %130 : vector<16x32xbf16> to vector<1x16x32xbf16>
      tpu.vector_store %arg28[%c2_68, %c0_69, %c0_70], %133 {strides = array<i32>} : memref<4x16x32xbf16, #tpu.memory_space<vmem>>, vector<1x16x32xbf16>,
      %134 = vector.extract_strided_slice %93 {offsets = [0, 320], sizes = [16, 32], strides = [1, 1]} : vector<16x384xf32> to vector<16x32xf32>
      %135 = arith.truncf %134 : vector<16x32xf32> to vector<16x32xbf16>
      %c2_71 = arith.constant 2 : index
      %c0_72 = arith.constant 0 : index
      %c0_73 = arith.constant 0 : index
      %136 = vector.load %arg29[%c2_71, %c0_72, %c0_73] : memref<4x16x32xbf16, #tpu.memory_space<vmem>>, vector<1x16x32xbf16>
      %137 = vector.shape_cast %136 : vector<1x16x32xbf16> to vector<16x32xbf16>
      %138 = vector.shape_cast %135 : vector<16x32xbf16> to vector<1x16x32xbf16>
      tpu.vector_store %arg29[%c2_71, %c0_72, %c0_73], %138 {strides = array<i32>} : memref<4x16x32xbf16, #tpu.memory_space<vmem>>, vector<1x16x32xbf16>,
      %139 = vector.extract_strided_slice %93 {offsets = [0, 96], sizes = [16, 32], strides = [1, 1]} : vector<16x384xf32> to vector<16x32xf32>
      %140 = arith.truncf %139 : vector<16x32xf32> to vector<16x32xbf16>
      %c3 = arith.constant 3 : index
      %c0_74 = arith.constant 0 : index
      %c0_75 = arith.constant 0 : index
      %141 = vector.load %arg27[%c3, %c0_74, %c0_75] : memref<4x16x32xbf16, #tpu.memory_space<vmem>>, vector<1x16x32xbf16>
      %142 = vector.shape_cast %141 : vector<1x16x32xbf16> to vector<16x32xbf16>
      %143 = vector.shape_cast %140 : vector<16x32xbf16> to vector<1x16x32xbf16>
      tpu.vector_store %arg27[%c3, %c0_74, %c0_75], %143 {strides = array<i32>} : memref<4x16x32xbf16, #tpu.memory_space<vmem>>, vector<1x16x32xbf16>,
      %144 = vector.extract_strided_slice %93 {offsets = [0, 224], sizes = [16, 32], strides = [1, 1]} : vector<16x384xf32> to vector<16x32xf32>
      %145 = arith.truncf %144 : vector<16x32xf32> to vector<16x32xbf16>
      %c3_76 = arith.constant 3 : index
      %c0_77 = arith.constant 0 : index
      %c0_78 = arith.constant 0 : index
      %146 = vector.load %arg28[%c3_76, %c0_77, %c0_78] : memref<4x16x32xbf16, #tpu.memory_space<vmem>>, vector<1x16x32xbf16>
      %147 = vector.shape_cast %146 : vector<1x16x32xbf16> to vector<16x32xbf16>
      %148 = vector.shape_cast %145 : vector<16x32xbf16> to vector<1x16x32xbf16>
      tpu.vector_store %arg28[%c3_76, %c0_77, %c0_78], %148 {strides = array<i32>} : memref<4x16x32xbf16, #tpu.memory_space<vmem>>, vector<1x16x32xbf16>,
      %149 = vector.extract_strided_slice %93 {offsets = [0, 352], sizes = [16, 32], strides = [1, 1]} : vector<16x384xf32> to vector<16x32xf32>
      %150 = arith.truncf %149 : vector<16x32xf32> to vector<16x32xbf16>
      %c3_79 = arith.constant 3 : index
      %c0_80 = arith.constant 0 : index
      %c0_81 = arith.constant 0 : index
      %151 = vector.load %arg29[%c3_79, %c0_80, %c0_81] : memref<4x16x32xbf16, #tpu.memory_space<vmem>>, vector<1x16x32xbf16>
      %152 = vector.shape_cast %151 : vector<1x16x32xbf16> to vector<16x32xbf16>
      %153 = vector.shape_cast %150 : vector<16x32xbf16> to vector<1x16x32xbf16>
      tpu.vector_store %arg29[%c3_79, %c0_80, %c0_81], %153 {strides = array<i32>} : memref<4x16x32xbf16, #tpu.memory_space<vmem>>, vector<1x16x32xbf16>,
      %c0_82 = arith.constant 0 : index
      %c0_83 = arith.constant 0 : index
      %c0_84 = arith.constant 0 : index
      %154 = vector.load %arg27[%c0_82, %c0_83, %c0_84] : memref<4x16x32xbf16, #tpu.memory_space<vmem>>, vector<4x16x32xbf16>
      %c0_85 = arith.constant 0 : index
      %c0_86 = arith.constant 0 : index
      %c0_87 = arith.constant 0 : index
      %155 = vector.load %arg28[%c0_85, %c0_86, %c0_87] : memref<4x16x32xbf16, #tpu.memory_space<vmem>>, vector<4x16x32xbf16>
      "tpu.trace_start"() <{level = 10 : i32, message = "hqd,hkd->hqk"}> : () -> ()
      %cst_88 = arith.constant dense<0.000000e+00> : vector<4x16x16xf32>
      %156 = tpu.matmul %154, %155, %cst_88 {dimension_numbers = #tpu.dot_dimension_numbers<[2], [2], [1], [1], [0, 0, 0, 1, 1, 1], [0], [0]>} : vector<4x16x32xbf16>, vector<4x16x32xbf16>, vector<4x16x16xf32> -> vector<4x16x16xf32>
      "tpu.trace_stop"() : () -> ()
      %cst_89 = arith.constant 0.176776692 : f32
      %157 = vector.broadcast %cst_89 : f32 to vector<4x16x16xf32>
      %158 = arith.mulf %156, %157 : vector<4x16x16xf32>
      %cst_90 = arith.constant dense<0xFF800000> : vector<4x16xf32>
      %159 = vector.multi_reduction <maximumf>, %158, %cst_90 [2] : vector<4x16x16xf32> to vector<4x16xf32>
      %cst_91 = arith.constant 0xFF800000 : f32
      %160 = vector.broadcast %cst_91 : f32 to vector<4x16xf32>
      %161 = arith.maximumf %160, %159 : vector<4x16xf32>
      %162 = vector.shape_cast %161 : vector<4x16xf32> to vector<4x16x1xf32>
      %163 = vector.broadcast %162 : vector<4x16x1xf32> to vector<4x16x16xf32>
      %164 = arith.subf %158, %163 : vector<4x16x16xf32>
      %165 = math.exp %164 : vector<4x16x16xf32>
      %cst_92 = arith.constant dense<0.000000e+00> : vector<4x16xf32>
      %166 = vector.multi_reduction <add>, %165, %cst_92 [2] : vector<4x16x16xf32> to vector<4x16xf32>
      %167 = vector.shape_cast %166 : vector<4x16xf32> to vector<4x16x1xf32>
      %168 = vector.broadcast %167 : vector<4x16x1xf32> to vector<4x16x16xf32>
      %169 = arith.divf %165, %168 : vector<4x16x16xf32>
      %170 = arith.truncf %169 : vector<4x16x16xf32> to vector<4x16x16xbf16>
      %c0_93 = arith.constant 0 : index
      %c0_94 = arith.constant 0 : index
      %c0_95 = arith.constant 0 : index
      %171 = vector.load %arg29[%c0_93, %c0_94, %c0_95] : memref<4x16x32xbf16, #tpu.memory_space<vmem>>, vector<4x16x32xbf16>
      "tpu.trace_start"() <{level = 10 : i32, message = "hqk,hkd->hqd"}> : () -> ()
      %cst_96 = arith.constant dense<0.000000e+00> : vector<4x16x32xf32>
      %172 = tpu.matmul %170, %171, %cst_96 {dimension_numbers = #tpu.dot_dimension_numbers<[2], [1], [1], [2], [0, 0, 0, 1, 1, 2], [0], [0]>} : vector<4x16x16xbf16>, vector<4x16x32xbf16>, vector<4x16x32xf32> -> vector<4x16x32xf32>
      "tpu.trace_stop"() : () -> ()
      %173 = vector.extract_strided_slice %172 {offsets = [0, 0, 0], sizes = [1, 16, 32], strides = [1, 1, 1]} : vector<4x16x32xf32> to vector<1x16x32xf32>
      %174 = vector.shape_cast %173 : vector<1x16x32xf32> to vector<16x32xf32>
      %175 = vector.extract_strided_slice %172 {offsets = [1, 0, 0], sizes = [1, 16, 32], strides = [1, 1, 1]} : vector<4x16x32xf32> to vector<1x16x32xf32>
      %176 = vector.shape_cast %175 : vector<1x16x32xf32> to vector<16x32xf32>
      %177 = vector.extract_strided_slice %172 {offsets = [2, 0, 0], sizes = [1, 16, 32], strides = [1, 1, 1]} : vector<4x16x32xf32> to vector<1x16x32xf32>
      %178 = vector.shape_cast %177 : vector<1x16x32xf32> to vector<16x32xf32>
      %179 = vector.extract_strided_slice %172 {offsets = [3, 0, 0], sizes = [1, 16, 32], strides = [1, 1, 1]} : vector<4x16x32xf32> to vector<1x16x32xf32>
      %180 = vector.shape_cast %179 : vector<1x16x32xf32> to vector<16x32xf32>
      %181 = tpu.concatenate %174, %176, %178, %180 in 1 : vector<16x32xf32>, vector<16x32xf32>, vector<16x32xf32>, vector<16x32xf32> -> vector<16x128xf32>
      %182 = arith.truncf %181 : vector<16x128xf32> to vector<16x128xbf16>
      %c0_97 = arith.constant 0 : index
      %c0_98 = arith.constant 0 : index
      %183 = vector.load %arg12[%c0_97, %c0_98] : memref<128x128xbf16, #tpu.memory_space<vmem>>, vector<128x128xbf16>
      %cst_99 = arith.constant dense<0.000000e+00> : vector<16x128xf32>
      %184 = tpu.matmul %182, %183, %cst_99 {dimension_numbers = #tpu.dot_dimension_numbers<[1], [0], [0], [1], [0, 0, 1, 1], [], []>} : vector<16x128xbf16>, vector<128x128xbf16>, vector<16x128xf32> -> vector<16x128xf32>
      %c0_100 = arith.constant 0 : index
      %c0_101 = arith.constant 0 : index
      %185 = vector.load %arg13[%c0_100, %c0_101] : memref<1x128xf32, #tpu.memory_space<vmem>>, vector<1x128xf32>
      %186 = vector.broadcast %185 : vector<1x128xf32> to vector<16x128xf32>
      %187 = arith.addf %184, %186 : vector<16x128xf32>
      %188 = arith.truncf %187 : vector<16x128xf32> to vector<16x128xbf16>
      %c0_102 = arith.constant 0 : index
      %c0_103 = arith.constant 0 : index
      %189 = vector.load %arg14[%c0_102, %c0_103] : memref<128x128xbf16, #tpu.memory_space<vmem>>, vector<128x128xbf16>
      %cst_104 = arith.constant dense<0.000000e+00> : vector<16x128xf32>
      %190 = tpu.matmul %188, %189, %cst_104 {dimension_numbers = #tpu.dot_dimension_numbers<[1], [0], [0], [1], [0, 0, 1, 1], [], []>} : vector<16x128xbf16>, vector<128x128xbf16>, vector<16x128xf32> -> vector<16x128xf32>
      %c0_105 = arith.constant 0 : index
      %c0_106 = arith.constant 0 : index
      %191 = vector.load %arg15[%c0_105, %c0_106] : memref<1x128xf32, #tpu.memory_space<vmem>>, vector<1x128xf32>
      %192 = vector.broadcast %191 : vector<1x128xf32> to vector<16x128xf32>
      %193 = arith.addf %190, %192 : vector<16x128xf32>
      %194 = vector.extract_strided_slice %193 {offsets = [8, 0], sizes = [8, 128], strides = [1, 1]} : vector<16x128xf32> to vector<8x128xf32>
      %195 = vector.extract_strided_slice %193 {offsets = [0, 0], sizes = [8, 128], strides = [1, 1]} : vector<16x128xf32> to vector<8x128xf32>
      %196 = tpu.concatenate %194, %195 in 0 : vector<8x128xf32>, vector<8x128xf32> -> vector<16x128xf32>
      %197 = arith.truncf %196 : vector<16x128xf32> to vector<16x128xbf16>
      %c0_107 = arith.constant 0 : index
      %c0_108 = arith.constant 0 : index
      %198 = vector.load %arg26[%c0_107, %c0_108] : memref<16x128xbf16, #tpu.memory_space<vmem>>, vector<16x128xbf16>
      tpu.vector_store %arg26[%c0_107, %c0_108], %197 {strides = array<i32>} : memref<16x128xbf16, #tpu.memory_space<vmem>>, vector<16x128xbf16>,
    } else {
    }
    %c0 = arith.constant 0 : index
    %c0_1 = arith.constant 0 : index
    %3 = vector.load %arg26[%c0, %c0_1] : memref<16x128xbf16, #tpu.memory_space<vmem>>, vector<16x128xbf16>
    %c0_2 = arith.constant 0 : index
    %c0_3 = arith.constant 0 : index
    %4 = vector.load %arg16[%c0_2, %c0_3] : memref<128x128xbf16, #tpu.memory_space<vmem>>, vector<128x128xbf16>
    %cst = arith.constant dense<0.000000e+00> : vector<16x128xf32>
    %5 = tpu.matmul %3, %4, %cst {dimension_numbers = #tpu.dot_dimension_numbers<[1], [0], [0], [1], [0, 0, 1, 1], [], []>} : vector<16x128xbf16>, vector<128x128xbf16>, vector<16x128xf32> -> vector<16x128xf32>
    %c0_4 = arith.constant 0 : index
    %c0_5 = arith.constant 0 : index
    %6 = vector.load %arg17[%c0_4, %c0_5] : memref<1x128xf32, #tpu.memory_space<vmem>>, vector<1x128xf32>
    %7 = vector.broadcast %6 : vector<1x128xf32> to vector<16x128xf32>
    %8 = arith.addf %5, %7 : vector<16x128xf32>
    %c0_6 = arith.constant 0 : index
    %c0_7 = arith.constant 0 : index
    %c0_8 = arith.constant 0 : index
    %9 = vector.load %arg24[%c0_6, %c0_7, %c0_8] : memref<1x16x128xf32, #tpu.memory_space<vmem>>, vector<1x16x128xf32>
    %10 = vector.shape_cast %9 : vector<1x16x128xf32> to vector<16x128xf32>
    %11 = vector.shape_cast %8 : vector<16x128xf32> to vector<1x16x128xf32>
    tpu.vector_store %arg24[%c0_6, %c0_7, %c0_8], %11 {strides = array<i32>} : memref<1x16x128xf32, #tpu.memory_space<vmem>>, vector<1x16x128xf32>,
    %cst_9 = arith.constant dense<0.000000e+00> : vector<128xf32>
    %12 = vector.multi_reduction <add>, %8, %cst_9 [0] : vector<16x128xf32> to vector<128xf32>
    %13 = vector.shape_cast %12 : vector<128xf32> to vector<1x128xf32>
    %cst_10 = arith.constant 1.600000e+01 : f32
    %14 = vector.broadcast %cst_10 : f32 to vector<1x128xf32>
    %15 = arith.divf %13, %14 : vector<1x128xf32>
    %c0_11 = arith.constant 0 : index
    %c0_12 = arith.constant 0 : index
    %16 = vector.load %arg30[%c0_11, %c0_12] : memref<1x256xf32, #tpu.memory_space<vmem>>, vector<1x256xf32>
    %17 = arith.truncf %15 : vector<1x128xf32> to vector<1x128xbf16>
    %c0_13 = arith.constant 0 : index
    %c0_14 = arith.constant 0 : index
    %18 = vector.load %arg18[%c0_13, %c0_14] : memref<128x256xbf16, #tpu.memory_space<vmem>>, vector<128x256xbf16>
    %cst_15 = arith.constant dense<0.000000e+00> : vector<1x256xf32>
    %19 = tpu.matmul %17, %18, %cst_15 {dimension_numbers = #tpu.dot_dimension_numbers<[1], [0], [0], [1], [0, 0, 1, 1], [], []>} : vector<1x128xbf16>, vector<128x256xbf16>, vector<1x256xf32> -> vector<1x256xf32>
    %20 = arith.addf %16, %19 : vector<1x256xf32>
    %c0_16 = arith.constant 0 : index
    %c0_17 = arith.constant 0 : index
    %21 = vector.load %arg30[%c0_16, %c0_17] : memref<1x256xf32, #tpu.memory_space<vmem>>, vector<1x256xf32>
    tpu.vector_store %arg30[%c0_16, %c0_17], %20 {strides = array<i32>} : memref<1x256xf32, #tpu.memory_space<vmem>>, vector<1x256xf32>,
    %c1_i32 = arith.constant 1 : i32
    %22 = arith.cmpi eq, %arg1, %c1_i32 : i32
    %23 = arith.extui %22 : i1 to i32
    %c0_i32_18 = arith.constant 0 : i32
    %24 = arith.cmpi ne, %23, %c0_i32_18 : i32
    scf.if %24 {
      %c0_19 = arith.constant 0 : index
      %c0_20 = arith.constant 0 : index
      %25 = vector.load %arg30[%c0_19, %c0_20] : memref<1x256xf32, #tpu.memory_space<vmem>>, vector<1x256xf32>
      %c0_21 = arith.constant 0 : index
      %c0_22 = arith.constant 0 : index
      %26 = vector.load %arg19[%c0_21, %c0_22] : memref<1x256xf32, #tpu.memory_space<vmem>>, vector<1x256xf32>
      %27 = arith.addf %25, %26 : vector<1x256xf32>
      %cst_23 = arith.constant 0.000000e+00 : f32
      %28 = vector.broadcast %cst_23 : f32 to vector<1x256xf32>
      %29 = arith.maximumf %27, %28 : vector<1x256xf32>
      %30 = arith.truncf %29 : vector<1x256xf32> to vector<1x256xbf16>
      %c0_24 = arith.constant 0 : index
      %c0_25 = arith.constant 0 : index
      %31 = vector.load %arg20[%c0_24, %c0_25] : memref<256x64xbf16, #tpu.memory_space<vmem>>, vector<256x64xbf16>
      %cst_26 = arith.constant dense<0.000000e+00> : vector<1x64xf32>
      %32 = tpu.matmul %30, %31, %cst_26 {dimension_numbers = #tpu.dot_dimension_numbers<[1], [0], [0], [1], [0, 0, 1, 1], [], []>} : vector<1x256xbf16>, vector<256x64xbf16>, vector<1x64xf32> -> vector<1x64xf32>
      %c0_27 = arith.constant 0 : index
      %c0_28 = arith.constant 0 : index
      %33 = vector.load %arg21[%c0_27, %c0_28] : memref<1x64xf32, #tpu.memory_space<vmem>>, vector<1x64xf32>
      %34 = arith.addf %32, %33 : vector<1x64xf32>
      %cst_29 = arith.constant 0.000000e+00 : f32
      %35 = vector.broadcast %cst_29 : f32 to vector<1x64xf32>
      %36 = arith.maximumf %34, %35 : vector<1x64xf32>
      %37 = arith.truncf %36 : vector<1x64xf32> to vector<1x64xbf16>
      %c0_30 = arith.constant 0 : index
      %c0_31 = arith.constant 0 : index
      %38 = vector.load %arg22[%c0_30, %c0_31] : memref<64x2xbf16, #tpu.memory_space<vmem>>, vector<64x2xbf16>
      %cst_32 = arith.constant dense<0.000000e+00> : vector<1x2xf32>
      %39 = tpu.matmul %37, %38, %cst_32 {dimension_numbers = #tpu.dot_dimension_numbers<[1], [0], [0], [1], [0, 0, 1, 1], [], []>} : vector<1x64xbf16>, vector<64x2xbf16>, vector<1x2xf32> -> vector<1x2xf32>
      %c0_33 = arith.constant 0 : index
      %c0_34 = arith.constant 0 : index
      %40 = vector.load %arg23[%c0_33, %c0_34] : memref<1x2xf32, #tpu.memory_space<vmem>>, vector<1x2xf32>
      %41 = arith.addf %39, %40 : vector<1x2xf32>
      %cst_35 = arith.constant dense<0xFF800000> : vector<1xf32>
      %42 = vector.multi_reduction <maximumf>, %41, %cst_35 [1] : vector<1x2xf32> to vector<1xf32>
      %cst_36 = arith.constant 0xFF800000 : f32
      %43 = vector.broadcast %cst_36 : f32 to vector<1xf32>
      %44 = arith.maximumf %43, %42 : vector<1xf32>
      %45 = vector.shape_cast %44 : vector<1xf32> to vector<1x1xf32>
      %46 = vector.broadcast %45 : vector<1x1xf32> to vector<1x2xf32>
      %47 = arith.subf %41, %46 : vector<1x2xf32>
      %48 = math.exp %47 : vector<1x2xf32>
      %cst_37 = arith.constant dense<0.000000e+00> : vector<1xf32>
      %49 = vector.multi_reduction <add>, %48, %cst_37 [1] : vector<1x2xf32> to vector<1xf32>
      %50 = vector.shape_cast %49 : vector<1xf32> to vector<1x1xf32>
      %51 = vector.broadcast %50 : vector<1x1xf32> to vector<1x2xf32>
      %52 = arith.divf %48, %51 : vector<1x2xf32>
      %c0_38 = arith.constant 0 : index
      %c0_39 = arith.constant 0 : index
      %c0_40 = arith.constant 0 : index
      %53 = vector.load %arg25[%c0_38, %c0_39, %c0_40] : memref<1x1x2xf32, #tpu.memory_space<vmem>>, vector<1x1x2xf32>
      %54 = vector.shape_cast %53 : vector<1x1x2xf32> to vector<1x2xf32>
      %55 = vector.shape_cast %52 : vector<1x2xf32> to vector<1x1x2xf32>
      tpu.vector_store %arg25[%c0_38, %c0_39, %c0_40], %55 {strides = array<i32>} : memref<1x1x2xf32, #tpu.memory_space<vmem>>, vector<1x1x2xf32>,
    } else {
    }
    return
  }
  func.func @transform_0(%arg0: i32, %arg1: i32) -> (i32, i32, i32) {
    %c0_i32 = arith.constant 0 : i32
    %c0_i32_0 = arith.constant 0 : i32
    %c0_i32_1 = arith.constant 0 : i32
    return %arg0, %c0_i32, %c0_i32_0 : i32, i32, i32
  }
  func.func @transform_1(%arg0: i32, %arg1: i32) -> (i32, i32, i32, i32) {
    %c0_i32 = arith.constant 0 : i32
    %c0_i32_0 = arith.constant 0 : i32
    %c0_i32_1 = arith.constant 0 : i32
    %c0_i32_2 = arith.constant 0 : i32
    return %arg0, %c0_i32, %c0_i32_0, %c0_i32_1 : i32, i32, i32, i32
  }
  func.func @transform_2(%arg0: i32, %arg1: i32) -> (i32, i32, i32) {
    %c0_i32 = arith.constant 0 : i32
    %c0_i32_0 = arith.constant 0 : i32
    %c0_i32_1 = arith.constant 0 : i32
    return %arg0, %c0_i32, %c0_i32_0 : i32, i32, i32
  }
  func.func @transform_3(%arg0: i32, %arg1: i32) -> (i32, i32) {
    %c0_i32 = arith.constant 0 : i32
    %c0_i32_0 = arith.constant 0 : i32
    %c0_i32_1 = arith.constant 0 : i32
    return %c0_i32, %c0_i32_0 : i32, i32
  }
  func.func @transform_4(%arg0: i32, %arg1: i32) -> (i32, i32) {
    %c0_i32 = arith.constant 0 : i32
    %c0_i32_0 = arith.constant 0 : i32
    %c0_i32_1 = arith.constant 0 : i32
    return %c0_i32, %c0_i32_0 : i32, i32
  }
  func.func @transform_5(%arg0: i32, %arg1: i32) -> (i32, i32) {
    %c0_i32 = arith.constant 0 : i32
    %c0_i32_0 = arith.constant 0 : i32
    %c0_i32_1 = arith.constant 0 : i32
    return %c0_i32, %c0_i32_0 : i32, i32
  }
  func.func @transform_6(%arg0: i32, %arg1: i32) -> (i32, i32) {
    %c0_i32 = arith.constant 0 : i32
    %c0_i32_0 = arith.constant 0 : i32
    %c0_i32_1 = arith.constant 0 : i32
    return %c0_i32, %c0_i32_0 : i32, i32
  }
  func.func @transform_7(%arg0: i32, %arg1: i32) -> (i32, i32) {
    %c0_i32 = arith.constant 0 : i32
    %c0_i32_0 = arith.constant 0 : i32
    %c0_i32_1 = arith.constant 0 : i32
    return %c0_i32, %c0_i32_0 : i32, i32
  }
  func.func @transform_8(%arg0: i32, %arg1: i32) -> (i32, i32) {
    %c0_i32 = arith.constant 0 : i32
    %c0_i32_0 = arith.constant 0 : i32
    %c0_i32_1 = arith.constant 0 : i32
    return %c0_i32, %c0_i32_0 : i32, i32
  }
  func.func @transform_9(%arg0: i32, %arg1: i32) -> (i32, i32) {
    %c0_i32 = arith.constant 0 : i32
    %c0_i32_0 = arith.constant 0 : i32
    %c0_i32_1 = arith.constant 0 : i32
    return %c0_i32, %c0_i32_0 : i32, i32
  }
  func.func @transform_10(%arg0: i32, %arg1: i32) -> (i32, i32) {
    %c0_i32 = arith.constant 0 : i32
    %c0_i32_0 = arith.constant 0 : i32
    %c0_i32_1 = arith.constant 0 : i32
    return %c0_i32, %c0_i32_0 : i32, i32
  }
  func.func @transform_11(%arg0: i32, %arg1: i32) -> (i32, i32) {
    %c0_i32 = arith.constant 0 : i32
    %c0_i32_0 = arith.constant 0 : i32
    %c0_i32_1 = arith.constant 0 : i32
    return %c0_i32, %c0_i32_0 : i32, i32
  }
  func.func @transform_12(%arg0: i32, %arg1: i32) -> (i32, i32) {
    %c0_i32 = arith.constant 0 : i32
    %c0_i32_0 = arith.constant 0 : i32
    %c0_i32_1 = arith.constant 0 : i32
    return %c0_i32, %c0_i32_0 : i32, i32
  }
  func.func @transform_13(%arg0: i32, %arg1: i32) -> (i32, i32) {
    %c0_i32 = arith.constant 0 : i32
    %c0_i32_0 = arith.constant 0 : i32
    %c0_i32_1 = arith.constant 0 : i32
    return %c0_i32, %c0_i32_0 : i32, i32
  }
  func.func @transform_14(%arg0: i32, %arg1: i32) -> (i32, i32) {
    %c0_i32 = arith.constant 0 : i32
    %c0_i32_0 = arith.constant 0 : i32
    return %c0_i32, %arg1 : i32, i32
  }
  func.func @transform_15(%arg0: i32, %arg1: i32) -> (i32, i32) {
    %c0_i32 = arith.constant 0 : i32
    %c0_i32_0 = arith.constant 0 : i32
    return %c0_i32, %arg1 : i32, i32
  }
  func.func @transform_16(%arg0: i32, %arg1: i32) -> (i32, i32) {
    %c0_i32 = arith.constant 0 : i32
    %c0_i32_0 = arith.constant 0 : i32
    return %arg1, %c0_i32 : i32, i32
  }
  func.func @transform_17(%arg0: i32, %arg1: i32) -> (i32, i32) {
    %c0_i32 = arith.constant 0 : i32
    %c0_i32_0 = arith.constant 0 : i32
    %c0_i32_1 = arith.constant 0 : i32
    return %c0_i32, %c0_i32_0 : i32, i32
  }
  func.func @transform_18(%arg0: i32, %arg1: i32) -> (i32, i32) {
    %c0_i32 = arith.constant 0 : i32
    %c0_i32_0 = arith.constant 0 : i32
    %c0_i32_1 = arith.constant 0 : i32
    return %c0_i32, %c0_i32_0 : i32, i32
  }
  func.func @transform_19(%arg0: i32, %arg1: i32) -> (i32, i32) {
    %c0_i32 = arith.constant 0 : i32
    %c0_i32_0 = arith.constant 0 : i32
    %c0_i32_1 = arith.constant 0 : i32
    return %c0_i32, %c0_i32_0 : i32, i32
  }
  func.func @transform_20(%arg0: i32, %arg1: i32) -> (i32, i32) {
    %c0_i32 = arith.constant 0 : i32
    %c0_i32_0 = arith.constant 0 : i32
    %c0_i32_1 = arith.constant 0 : i32
    return %c0_i32, %c0_i32_0 : i32, i32
  }
  func.func @transform_21(%arg0: i32, %arg1: i32) -> (i32, i32) {
    %c0_i32 = arith.constant 0 : i32
    %c0_i32_0 = arith.constant 0 : i32
    %c0_i32_1 = arith.constant 0 : i32
    return %c0_i32, %c0_i32_0 : i32, i32
  }
  func.func @transform_22(%arg0: i32, %arg1: i32) -> (i32, i32, i32) {
    %c0_i32 = arith.constant 0 : i32
    %c0_i32_0 = arith.constant 0 : i32
    return %arg0, %c0_i32, %arg1 : i32, i32, i32
  }
  func.func @transform_23(%arg0: i32, %arg1: i32) -> (i32, i32, i32) {
    %c0_i32 = arith.constant 0 : i32
    %c0_i32_0 = arith.constant 0 : i32
    %c0_i32_1 = arith.constant 0 : i32
    return %arg0, %c0_i32, %c0_i32_0 : i32, i32, i32
  }
}

</mosaic_0001>

<bundles_post_ra>
// kernel: ped_vlm_forward.2
= control target key start
LH: loop header
LB: loop body
LE: loop exit
PB: predicated region body
PF: predicated region fallthrough
CT: control target
= control target key end

     0   :  { %s1318_s0 = inlined_call_operand.vmem [shape: f32[12,1024], index: 0, kind: input, shape index: {}]   ;;  %s1319_s1 = inlined_call_operand.vmem [shape: bf16[1024,128], index: 1, kind: input, shape index: {}]   ;;  %s1320_s2 = inlined_call_operand.hbm [shape: bf16[1024,128], index: 2, kind: input, shape index: {}]   ;;  %s1321_s3 = inlined_call_operand.vmem [shape: f32[1,128], index: 3, kind: input, shape index: {}]   ;;  %s1322_s4 = inlined_call_operand.<no memory space> [shape: f32[1,1], index: 4, kind: input, shape index: {}]   ;;  %s1323_s5 = inlined_call_operand.vmem [shape: f32[2,6,128], index: 5, kind: output, shape index: {}]  }
   0x1   :  { %v10_v0 = vstv %s1322_s4 }
   0x2   :  { %11 = vst [vmem:[#allocation4] sm:$0x1] %v10_v0 }
   0x3   :  { %12 = vsyncpa [#allocation7], 0 }
   0x4   :  { %14 = vsyncpa [#allocation7 + $0x1], 0  ;;  %s1149_s20 = smov 0   ;;  %s1151_s21 = smov 0  }
   0x5   :  { %s1153_s22 = smov 0   ;;  %s1155_s23 = smov 0  }
   0x6 LB: > { %s1168_s4 = sadd.s32 4294967295, %s1109_s23   ;;  %s1171_s24 = sadd.s32 1, %s1109_s23   ;;  %s1109_s23 = sphi %s1155_s23, %s1329_s23   ;;  %s1105_s22 = sphi %s1153_s22, %s1328_s22   ;;  %s1101_s21 = sphi %s1151_s21, %s1327_s21   ;;  %s1097_s20 = sphi %s1149_s20, %s1326_s20  }
   0x7   : > { %s24_s25 = ssub.s32 %s1109_s23, %s1171_s24  ;;  %s27_s26 = sadd.s32 1, %s1105_s22 }
   0x8   : > { %p25_p0 = scmp.eq.s32.totalorder %s24_s25, 0  ;;  %p34_p1 = scmp.ne.s32.totalorder %s1105_s22, %s1101_s21 }
   0x9   : > { %p35_p2 = scmp.eq.s32.totalorder %s1109_s23, 0  ;;  %p92_p3 = scmp.ne.s32.totalorder %s1101_s21, %s1097_s20 }
   0xa   : > { %s1181_s27 = scalar_select %p25_p0, %s1105_s22, %s27_s26  }
   0xb   : > { %p1183_p4 = por %p35_p2, %p34_p1  ;;  %p93_p5 = scmp.eq.s32.totalorder %s1168_s4, 0 }
   0xc   : > { %p853_p7 = scmp.ge.s32.totalorder %s1109_s23, 4 }
   0xd   : > { %p1188_p6 = por %p93_p5, %p92_p3 }
   0xe   : > { %181 = sbr.rel (%p853_p7) target bundleno = 54 (0x36), region = 24 }
  0x15   : > { %184 = sbr.rel (!%p1183_p4) target bundleno = 28 (0x1c), region = 28  ;;  %s186_s30 = sand.u32 (%p1183_p4), 1, %s1105_s22  }
  0x16   : > { %s907_s6 = sshll.u32 (%p1183_p4), %s1109_s23, 4  ;;  %s854_s7 = sshll.u32 (%p1183_p4), %s186_s30, 5 }
  0x17   : > { %s191_s10 = scalar_lea.vmem (%p1183_p4), %s1318_s0, %s907_s6  ;;  %s188_s11 = scalar_lea.vmem (%p1183_p4), [#allocation5], %s854_s7 }
  0x18   : > { %v204_v1 = vld [vmem:[%s191_s10] sm:$0xff] (%p1183_p4)  ;;  %v206_v2 = vld [vmem:[%s191_s10 + $0x8] sm:$0xff] (%p1183_p4) }
  0x19   : > { %v208_v3 = vld [vmem:[%s191_s10 + $0x40] sm:$0xff] (%p1183_p4)  ;;  %205 = vst [vmem:[%s188_s11] sm:$0xff] (%p1183_p4), %v204_v1  ;;  %207 = vst [vmem:[%s188_s11 + $0x8] sm:$0xff] (%p1183_p4), %v206_v2  ;;  %v210_v4 = vld [vmem:[%s191_s10 + $0x48] sm:$0xff] (%p1183_p4) }
  0x1a   : > { %209 = vst [vmem:[%s188_s11 + $0x10] sm:$0xff] (%p1183_p4), %v208_v3  ;;  %211 = vst [vmem:[%s188_s11 + $0x18] sm:$0xff] (%p1183_p4), %v210_v4 }
  0x1c PF: > { %s227_s12 = sand.u32 1, %s1105_s22   ;;  %s908_s13 = sshll.u32 %s1109_s23, 11 }
  0x1d   : > { %s857_s14 = sshll.u32 %s227_s12, 7  ;;  %s1205_s17 = scalar_lea.hbm %s1320_s2, %s908_s13 }
  0x1e   : > { %s231_s18 = scalar_lea.vmem [#allocation6], %s857_s14  ;;  %s1209_s20 = scalar_lea.sflag [#allocation7], %s227_s12 }
  0x1f   : > { %s238_s19 = sshll.u32 %s231_s18, 4  ;;  %s1047_s25 = scalar_lea.hbm %s1205_s17, 2048  ;;  %s1207_s19 = int_to_ptr.vmem [resolvable:$true] %s238_s19 }
  0x20   : > { %p1048_p8 = scmp.ne.s32.totalorder %s1205_s17, %s1047_s25  ;;  %s1051_s6 = scalar_lea.hbm %s1320_s2, 8192 }
  0x21   : > { %p1052_p11 = scmp.lt.u32.totalorder %s1205_s17, %s1320_s2  ;;  %p1053_p12 = scmp.lt.u32.totalorder %s1051_s6, %s1047_s25 }
  0x22   : > { %p1049_p9 = pnand %p1048_p8, %p1183_p4  ;;  %p1055_p0 = scmp.lt.u32.totalorder %s1047_s25, %s1205_s17 }
  0x23   : > { %p1054_p13 = por %p1053_p12, %p1052_p11 }
  0x24   : > { %p1050_p10 = pneg %p1049_p9 }
  0x25   : > { %p1056_p1 = por %p1055_p0, %p1054_p13 }
  0x27   : > { %p1057_p2 = pnand %p1056_p1, %p1050_p10 }
  0x29   : > { %1060 = shalt.err (!%p1057_p2)
}
  0x2a   : > { %s1061_s9 = scalar_lea.vmem %s1207_s19, 2048  ;;  %s1111_s10 = smov [#allocation6]  }
  0x2b   : > { %p1062_p3 = scmp.ne.s32.totalorder %s1207_s19, %s1061_s9  ;;  %s1065_s11 = sshll.u32 %s1111_s10, 4  ;;  %s1066_s11 = int_to_ptr.vmem [resolvable:$false] %s1065_s11 }
  0x2c   : > { %s1067_s12 = scalar_lea.vmem %s1066_s11, 4096  ;;  %p1068_p8 = scmp.lt.s32.totalorder %s1207_s19, %s1066_s11 }
  0x2d   : > { %p1063_p5 = pnand %p1062_p3, %p1183_p4  ;;  %p1069_p9 = scmp.lt.s32.totalorder %s1067_s12, %s1061_s9 }
  0x2f   : > { %p1064_p7 = pneg %p1063_p5  ;;  %p1070_p11 = por %p1069_p9, %p1068_p8 }
  0x31   : > { %p1071_p12 = pnand %p1070_p11, %p1064_p7 }
  0x33   : > { %1074 = shalt.err (!%p1071_p12)
}
  0x34   : > { %s1112_s13 = smov 64   ;;  %s1113_s14 = smov 4  }
  0x35   : > { %953 = dma.hbm_to_vmem [thread:$0]  (%p1183_p4), %s1205_s17, 2048, %s1207_s19, %s1209_s20, %s1112_s13, %s1112_s13, %s1113_s14  }
  0x36 PF: > { %p860_p10 = scmp.ge.s32.totalorder %s1109_s23, 1  ;;  %p246_p13 = scmp.lt.s32.totalorder %s1109_s23, 5 }
  0x38   : > { %p247_p0 = pnand %p860_p10, %p246_p13 }
  0x39   : > { %s253_s15 = sand.u32 (!%p247_p0), 1, %s1101_s21  }
  0x3a   : > { %250 = sbr.rel (%p247_p0) target bundleno = 702 (0x2be), region = 59  ;;  %s861_s16 = sshll.u32 (!%p247_p0), %s253_s15, 5 }
  0x3b   : > { %s862_s18 = sshll.u32 (!%p247_p0), %s253_s15, 7  ;;  %s1236_s25 = scalar_lea.vmem (!%p247_p0), [#allocation5], %s861_s16 }
  0x3c   : > { %s260_s26 = scalar_lea.sflag (!%p247_p0), [#allocation7], %s253_s15  ;;  %s1238_s30 = scalar_lea.vmem (!%p247_p0), [#allocation6], %s862_s18 }
  0x41   : > { %1092 = dma.done.wait (%p1188_p6), %s260_s26, 2048  }
  0x42   : > { %1094 = vsyncadd (%p1188_p6), %s260_s26, 4294965248  ;;  %s863_s28 = sshll.u32 %s1168_s4, 5  ;;  %p865_p1 = scmp.ne.s32.totalorder %s1168_s4, 0 }
  0x43   : > { %p296_p4 = scmp.lt.s32.totalorder %s863_s28, 127  ;;  %v1114_v5 = vmov (!%p865_p1), 0.0  }
  0x44   : > { %306 = sbr.rel (%p865_p1) target bundleno = 75 (0x4b), region = 71  ;;  %307 = vst [vmem:[#allocation2] sm:$0xff] (!%p865_p1), %v1114_v5  ;;  %308 = vst [vmem:[#allocation2 + $0x8] sm:$0xf] (!%p865_p1), %v1114_v5 }
  0x45   : > { %s1331_s28 = smov (!%p296_p4, %s863_s28), 127  ;;  %309 = vst [vmem:[#allocation3] sm:$0xff] (!%p865_p1), %v1114_v5  ;;  %310 = vst [vmem:[#allocation3 + $0x8] sm:$0xf] (!%p865_p1), %v1114_v5 }
  0x46   : > { %s864_s23 = sshll.u32 %s1331_s28, 2 }
  0x47   : > { %s1248_s20 = scalar_lea.vmem %s1319_s1, %s864_s23 }
  0x4b PF: > { %v991_v6 = vld [vmem:[%s1248_s20 + $0x40] sm:$0xff]   ;;  %v995_v10 = vld [vmem:[%s1248_s20 + $0x48] sm:$0xff]   ;;  %v999_v14 = vld [vmem:[%s1248_s20 + $0x50] sm:$0xff]   ;;  %p898_p6 = scmp.ne.s32.totalorder %s1168_s4, 3 }
  0x4c   : > { %v992_v7 = vld [vmem:[%s1238_s30 + $0x40] sm:$0xff]   ;;  %909 = vmatprep.subr.bf16.mxu0 %v991_v6  ;;  %v996_v11 = vld [vmem:[%s1238_s30 + $0x48] sm:$0xff]   ;;  %v1000_v15 = vld [vmem:[%s1238_s30 + $0x50] sm:$0xff]   ;;  %vm702_vm0 = vcmask (!%p898_p6), 1043456   ;;  %vm720_vm1 = vcmask (!%p898_p6), 1045504   ;;  %vm746_vm2 = vcmask (!%p898_p6), 1047558  }
  0x4d   : > { %v993_v8 = vld [vmem:[%s1248_s20] sm:$0xff]   ;;  %931 = vmatprep.subr.bf16.mxu1 %v992_v7  ;;  %v997_v12 = vld [vmem:[%s1248_s20 + $0x8] sm:$0xff]   ;;  %v1001_v16 = vld [vmem:[%s1248_s20 + $0x10] sm:$0xff]   ;;  %vm764_vm3 = vcmask (!%p898_p6), 1041408  }
  0x4e   : > { %v994_v9 = vld [vmem:[%s1238_s30] sm:$0xff]   ;;  %910 = vmatpush3.bf16.msra.mxu0 %v993_v8  ;;  %v998_v13 = vld [vmem:[%s1238_s30 + $0x8] sm:$0xff]   ;;  %v1002_v17 = vld [vmem:[%s1238_s30 + $0x10] sm:$0xff]  }
  0x4f   : > { %932 = vmatpush3.bf16.msra.mxu1 %v994_v9  ;;  %911 = vmatprep.subr.bf16.mxu0 %v995_v10  ;;  %v1003_v18 = vld [vmem:[%s1248_s20 + $0x58] sm:$0xff]   ;;  %v1007_v22 = vld [vmem:[%s1248_s20 + $0x60] sm:$0xff]   ;;  %v1011_v26 = vld [vmem:[%s1248_s20 + $0x68] sm:$0xff]  }
  0x50   : > { %933 = vmatprep.subr.bf16.mxu1 %v996_v11  ;;  %v1004_v19 = vld [vmem:[%s1238_s30 + $0x58] sm:$0xff]   ;;  %v1008_v23 = vld [vmem:[%s1238_s30 + $0x60] sm:$0xff]   ;;  %v1012_v27 = vld [vmem:[%s1238_s30 + $0x68] sm:$0xff]  }
  0x51   : > { %v1005_v20 = vld [vmem:[%s1248_s20 + $0x18] sm:$0xff]   ;;  %v1009_v24 = vld [vmem:[%s1248_s20 + $0x20] sm:$0xff]   ;;  %v1013_v28 = vld [vmem:[%s1248_s20 + $0x28] sm:$0xff]  }
  0x52   : > { %912 = vmatpush3.bf16.msra.mxu0 %v997_v12  ;;  %v1006_v21 = vld [vmem:[%s1238_s30 + $0x18] sm:$0xff]   ;;  %v1010_v25 = vld [vmem:[%s1238_s30 + $0x20] sm:$0xff]   ;;  %v1014_v29 = vld [vmem:[%s1238_s30 + $0x28] sm:$0xff]  }
  0x53   : > { %934 = vmatpush3.bf16.msra.mxu1 %v998_v13  ;;  %913 = vmatprep.subr.bf16.mxu0 %v999_v14  ;;  %v1015_v30 = vld [vmem:[%s1248_s20 + $0x70] sm:$0xff]   ;;  %v1019_v34 = vld [vmem:[%s1248_s20 + $0x78] sm:$0xff]   ;;  %v311_v40 = vld [vmem:[%s1236_s25] sm:$0xff] }
  0x54   : > { %935 = vmatprep.subr.bf16.mxu1 %v1000_v15  ;;  %v1016_v31 = vld [vmem:[%s1238_s30 + $0x70] sm:$0xff]   ;;  %v1020_v35 = vld [vmem:[%s1238_s30 + $0x78] sm:$0xff]   ;;  %v312_v38 = vld [vmem:[%s1236_s25 + $0x8] sm:$0xff] }
  0x55   : > { %v1017_v32 = vld [vmem:[%s1248_s20 + $0x30] sm:$0xff]   ;;  %v1021_v36 = vld [vmem:[%s1248_s20 + $0x38] sm:$0xff]   ;;  %v317_v46 = vld [vmem:[#allocation2] sm:$0xff] }
  0x56   : > { %914 = vmatpush3.bf16.msra.mxu0 %v1001_v16  ;;  %v1018_v33 = vld [vmem:[%s1238_s30 + $0x30] sm:$0xff]   ;;  %v1022_v37 = vld [vmem:[%s1238_s30 + $0x38] sm:$0xff]   ;;  %v318_v54 = vld [vmem:[#allocation2 + $0x8] sm:$0xf] }
  0x57   : > { %936 = vmatpush3.bf16.msra.mxu1 %v1002_v17  ;;  %915 = vmatprep.subr.bf16.mxu0 %v1003_v18  ;;  %v314_v39 = vld [vmem:[%s1236_s25 + $0x18] sm:$0xf]  ;;  %v313_v42 = vld [vmem:[%s1236_s25 + $0x10] sm:$0xf]  ;;  %v901_v13 = vld [vmem:[%s1321_s3] ss:$0 sm:$0xff] (!%p898_p6) }
  0x58   : > { %937 = vmatprep.subr.bf16.mxu1 %v1004_v19  ;;  %v316_v41 = vpack.c.bf16 %v314_v39, %v312_v38  ;;  %v315_v43 = vpack.c.bf16 %v313_v42, %v311_v40  ;;  %v492_v48 = vld [vmem:[#allocation3] sm:$0xff]  ;;  %v493_v56 = vld [vmem:[#allocation3 + $0x8] sm:$0xf] }
  0x5a   : > { %916 = vmatpush3.bf16.msra.mxu0 %v1005_v20  ;;  %479 = vmatprep.mubr.bf16.mxu0 %v316_v41  ;;  %v1115_v20 = vmov (!%p898_p6), 0  }
  0x5b   : > { %938 = vmatpush3.bf16.msra.mxu1 %v1006_v21  ;;  %917 = vmatprep.subr.bf16.mxu0 %v1007_v22  ;;  %v902_v21 = vld [vmem:[#allocation4] ss:$0 sm:$0xff] (!%p898_p6) }
  0x5c   : > { %939 = vmatprep.subr.bf16.mxu1 %v1008_v23  ;;  %654 = vmatprep.mubr.bf16.mxu1 %v316_v41 }
  0x5d   : > { %1023 = vset.pattern.permute.xlu1 (!%p898_p6), %v1115_v20  ;;  %1024 = vset.pattern.permute.xlu0 (!%p898_p6), %v1115_v20 }
  0x5e   : > { %918 = vmatpush3.bf16.msra.mxu0 %v1009_v24 }
  0x5f   : > { %940 = vmatpush3.bf16.msra.mxu1 %v1010_v25  ;;  %919 = vmatprep.subr.bf16.mxu0 %v1011_v26 }
  0x60   : > { %941 = vmatprep.subr.bf16.mxu1 %v1012_v27 }
  0x62   : > { %920 = vmatpush3.bf16.msra.mxu0 %v1013_v28 }
  0x63   : > { %942 = vmatpush3.bf16.msra.mxu1 %v1014_v29  ;;  %921 = vmatprep.subr.bf16.mxu0 %v1015_v30 }
  0x64   : > { %943 = vmatprep.subr.bf16.mxu1 %v1016_v31 }
  0x66   : > { %922 = vmatpush3.bf16.msra.mxu0 %v1017_v32 }
  0x67   : > { %944 = vmatpush3.bf16.msra.mxu1 %v1018_v33  ;;  %923 = vmatprep.subr.bf16.mxu0 %v1019_v34 }
  0x68   : > { %945 = vmatprep.subr.bf16.mxu1 %v1020_v35 }
  0x6a   : > { %924 = vmatpush3.bf16.msra.mxu0 %v1021_v36 }
  0x6b   : > { %946 = vmatpush3.bf16.msra.mxu1 %v1022_v37 }
  0x6d   : > { %480 = vmatmul.mubr.bf16.vlgmr.msra.gmra.mrb[0].mxu0 %v315_v43 }
  0x6e   : > { %655 = vmatmul.mubr.bf16.vlgmr.msra.gmra.mrb[0].mxu1 %v315_v43 }
 0x140   : > { %v925_v44 = vpop.f32.mrb[0].mxu0 }
 0x141   : > { %v947_v45 = vpop.f32.mrb[0].mxu1  ;;  %v926_v47 = vpop.f32.mrb[1].mxu0 }
 0x142   : > { %v948_v49 = vpop.f32.mrb[1].mxu1  ;;  %v927_v50 = vadd.f32 %v926_v47, %v925_v44  ;;  %v928_v52 = vpop.f32.mrb[2].mxu0 }
 0x143   : > { %v949_v51 = vadd.f32 %v948_v49, %v947_v45  ;;  %v950_v53 = vpop.f32.mrb[2].mxu1  ;;  %v929_v55 = vpop.f32.mrb[3].mxu0  ;;  %670 = sbr.rel (%p898_p6) target bundleno = 702 (0x2be), region = 75 }
 0x144   : > { %v951_v57 = vpop.f32.mrb[3].mxu1  ;;  %v488_v58 = vadd.f32 %v927_v50, %v317_v46  ;;  %v930_v60 = vadd.f32 %v929_v55, %v928_v52 }
 0x145   : > { %v663_v59 = vadd.f32 %v949_v51, %v492_v48  ;;  %v952_v61 = vadd.f32 %v951_v57, %v950_v53 }
 0x146   : > { %490 = vst [vmem:[#allocation2] sm:$0xff] %v488_v58  ;;  %v489_v62 = vadd.f32 %v930_v60, %v318_v54 }
 0x147   : > { %665 = vst [vmem:[#allocation3] sm:$0xff] %v663_v59  ;;  %v664_v63 = vadd.f32 %v952_v61, %v493_v56 }
 0x148   : > { %491 = vst [vmem:[#allocation2 + $0x8] sm:$0xf] %v489_v62 }
 0x149   : > { %666 = vst [vmem:[#allocation3 + $0x8] sm:$0xf] %v664_v63 }
 0x14d   : > { %v671_v4 = vld [vmem:[#allocation2] sm:$0xff] }
 0x14e   : > { %v675_v0 = vld [vmem:[#allocation3] sm:$0xff] }
 0x14f   : > { %v899_v2 = vmul.f32 -1.442695, %v675_v0  ;;  %v672_v5 = vld [vmem:[#allocation2 + $0x8] sm:$0xf] }
 0x150   : > { %v676_v1 = vld [vmem:[#allocation3 + $0x8] sm:$0xf] }
 0x151   : > { %v900_v3 = vmul.f32 -1.442695, %v676_v1  ;;  %1025 = vpow2.f32 %v899_v2 }
 0x153   : > { %1027 = vpow2.f32 %v900_v3 }
 0x154   : > { %1029 = vtanh.f32 %v671_v4 }
 0x155   : > { %1031 = vtanh.f32 %v672_v5 }
 0x15b   : > { %v1026_v6 = vpop.eup %1025 }
 0x15c   : > { %v683_v8 = vadd.f32 1.0, %v1026_v6 }
 0x15d   : > { %v1028_v7 = vpop.eup %1027 }
 0x15e   : > { %v684_v9 = vadd.f32 1.0, %v1028_v7  ;;  %1033 = vrcp.f32 %v683_v8  ;;  %v1030_v10 = vpop.eup %1029 }
 0x15f   : > { %v1032_v11 = vpop.eup %1031 }
 0x160   : > { %1035 = vrcp.f32 %v684_v9 }
 0x168   : > { %v1034_v12 = vpop.eup %1033 }
 0x169   : > { %v689_v15 = vmul.f32 %v1034_v12, %v1030_v10 }
 0x16a   : > { %v1036_v14 = vpop.eup %1035 }
 0x16b   : > { %v690_v16 = vmul.f32 %v1036_v14, %v1032_v11  ;;  %v698_v17 = vmul.f32 %v901_v13, %v689_v15 }
 0x16d   : > { %v699_v18 = vmul.f32 %v901_v13, %v690_v16  ;;  %700 = vadd.xlane.f32.xlu0 %v698_v17 }
 0x16f   : > { %v703_v19 = vsel %vm702_vm0, %v699_v18, 0.0 }
 0x171   : > { %704 = vadd.xlane.f32.xlu0 %v703_v19 }
 0x1fa   : > { %v701_v22 = vpop.xlane.xlu0 %700 }
 0x1fb   : > { %v713_v23 = vadd.f32 %v902_v21, %v701_v22 }
 0x1fd   : > { %717 = vperm.xlu1 %1023, %v713_v23  }
 0x1fe   : > { %v705_v24 = vpop.xlane.xlu0 %704 }
 0x1ff   : > { %v714_v25 = vadd.f32 %v902_v21, %v705_v24 }
 0x201   : > { %743 = vperm.xlu1 %1023, %v714_v25  }
 0x27c   : > { %v718_v26 = vpop.permute.xlu1 %717 }
 0x27d   : > { %v721_v27 = vsel %vm720_vm1, %v718_v26, -inf  ;;  %v747_v31 = vsel %vm746_vm2, %v718_v26, -inf }
 0x27e   : > { %v722_v28 = vrot.slane %v721_v27, 4 }
 0x280   : > { %v723_v29 = vmax.f32 %v721_v27, %v722_v28  ;;  %v744_v30 = vpop.permute.xlu1 %743 }
 0x281   : > { %v748_v32 = vsel %vm702_vm0, %v744_v30, -inf }
 0x282   : > { %v724_v33 = vrot.slane %v723_v29, 2  ;;  %v749_v34 = vmax.f32 %v747_v31, %v748_v32 }
 0x284   : > { %v725_v35 = vmax.f32 %v723_v29, %v724_v33  ;;  %v750_v36 = vrot.slane %v749_v34, 4 }
 0x286   : > { %v726_v37 = vrot.slane %v725_v35, 1  ;;  %v751_v38 = vmax.f32 %v749_v34, %v750_v36 }
 0x288   : > { %v727_v39 = vmax.f32 %v725_v35, %v726_v37  ;;  %v752_v40 = vrot.slane %v751_v38, 2 }
 0x28a   : > { %v728_v41 = vsub.f32 %v718_v26, %v727_v39  ;;  %v753_v42 = vmax.f32 %v751_v38, %v752_v40 }
 0x28c   : > { %v729_v43 = vmul.f32 1.442695, %v728_v41  ;;  %v754_v44 = vrot.slane %v753_v42, 1 }
 0x28e   : > { %1037 = vpow2.f32 %v729_v43  ;;  %v755_v45 = vmax.f32 %v753_v42, %v754_v44 }
 0x290   : > { %v756_v46 = vsub.f32 %v718_v26, %v755_v45  ;;  %v757_v47 = vsub.f32 %v744_v30, %v755_v45 }
 0x292   : > { %v758_v48 = vmul.f32 1.442695, %v756_v46  ;;  %v760_v49 = vmul.f32 1.442695, %v757_v47 }
 0x294   : > { %1039 = vpow2.f32 %v758_v48 }
 0x295   : > { %1041 = vpow2.f32 %v760_v49 }
 0x298   : > { %v1038_v50 = vpop.eup %1037 }
 0x299   : > { %v731_v51 = vsel %vm720_vm1, %v1038_v50, 0.0 }
 0x29a   : > { %v732_v52 = vrot.slane %v731_v51, 4 }
 0x29c   : > { %v733_v53 = vadd.f32 %v732_v52, %v731_v51 }
 0x29e   : > { %v1040_v54 = vpop.eup %1039  ;;  %v734_v55 = vrot.slane %v733_v53, 2 }
 0x29f   : > { %v1042_v56 = vpop.eup %1041  ;;  %v765_v57 = vrot.slane %v1040_v54, 6 }
 0x2a0   : > { %v735_v58 = vadd.f32 %v734_v55, %v733_v53  ;;  %v766_v59 = vrot.slane %v1042_v56, 6 }
 0x2a2   : > { %v736_v60 = vrot.slane %v735_v58, 1  ;;  %v767_v61 = vsel %vm764_vm3, %v765_v57, %v766_v59 }
 0x2a3   : > { %v769_v62 = vsel %vm720_vm1, %v767_v61, 0.0 }
 0x2a4   : > { %v737_v63 = vadd.f32 %v736_v60, %v735_v58  ;;  %v770_v0 = vrot.slane %v769_v62, 4 }
 0x2a6   : > { %1043 = vrcp.f32 %v737_v63  ;;  %v771_v1 = vadd.f32 %v770_v0, %v769_v62 }
 0x2a8   : > { %v772_v2 = vrot.slane %v771_v1, 2 }
 0x2aa   : > { %v773_v3 = vadd.f32 %v772_v2, %v771_v1 }
 0x2ac   : > { %v774_v4 = vrot.slane %v773_v3, 1 }
 0x2ae   : > { %v775_v5 = vadd.f32 %v774_v4, %v773_v3 }
 0x2b0   : > { %v1044_v6 = vpop.eup %1043  ;;  %1045 = vrcp.f32 %v775_v5 }
 0x2b1   : > { %v739_v7 = vmul.f32 %v1044_v6, %v1038_v50 }
 0x2b3   : > { %740 = vst [vmem:[%s1323_s5] sm:$0x3f] %v739_v7 }
 0x2ba   : > { %v1046_v8 = vpop.eup %1045 }
 0x2bb   : > { %v777_v9 = vmul.f32 %v1046_v8, %v1040_v54  ;;  %v778_v10 = vmul.f32 %v1046_v8, %v1042_v56 }
 0x2bd   : > { %903 = vst [vmem:[%s1323_s5 + $0x2] sm:$0xc0] %v777_v9  ;;  %904 = vst [vmem:[%s1323_s5 + $0xa] sm:$0xf] %v778_v10 }
 0x2be PF: > { %p17_p2 = scmp.ge.s32.totalorder %s1171_s24, 6   ;;  %s1326_s20 = smov %s1101_s21 }
 0x2bf   : > { %s1327_s21 = smov %s1105_s22  ;;  %s1328_s22 = smov %s1181_s27 }
 0x2c0   : > { %s1329_s23 = smov %s1171_s24  ;;  %19 = sbr.rel (!%p17_p2) target bundleno = 6 (0x6), region = 119 }
 0x2c7   :  { %793 = vsyncpa [#allocation7], 1 }
 0x2c8   :  { %795 = vsyncpa [#allocation7 + $0x1], 1 }

// kernel: ped_vlm_forward.3
= control target key start
LH: loop header
LB: loop body
LE: loop exit
PB: predicated region body
PF: predicated region fallthrough
CT: control target
= control target key end

     0   :  { %s4837_s0 = inlined_call_operand.vmem [shape: f32[2,6,128], index: 0, kind: input, shape index: {}]   ;;  %s4838_s1 = inlined_call_operand.vmem [shape: f32[2,6,8,128], index: 1, kind: input, shape index: {}]   ;;  %s4839_s2 = inlined_call_operand.vmem [shape: f32[2,8,128], index: 2, kind: input, shape index: {}]   ;;  %s4840_s3 = inlined_call_operand.vmem [shape: f32[2,128], index: 3, kind: input, shape index: {}]   ;;  %s4841_s4 = inlined_call_operand.vmem [shape: bf16[128,128], index: 4, kind: input, shape index: {}]   ;;  %s4842_s5 = inlined_call_operand.vmem [shape: f32[1,128], index: 5, kind: input, shape index: {}]   ;;  %s4843_s6 = inlined_call_operand.vmem [shape: bf16[128,128], index: 6, kind: input, shape index: {}]   ;;  %s4844_s7 = inlined_call_operand.vmem [shape: f32[1,128], index: 7, kind: input, shape index: {}]   ;;  %s4845_s8 = inlined_call_operand.vmem [shape: bf16[128,384], index: 8, kind: input, shape index: {}]   ;;  %s4846_s9 = inlined_call_operand.vmem [shape: f32[1,384], index: 9, kind: input, shape index: {}]   ;;  %s4847_s10 = inlined_call_operand.vmem [shape: bf16[128,128], index: 10, kind: input, shape index: {}]   ;;  %s4848_s11 = inlined_call_operand.vmem [shape: f32[1,128], index: 11, kind: input, shape index: {}]   ;;  %s4849_s12 = inlined_call_operand.vmem [shape: bf16[128,128], index: 12, kind: input, shape index: {}]   ;;  %s4850_s13 = inlined_call_operand.vmem [shape: f32[1,128], index: 13, kind: input, shape index: {}]   ;;  %s4851_s14 = inlined_call_operand.vmem [shape: bf16[128,256], index: 14, kind: input, shape index: {}]   ;;  %s4852_s15 = inlined_call_operand.vmem [shape: f32[1,256], index: 15, kind: input, shape index: {}]   ;;  %s4853_s16 = inlined_call_operand.vmem [shape: bf16[256,256], index: 16, kind: input, shape index: {}]   ;;  %s4854_s17 = inlined_call_operand.vmem [shape: f32[1,256], index: 17, kind: input, shape index: {}]   ;;  %s4855_s18 = inlined_call_operand.vmem [shape: bf16[256,64], index: 18, kind: input, shape index: {}]   ;;  %s4856_s19 = inlined_call_operand.vmem [shape: f32[1,64], index: 19, kind: input, shape index: {}]   ;;  %s4857_s20 = inlined_call_operand.vmem [shape: bf16[64,2], index: 20, kind: input, shape index: {}]   ;;  %s4858_s21 = inlined_call_operand.vmem [shape: f32[1,2], index: 21, kind: input, shape index: {}]   ;;  %s4859_s22 = inlined_call_operand.hbm [shape: f32[2,16,256], index: 22, kind: output, shape index: {0}]   ;;  %s4860_s23 = inlined_call_operand.hbm [shape: f32[2,1,2], index: 23, kind: output, shape index: {1}]  }
   0x1   :  { %4887 = sst [smem:[#allocation30_spill]] %s4837_s0 }
   0x2   :  { %4888 = sst [smem:[#allocation31_spill]] %s4838_s1 }
   0x3   :  { %4889 = sst [smem:[#allocation32_spill]] %s4839_s2 }
   0x4   :  { %4890 = sst [smem:[#allocation33_spill]] %s4840_s3 }
   0x5   :  { %4891 = sst [smem:[#allocation34_spill]] %s4841_s4 }
   0x6   :  { %4892 = sst [smem:[#allocation35_spill]] %s4842_s5 }
   0x7   :  { %4893 = sst [smem:[#allocation36_spill]] %s4843_s6 }
   0x8   :  { %4894 = sst [smem:[#allocation37_spill]] %s4844_s7 }
   0x9   :  { %4895 = sst [smem:[#allocation38_spill]] %s4845_s8 }
   0xa   :  { %4896 = sst [smem:[#allocation39_spill]] %s4846_s9 }
   0xb   :  { %4897 = sst [smem:[#allocation40_spill]] %s4847_s10 }
   0xc   :  { %4898 = sst [smem:[#allocation41_spill]] %s4848_s11 }
   0xd   :  { %4899 = sst [smem:[#allocation42_spill]] %s4849_s12 }
   0xe   :  { %4900 = sst [smem:[#allocation43_spill]] %s4850_s13 }
   0xf   :  { %4901 = sst [smem:[#allocation44_spill]] %s4851_s14 }
  0x10   :  { %4902 = sst [smem:[#allocation45_spill]] %s4854_s17 }
  0x11   :  { %4903 = sst [smem:[#allocation46_spill]] %s4855_s18 }
  0x12   :  { %4904 = sst [smem:[#allocation47_spill]] %s4856_s19 }
  0x13   :  { %4905 = sst [smem:[#allocation48_spill]] %s4857_s20 }
  0x14   :  { %4906 = sst [smem:[#allocation49_spill]] %s4858_s21 }
  0x15   :  { %4907 = sst [smem:[#allocation50_spill]] %s4859_s22 }
  0x16   :  { %4908 = sst [smem:[#allocation51_spill]] %s4860_s23 }
  0x17   :  { %29 = vsyncpa [#allocation9], 0 }
  0x18   :  { %31 = vsyncpa [#allocation9 + $0x1], 0 }
  0x19   :  { %32 = vsyncpa [#allocation11], 0 }
  0x1a   :  { %34 = vsyncpa [#allocation11 + $0x1], 0  ;;  %s4055_s4 = smov 0   ;;  %s4057_s30 = smov 0  }
  0x1b   :  { %s4059_s24 = smov 0   ;;  %s4061_s25 = smov 0  }
  0x1c   :  { %s4063_s5 = smov 0   ;;  %s4065_s1 = smov 0  }
  0x1d   :  { %s4067_s26 = smov 0   ;;  %s4069_s2 = smov 0  }
  0x1e   :  { %s4071_s6 = smov 0   ;;  %s4073_s27 = smov 0  }
  0x1f   :  { %s4075_s7 = smov 0   ;;  %s4077_s28 = smov 0  }
  0x20   :  { %s4079_s29 = smov 0  }
  0x21 LB: > { %4909 = sst [smem:[#allocation14_spill]] %s3868_s4  ;;  %s3036_s3 = sadd.s32 4294967295, %s3916_s29   ;;  %s3916_s29 = sphi %s4079_s29, %s40_s29   ;;  %s3912_s28 = sphi %s4077_s28, %s4977_s28   ;;  %s3908_s7 = sphi %s4075_s7, %s4976_s7   ;;  %s3904_s27 = sphi %s4073_s27, %s4975_s27   ;;  %s3900_s6 = sphi %s4071_s6, %s4974_s6   ;;  %s3896_s2 = sphi %s4069_s2, %s4973_s2   ;;  %s3892_s26 = sphi %s4067_s26, %s4972_s26   ;;  %s3888_s1 = sphi %s4065_s1, %s4982_s1   ;;  %s3884_s5 = sphi %s4063_s5, %s4981_s5   ;;  %s3880_s25 = sphi %s4061_s25, %s4980_s25   ;;  %s3876_s24 = sphi %s4059_s24, %s4969_s24   ;;  %s3872_s30 = sphi %s4057_s30, %s4979_s30   ;;  %s3868_s4 = sphi %s4055_s4, %s4978_s4  }
  0x22   : > { %4910 = sst [smem:[#allocation15_spill]] %s3876_s24  ;;  %s3037_s0 = sadd.s32 4294967294, %s3916_s29  }
  0x23   : > { %4911 = sst [smem:[#allocation16_spill]] %s3880_s25  ;;  %s49_s23 = sadd.s32 1, %s3908_s7 }
  0x24   : > { %4912 = sst [smem:[#allocation17_spill]] %s3888_s1  ;;  %s52_s22 = sadd.s32 1, %s3912_s28 }
  0x25   : > { %4913 = sst [smem:[#allocation18_spill]] %s3896_s2  ;;  %p50_p0 = scmp.ge.s32.totalorder %s49_s23, 2 }
  0x26   : > { %4914 = sst [smem:[#allocation19_spill]] %s3908_s7  ;;  %s368_s21 = sadd.s32 1, %s3896_s2 }
  0x27   : > { %4915 = sst [smem:[#allocation20_spill]] %s3912_s28  ;;  %p375_p1 = scmp.ne.s32.totalorder %s3896_s2, %s3892_s26 }
  0x28   : > { %4916 = sst [smem:[#allocation21_spill]] %s3916_s29  ;;  %p376_p2 = scmp.eq.s32.totalorder %s3916_s29, 0 }
  0x29   : > { %s4984_s23 = smov (%p50_p0, %s49_s23), 0  ;;  %s4986_s22 = smov (!%p50_p0, %s52_s22), %s3912_s28 }
  0x2a   : > { %4917 = sst [smem:[#allocation22_spill]] %s4984_s23  ;;  %s365_s19 = ssub.s32 %s3908_s7, %s4984_s23 }
  0x2b   : > { %p4133_p3 = por %p376_p2, %p375_p1  ;;  %p54_p4 = scmp.ge.s32.totalorder %s4986_s22, 2 }
  0x2c   : > { %p366_p5 = scmp.eq.s32.totalorder %s365_s19, 0  ;;  %s553_s17 = sadd.s32 1, %s3888_s1 }
  0x2d   : > { %p563_p6 = scmp.ne.s32.totalorder %s3888_s1, %s3884_s5  ;;  %s4988_s22 = smov (%p54_p4, %s4986_s22), 0 }
  0x2e   : > { %4919 = sst [smem:[#allocation23_spill]] %s4988_s22  ;;  %s548_s23 = ssub.s32 %s3912_s28, %s4988_s22 }
  0x2f   : > { %s4143_s18 = scalar_select %p366_p5, %s3896_s2, %s368_s21  }
  0x30   : > { %p4147_p7 = scmp.eq.s32.totalorder %s3036_s3, 3  ;;  %s550_s11 = sor.u32 %s548_s23, %s365_s19 }
  0x31   : > { %4920 = sst [smem:[#allocation24_spill]] %s4143_s18  ;;  %p569_p8 = scmp.ne.s32.totalorder %s3884_s5, %s3880_s25 }
  0x32   : > { %p551_p9 = scmp.eq.s32.totalorder %s550_s11, 0  ;;  %p4155_p10 = por %p4147_p7, %p563_p6 }
  0x33   : > { %p570_p11 = scmp.eq.s32.totalorder %s3037_s0, 3  ;;  %p577_p12 = scmp.eq.s32.totalorder %s548_s23, 0 }
  0x34   : > { %s4160_s10 = scalar_select %p551_p9, %s3888_s1, %s553_s17  }
  0x35   : > { %p4162_p13 = por %p570_p11, %p569_p8  ;;  %s579_s3 = sadd.s32 1, %s3876_s24 }
  0x36   : > { %4923 = sst [smem:[#allocation25_spill]] %s4160_s10  ;;  %p589_p0 = scmp.ne.s32.totalorder %s3876_s24, %s3872_s30 }
  0x37   : > { %s4924_s21 = scalar_select %p4162_p13, 1, 0 }
  0x38   : > { %s4168_s22 = scalar_select %p577_p12, %s3876_s24, %s579_s3  }
  0x39   : > { %4925 = sst [smem:[#allocation26_spill]] %s4924_s21  ;;  %p595_p1 = scmp.ne.s32.totalorder %s3872_s30, %s3868_s4 }
  0x3a   : > { %4926 = sst [smem:[#allocation27_spill]] %s4168_s22  ;;  %p4176_p2 = por %p589_p0, %p4147_p7 }
  0x3b   : > { %p4180_p4 = por %p595_p1, %p570_p11  ;;  %p3039_p5 = scmp.ge.s32.totalorder %s3916_s29, 4 }
  0x3c   : > { %s4927_s11 = scalar_select %p4176_p2, 1, 0 }
  0x3d   : > { %s4929_s19 = scalar_select %p4180_p4, 1, 0 }
  0x3e   : > { %4928 = sst [smem:[#allocation28_spill]] %s4927_s11  ;;  %660 = sbr.rel (%p3039_p5) target bundleno = 89 (0x59), region = 80 }
  0x3f   : > { %4930 = sst [smem:[#allocation29_spill]] %s4929_s19 }
  0x45   : > { %685 = sbr.rel (!%p4133_p3) target bundleno = 89 (0x59), region = 96  ;;  %s687_s17 = sand.u32 (%p4133_p3), 1, %s3896_s2  }
  0x46   : > { %s3041_s23 = sshll.u32 (%p4133_p3), %s3908_s7, 2  ;;  %s3040_s0 = sshll.u32 (%p4133_p3), %s687_s17, 6 }
  0x47   : > { %s4931_s14 = sld [smem:[#allocation44_spill]] (%p4133_p3)  ;;  %s689_s20 = scalar_lea.vmem (%p4133_p3), [#allocation7], %s3040_s0 }
  0x4d   : > { %s4192_s28 = scalar_lea.vmem %s4931_s14, %s3041_s23 }
  0x4e   : > { %v707_v0 = vld [vmem:[%s4192_s28] sm:$0xf]  ;;  %v709_v1 = vld [vmem:[%s4192_s28 + $0x8] sm:$0xf]  ;;  %v711_v2 = vld [vmem:[%s4192_s28 + $0x10] sm:$0xf] }
  0x4f   : > { %708 = vst [vmem:[%s689_s20] sm:$0xf] %v707_v0  ;;  %710 = vst [vmem:[%s689_s20 + $0x4] sm:$0xf] %v709_v1  ;;  %v713_v3 = vld [vmem:[%s4192_s28 + $0x18] sm:$0xf] }
  0x50   : > { %v715_v4 = vld [vmem:[%s4192_s28 + $0x20] sm:$0xf]  ;;  %712 = vst [vmem:[%s689_s20 + $0x8] sm:$0xf] %v711_v2  ;;  %714 = vst [vmem:[%s689_s20 + $0xc] sm:$0xf] %v713_v3 }
  0x51   : > { %716 = vst [vmem:[%s689_s20 + $0x10] sm:$0xf] %v715_v4  ;;  %v717_v5 = vld [vmem:[%s4192_s28 + $0x28] sm:$0xf]  ;;  %v719_v6 = vld [vmem:[%s4192_s28 + $0x30] sm:$0xf] }
  0x52   : > { %v721_v7 = vld [vmem:[%s4192_s28 + $0x38] sm:$0xf]  ;;  %718 = vst [vmem:[%s689_s20 + $0x14] sm:$0xf] %v717_v5  ;;  %720 = vst [vmem:[%s689_s20 + $0x18] sm:$0xf] %v719_v6 }
  0x53   : > { %722 = vst [vmem:[%s689_s20 + $0x1c] sm:$0xf] %v721_v7  ;;  %v723_v8 = vld [vmem:[%s4192_s28 + $0x40] sm:$0xf]  ;;  %v725_v9 = vld [vmem:[%s4192_s28 + $0x48] sm:$0xf] }
  0x54   : > { %v727_v10 = vld [vmem:[%s4192_s28 + $0x50] sm:$0xf]  ;;  %724 = vst [vmem:[%s689_s20 + $0x20] sm:$0xf] %v723_v8  ;;  %726 = vst [vmem:[%s689_s20 + $0x24] sm:$0xf] %v725_v9 }
  0x55   : > { %728 = vst [vmem:[%s689_s20 + $0x28] sm:$0xf] %v727_v10  ;;  %v729_v11 = vld [vmem:[%s4192_s28 + $0x58] sm:$0xf]  ;;  %v731_v12 = vld [vmem:[%s4192_s28 + $0x60] sm:$0xf] }
  0x56   : > { %v733_v13 = vld [vmem:[%s4192_s28 + $0x68] sm:$0xf]  ;;  %730 = vst [vmem:[%s689_s20 + $0x2c] sm:$0xf] %v729_v11  ;;  %732 = vst [vmem:[%s689_s20 + $0x30] sm:$0xf] %v731_v12 }
  0x57   : > { %734 = vst [vmem:[%s689_s20 + $0x34] sm:$0xf] %v733_v13  ;;  %v735_v14 = vld [vmem:[%s4192_s28 + $0x70] sm:$0xf]  ;;  %v737_v15 = vld [vmem:[%s4192_s28 + $0x78] sm:$0xf] }
  0x58   : > { %736 = vst [vmem:[%s689_s20 + $0x38] sm:$0xf] %v735_v14  ;;  %738 = vst [vmem:[%s689_s20 + $0x3c] sm:$0xf] %v737_v15 }
  0x59 PF: > { %p3042_p3 = scmp.ge.s32.totalorder %s3916_s29, 1  ;;  %p808_p6 = scmp.lt.s32.totalorder %s3916_s29, 5 }
  0x5b   : > { %p809_p7 = pnand %p3042_p3, %p808_p6 }
  0x5c   : > { %s815_s28 = sand.u32 (!%p809_p7), 1, %s3892_s26   ;;  %s4876_s17 = sand.u32 (!%p809_p7), 1, %s3884_s5  }
  0x5d   : > { %812 = sbr.rel (%p809_p7) target bundleno = 3340 (0xd0c), region = 145  ;;  %s3043_s23 = sshll.u32 (!%p809_p7), %s815_s28, 6 }
  0x5e   : > { %s3044_s0 = sshll.u32 (!%p809_p7), %s4876_s17, 4  ;;  %p904_p8 = scmp.lt.s32.totalorder (!%p809_p7), %s3904_s27, 1 }
  0x5f   : > { %p917_p9 = scmp.lt.s32.totalorder (!%p809_p7), %s3900_s6, 1  ;;  %s4932_s10 = sld [smem:[#allocation30_spill]] (!%p809_p7) }
  0x60   : > { %s4933_s28 = sld [smem:[#allocation32_spill]] (!%p809_p7)  ;;  %s4934_s19 = sld [smem:[#allocation31_spill]] (!%p809_p7) }
  0x61   : > { %s4250_s22 = scalar_lea.vmem (!%p809_p7), [#allocation8], %s3044_s0  ;;  %s4935_s17 = sand.u32 (!%p809_p7), 1, %s3872_s30  }
  0x62   : > { %p3051_p12 = scmp.ne.s32.totalorder (!%p809_p7), %s3900_s6, 0 }
  0x64   : > { %s905_s3 = scalar_select %p904_p8, %s3904_s27, 1 }
  0x65   : > { %s4221_s20 = scalar_select %p917_p9, %s3900_s6, 1 }
  0x66   : > { %s3045_s14 = sshll.u32 %s905_s3, 3  ;;  %s3451_s7 = smul.u32 48, %s905_s3  ;;  %v932_v17 = vlaneseq (!%p3051_p12)  ;;  %v3918_v18 = vmov (!%p3051_p12), 0.0   ;;  %vm3919_vm0 = vmmov (!%p3051_p12), 0   ;;  %vm1478_vm2 = vcmask (!%p3051_p12), 261120  }
  0x67   : > { %s4226_s1 = scalar_lea.vmem %s4932_s10, %s3045_s14  ;;  %s4231_s24 = scalar_lea.vmem %s4933_s28, %s3045_s14  ;;  %3271 = vmatprep.subr.bf16.mxu0 (!%p3051_p12), %v3918_v18  ;;  %3291 = vmatprep.subr.bf16.mxu1 (!%p3051_p12), %v3918_v18  ;;  %vm1736_vm3 = vcmask (!%p3051_p12), 130048   ;;  %vm2035_vm4 = vcmask (!%p3051_p12), 523264   ;;  %vm2038_vm5 = vcmask (!%p3051_p12), 785408  }
  0x68   : > { %s4236_s4 = scalar_lea.vmem %s4934_s19, %s3451_s7  ;;  %s919_s29 = scalar_lea.vmem %s4852_s15, %s4221_s20  ;;  %3287 = vmatprep.mubr.msk.bf16.mxu0 (!%p3051_p12), %vm3919_vm0, %v3918_v18  ;;  %vm934_vm1 = vcmp.lt.s32.totalorder (!%p3051_p12), %v932_v17, 256  ;;  %3307 = vmatprep.mubr.msk.bf16.mxu1 (!%p3051_p12), %vm3919_vm0, %v3918_v18  ;;  %v4286_v24 = vshrl.u32 (!%p3051_p12), %v932_v17, 7  ;;  %v944_v39 = vld [vmem:[%s4226_s1] sm:$0x3f] (!%p3051_p12) }
  0x69   : > { %s3048_s3 = sshll.u32 %s3900_s6, 4  ;;  %s4248_s14 = scalar_lea.vmem [#allocation7], %s3043_s23  ;;  %936 = vst.msk [vmem:[#allocation6] sm:$0x3] (!%p3051_p12), %vm934_vm1, %v3918_v18  ;;  %v938_v35 = vld [vmem:[%s4236_s4] sm:$0xff] (!%p3051_p12)  ;;  %v939_v37 = vld [vmem:[%s4236_s4 + $0x8] sm:$0xff] (!%p3051_p12) }
  0x6a   : > { %p921_p11 = scmp.lt.s32.totalorder %s3048_s3, 31  ;;  %s4254_s7 = scalar_lea.vmem [#allocation10], %s4935_s17  ;;  %v4297_v27 = vsub.s32 (!%p3051_p12), 0, %v4286_v24  ;;  %v4303_v29 = vsub.s32 (!%p3051_p12), 1, %v4286_v24  ;;  %v958_v31 = vsub.s32 (!%p3051_p12), 2, %v4286_v24  ;;  %v964_v32 = vsub.s32 (!%p3051_p12), 3, %v4286_v24 }
  0x6b   : > { %931 = sbr.rel (%p3051_p12) target bundleno = 2029 (0x7ed), region = 153  ;;  %s4936_s19 = sld [smem:[#allocation34_spill]] (!%p3051_p12)  ;;  %v970_v36 = vsub.s32 (!%p3051_p12), 4, %v4286_v24  ;;  %v940_v38 = vld [vmem:[%s4236_s4 + $0x10] sm:$0xff] (!%p3051_p12)  ;;  %v976_v44 = vsub.s32 (!%p3051_p12), 5, %v4286_v24  ;;  %v941_v45 = vld [vmem:[%s4236_s4 + $0x18] sm:$0xff] (!%p3051_p12) }
  0x6c   : > { %s4990_s3 = smov (!%p921_p11, %s3048_s3), 31  ;;  %s4937_s0 = sld [smem:[#allocation36_spill]] (!%p3051_p12)  ;;  %v948_v41 = vrot.slane (!%p3051_p12), %v944_v39, %v4297_v27  ;;  %v953_v42 = vrot.slane (!%p3051_p12), %v944_v39, %v4303_v29  ;;  %v959_v43 = vrot.slane (!%p3051_p12), %v944_v39, %v958_v31  ;;  %v965_v46 = vrot.slane (!%p3051_p12), %v944_v39, %v964_v32  ;;  %v942_v53 = vld [vmem:[%s4236_s4 + $0x20] sm:$0xff] (!%p3051_p12)  ;;  %v943_v59 = vld [vmem:[%s4236_s4 + $0x28] sm:$0xff] (!%p3051_p12) }
  0x6d   : > { %s3173_s18 = sshll.u32 %s4990_s3, 3  ;;  %s4938_s26 = sld [smem:[#allocation33_spill]] (!%p3051_p12)  ;;  %v971_v51 = vrot.slane (!%p3051_p12), %v944_v39, %v970_v36  ;;  %v977_v57 = vrot.slane (!%p3051_p12), %v944_v39, %v976_v44  ;;  %v985_v58 = vld [vmem:[%s4231_s24] sm:$0xff] (!%p3051_p12) }
  0x6e   : > { %s4246_s11 = scalar_lea.vmem %s4853_s16, %s3173_s18  ;;  %v949_v48 = vmul.f32 (!%p3051_p12), %v948_v41, %v938_v35  ;;  %v954_v49 = vmul.f32 (!%p3051_p12), %v953_v42, %v939_v37  ;;  %v960_v50 = vmul.f32 (!%p3051_p12), %v959_v43, %v940_v38  ;;  %v966_v56 = vmul.f32 (!%p3051_p12), %v965_v46, %v941_v45  ;;  %s4939_s8 = sld [smem:[#allocation38_spill]] (!%p3051_p12) }
  0x6f   : > { %v972_v62 = vmul.f32 (!%p3051_p12), %v971_v51, %v942_v53  ;;  %v978_v2 = vmul.f32 (!%p3051_p12), %v977_v57, %v943_v59  ;;  %v3920_v38 = vmov (!%p3051_p12), 0   ;;  %s4940_s3 = sld [smem:[#allocation37_spill]] (!%p3051_p12)  ;;  %s4941_s2 = sld [smem:[#allocation35_spill]] (!%p3051_p12) }
  0x70   : > { %v955_v55 = vadd.f32 (!%p3051_p12), %v954_v49, %v949_v48  ;;  %s4942_s9 = sld [smem:[#allocation39_spill]] (!%p3051_p12)  ;;  %s3921_s24 = smov (!%p3051_p12), 96  }
  0x71   : > { %v3598_v16 = vld [vmem:[%s4936_s19] sm:$0xff] (!%p3051_p12)   ;;  %v3600_v20 = vld [vmem:[%s4936_s19 + $0x8] sm:$0xff] (!%p3051_p12)   ;;  %v3602_v22 = vld [vmem:[%s4936_s19 + $0x10] sm:$0xff] (!%p3051_p12)   ;;  %s3922_s21 = smov (!%p3051_p12), 32   ;;  %s3923_s4 = smov (!%p3051_p12), 64  }
  0x72   : > { %v3599_v19 = vld [vmem:[%s4937_s0] sm:$0xff]   ;;  %3272 = vmatpush3.bf16.msra.mxu0 %v3598_v16  ;;  %v3601_v21 = vld [vmem:[%s4937_s0 + $0x8] sm:$0xff]   ;;  %v3603_v23 = vld [vmem:[%s4937_s0 + $0x10] sm:$0xff]   ;;  %v961_v61 = vadd.f32 %v960_v50, %v955_v55  ;;  %s4945_s25 = sld [smem:[#allocation42_spill]]  ;;  %s4947_s28 = sld [smem:[#allocation41_spill]] }
  0x73   : > { %3292 = vmatpush3.bf16.msra.mxu1 %v3599_v19  ;;  %3273 = vmatprep.subr.bf16.mxu0 %v3918_v18  ;;  %v3604_v25 = vld [vmem:[%s4936_s19 + $0x18] sm:$0xff]   ;;  %v3606_v28 = vld [vmem:[%s4936_s19 + $0x20] sm:$0xff]   ;;  %v3608_v33 = vld [vmem:[%s4936_s19 + $0x28] sm:$0xff]  }
  0x74   : > { %3293 = vmatprep.subr.bf16.mxu1 %v3918_v18  ;;  %v3605_v26 = vld [vmem:[%s4937_s0 + $0x18] sm:$0xff]   ;;  %v3607_v30 = vld [vmem:[%s4937_s0 + $0x20] sm:$0xff]   ;;  %v3609_v34 = vld [vmem:[%s4937_s0 + $0x28] sm:$0xff]   ;;  %v967_v1 = vadd.f32 %v966_v56, %v961_v61 }
  0x75   : > { %v937_v40 = vld [vmem:[%s4938_s26] sm:$0x3]  ;;  %v3610_v47 = vld [vmem:[%s4936_s19 + $0x30] sm:$0xff]   ;;  %v3612_v60 = vld [vmem:[%s4936_s19 + $0x38] sm:$0xff]   ;;  %s4943_s26 = sld [smem:[#allocation40_spill]] }
  0x76   : > { %3274 = vmatpush3.bf16.msra.mxu0 %v3600_v20  ;;  %v3611_v52 = vld [vmem:[%s4937_s0 + $0x30] sm:$0xff]   ;;  %v989_v54 = vrot.slane %v937_v40, %v4297_v27  ;;  %v3613_v63 = vld [vmem:[%s4937_s0 + $0x38] sm:$0xff]   ;;  %v973_v4 = vadd.f32 %v972_v62, %v967_v1  ;;  %v983_v5 = vrot.slane %v937_v40, %v4303_v29  ;;  %v3614_v10 = vld [vmem:[%s4939_s8] ss:$12 sps:$4 sm:$0xff]  }
  0x77   : > { %3294 = vmatpush3.bf16.msra.mxu1 %v3601_v21  ;;  %3275 = vmatprep.subr.bf16.mxu0 %v3918_v18  ;;  %v3616_v3 = vld [vmem:[%s4939_s8 + $0x4] ss:$12 sps:$4 sm:$0xff]   ;;  %v3617_v8 = vld [vmem:[%s4939_s8 + $0x8] ss:$12 sps:$4 sm:$0xff]   ;;  %v3621_v13 = vld [vmem:[%s4939_s8 + $0x20] ss:$12 sps:$4 sm:$0xff]  }
  0x78   : > { %3295 = vmatprep.subr.bf16.mxu1 %v3918_v18  ;;  %v990_v0 = vadd.f32 %v989_v54, %v985_v58  ;;  %v979_v7 = vadd.f32 %v978_v2, %v973_v4  ;;  %v3620_v12 = vld [vmem:[%s4939_s8 + $0x1c] ss:$12 sps:$4 sm:$0xff]   ;;  %v3618_v14 = vld [vmem:[%s4939_s8 + $0x18] ss:$12 sps:$4 sm:$0xff]   ;;  %v3624_v15 = vld [vmem:[%s4939_s8 + $0x34] ss:$12 sps:$4 sm:$0xff]   ;;  %s4946_s23 = smov %s4945_s25 }
  0x79   : > { %v3625_v16 = vld [vmem:[%s4939_s8 + $0x38] ss:$12 sps:$4 sm:$0xff]   ;;  %v3622_v17 = vld [vmem:[%s4939_s8 + $0x30] ss:$12 sps:$4 sm:$0xff]   ;;  %v3626_v21 = vld [vmem:[%s4939_s8 + $0x48] ss:$12 sps:$4 sm:$0xff]  }
  0x7a   : > { %3276 = vmatpush3.bf16.msra.mxu0 %v3602_v22  ;;  %v1103_v6 = vpack.c.bf16 %v990_v0, %v990_v0  ;;  %v984_v9 = vadd.f32 %v983_v5, %v979_v7  ;;  %v3628_v19 = vld [vmem:[%s4939_s8 + $0x4c] ss:$12 sps:$4 sm:$0xff]   ;;  %v3629_v20 = vld [vmem:[%s4939_s8 + $0x50] ss:$12 sps:$4 sm:$0xff]   ;;  %v3640_v32 = vld [vmem:[%s4939_s8 + $0x94] ss:$12 sps:$4 sm:$0xff]  }
  0x7b   : > { %3296 = vmatpush3.bf16.msra.mxu1 %v3603_v23  ;;  %3277 = vmatprep.subr.bf16.mxu0 %v3918_v18  ;;  %v3632_v22 = vld [vmem:[%s4939_s8 + $0x64] ss:$12 sps:$4 sm:$0xff]   ;;  %v3633_v23 = vld [vmem:[%s4939_s8 + $0x68] ss:$12 sps:$4 sm:$0xff]   ;;  %v3644_v35 = vld [vmem:[%s4939_s8 + $0xac] ss:$12 sps:$4 sm:$0xff]  }
  0x7c   : > { %3297 = vmatprep.subr.bf16.mxu1 %v3918_v18  ;;  %v991_v11 = vpack.c.bf16 %v984_v9, %v984_v9  ;;  %v3642_v36 = vld [vmem:[%s4939_s8 + $0xa8] ss:$12 sps:$4 sm:$0xff]   ;;  %v3645_v37 = vld [vmem:[%s4939_s8 + $0xb0] ss:$12 sps:$4 sm:$0xff]   ;;  %v3061_v39 = vld [vmem:[%s4940_s3] ss:$0 sm:$0xff]  ;;  %s4944_s3 = smov %s4943_s26 }
  0x7d   : > { %v3052_v41 = vld [vmem:[%s4941_s2] ss:$0 sm:$0xff]  ;;  %s4948_s2 = sld [smem:[#allocation43_spill]] }
  0x7e   : > { %3278 = vmatpush3.bf16.msra.mxu0 %v3604_v25  ;;  %v3630_v25 = vld [vmem:[%s4939_s8 + $0x60] ss:$12 sps:$4 sm:$0xff]  }
  0x7f   : > { %3298 = vmatpush3.bf16.msra.mxu1 %v3605_v26  ;;  %3279 = vmatprep.subr.bf16.mxu0 %v3918_v18  ;;  %v3636_v26 = vld [vmem:[%s4939_s8 + $0x7c] ss:$12 sps:$4 sm:$0xff]  }
  0x80   : > { %3299 = vmatprep.subr.bf16.mxu1 %v3918_v18 }
  0x82   : > { %3280 = vmatpush3.bf16.msra.mxu0 %v3606_v28  ;;  %v3637_v28 = vld [vmem:[%s4939_s8 + $0x80] ss:$12 sps:$4 sm:$0xff]  }
  0x83   : > { %3300 = vmatpush3.bf16.msra.mxu1 %v3607_v30  ;;  %3281 = vmatprep.subr.bf16.mxu0 %v3918_v18  ;;  %v3634_v30 = vld [vmem:[%s4939_s8 + $0x78] ss:$12 sps:$4 sm:$0xff]  }
  0x84   : > { %3301 = vmatprep.subr.bf16.mxu1 %v3918_v18 }
  0x86   : > { %3282 = vmatpush3.bf16.msra.mxu0 %v3608_v33  ;;  %v3641_v33 = vld [vmem:[%s4939_s8 + $0x98] ss:$12 sps:$4 sm:$0xff]  }
  0x87   : > { %3302 = vmatpush3.bf16.msra.mxu1 %v3609_v34  ;;  %3283 = vmatprep.subr.bf16.mxu0 %v3918_v18  ;;  %v3638_v34 = vld [vmem:[%s4939_s8 + $0x90] ss:$12 sps:$4 sm:$0xff]  }
  0x88   : > { %3303 = vmatprep.subr.bf16.mxu1 %v3918_v18 }
  0x8a   : > { %3284 = vmatpush3.bf16.msra.mxu0 %v3610_v47 }
  0x8b   : > { %3304 = vmatpush3.bf16.msra.mxu1 %v3611_v52  ;;  %3285 = vmatprep.subr.bf16.mxu0 %v3918_v18  ;;  %v1248_v52 = vld [vmem:[%s4942_s9] sm:$0x7] }
  0x8c   : > { %3305 = vmatprep.subr.bf16.mxu1 %v3918_v18  ;;  %v1253_v53 = vrot.slane %v1248_v52, %v4297_v27  ;;  %v1261_v54 = vrot.slane %v1248_v52, %v958_v31  ;;  %v1257_v57 = vrot.slane %v1248_v52, %v4303_v29 }
  0x8e   : > { %3286 = vmatpush3.bf16.msra.mxu0 %v3612_v60 }
  0x8f   : > { %3306 = vmatpush3.bf16.msra.mxu1 %v3613_v63  ;;  %1393 = vmatprep.subr.bf16.mxu0 %v3616_v3 }
  0x90   : > { %3311 = vmatprep.subr.bf16.mxu1 %v3918_v18 }
  0x91   : > { %3288 = vmatmul.mubr.bf16.vlgmr.msra.gmra.mrb[0].mxu0 %v991_v11 }
  0x92   : > { %3308 = vmatmul.mubr.bf16.vlgmr.msra.gmra.mrb[0].mxu1 %v1103_v6  ;;  %1394 = vmatpush1.bf16.msra.mxu0 %v3614_v10 }
  0x93   : > { %3312 = vmatpush3.bf16.msra.mxu1 %v3617_v8  ;;  %3327 = vmatprep.mubr.msk.bf16.mxu1 %vm3919_vm0, %v3918_v18 }
  0x94   : > { %3313 = vmatprep.subr.bf16.mxu1 %v3918_v18  ;;  %1395 = vmatprep.subr.bf16.mxu0 %v3620_v12 }
  0x95   : > { %1425 = vmatprep.mubr.bf16.mxu0 %v3920_v38 }
  0x96   : > { %1396 = vmatpush1.bf16.msra.mxu0 %v3618_v14 }
  0x97   : > { %3314 = vmatpush3.bf16.msra.mxu1 %v3621_v13  ;;  %1397 = vmatprep.subr.bf16.mxu0 %v3624_v15 }
  0x98   : > { %3315 = vmatprep.subr.bf16.mxu1 %v3918_v18 }
  0x9a   : > { %1398 = vmatpush1.bf16.msra.mxu0 %v3622_v17 }
  0x9b   : > { %3316 = vmatpush3.bf16.msra.mxu1 %v3625_v16  ;;  %1399 = vmatprep.subr.bf16.mxu0 %v3628_v19 }
  0x9c   : > { %3317 = vmatprep.subr.bf16.mxu1 %v3918_v18 }
  0x9e   : > { %1400 = vmatpush1.bf16.msra.mxu0 %v3626_v21 }
  0x9f   : > { %3318 = vmatpush3.bf16.msra.mxu1 %v3629_v20  ;;  %1401 = vmatprep.subr.bf16.mxu0 %v3632_v22 }
  0xa0   : > { %3319 = vmatprep.subr.bf16.mxu1 %v3918_v18 }
  0xa2   : > { %1402 = vmatpush1.bf16.msra.mxu0 %v3630_v25 }
  0xa3   : > { %3320 = vmatpush3.bf16.msra.mxu1 %v3633_v23  ;;  %1403 = vmatprep.subr.bf16.mxu0 %v3636_v26 }
  0xa4   : > { %3321 = vmatprep.subr.bf16.mxu1 %v3918_v18 }
  0xa6   : > { %1404 = vmatpush1.bf16.msra.mxu0 %v3634_v30 }
  0xa7   : > { %3322 = vmatpush3.bf16.msra.mxu1 %v3637_v28  ;;  %1405 = vmatprep.subr.bf16.mxu0 %v3640_v32 }
  0xa8   : > { %3323 = vmatprep.subr.bf16.mxu1 %v3918_v18 }
  0xaa   : > { %1406 = vmatpush1.bf16.msra.mxu0 %v3638_v34 }
  0xab   : > { %3324 = vmatpush3.bf16.msra.mxu1 %v3641_v33  ;;  %1407 = vmatprep.subr.bf16.mxu0 %v3644_v35 }
  0xac   : > { %3325 = vmatprep.subr.bf16.mxu1 %v3918_v18 }
  0xae   : > { %1408 = vmatpush1.bf16.msra.mxu0 %v3642_v36 }
  0xaf   : > { %3326 = vmatpush3.bf16.msra.mxu1 %v3645_v37  ;;  %3331 = vmatprep.subr.bf16.mxu0 %v3918_v18 }
  0xb0   : > { %3337 = vmatprep.subr.bf16.mxu1 %v3918_v18 }
 0x164   : > { %v1097_v45 = vpop.f32.mrb[0].mxu0 }
 0x165   : > { %v1209_v40 = vpop.f32.mrb[0].mxu1  ;;  %v1098_v47 = vadd.f32 %v3052_v41, %v1097_v45  ;;  %v3289_v48 = vpop.f32.mrb[1].mxu0 }
 0x166   : > { %v3309_v42 = vpop.f32.mrb[1].mxu1  ;;  %v1210_v43 = vadd.f32 %v3061_v39, %v1209_v40  ;;  %v1100_v49 = vpop.f32.mrb[2].mxu0 }
 0x167   : > { %v1212_v44 = vpop.f32.mrb[2].mxu1  ;;  %v3290_v51 = vpop.f32.mrb[3].mxu0 }
 0x168   : > { %v3310_v46 = vpop.f32.mrb[3].mxu1  ;;  %v1215_v50 = vpack.c.bf16 %v1210_v43, %v1098_v47 }
 0x16a   : > { %1426 = vmatmul.mubr.bf16.vlgmr.msra.gmra.mrb[4].mxu0 %v1215_v50  ;;  %3328 = vmatmul.mubr.bf16.vlgmr.msra.gmra.mrb[4].mxu1 %v1215_v50 }
 0x16b   : > { %3333 = vmatprep.mubr.msk.bf16.mxu0 %vm3919_vm0, %v3918_v18  ;;  %3339 = vmatprep.mubr.msk.bf16.mxu1 %vm3919_vm0, %v3918_v18 }
 0x23d   : > { %v1427_v55 = vpop.f32.mrb[4].mxu0  ;;  %v1470_v56 = vpop.f32.mrb[4].mxu1 }
 0x23e   : > { %v1429_v58 = vpop.f32.mrb[5].mxu0  ;;  %v3329_v59 = vpop.f32.mrb[5].mxu1  ;;  %v1428_v62 = vadd.f32 %v1427_v55, %v1253_v53  ;;  %v1471_v63 = vadd.f32 %v1470_v56, %v1261_v54 }
 0x23f   : > { %v1431_v60 = vpop.f32.mrb[6].mxu0  ;;  %v1473_v61 = vpop.f32.mrb[6].mxu1  ;;  %v1430_v4 = vadd.f32 %v1429_v58, %v1257_v57 }
 0x240   : > { %v1432_v0 = vadd.f32 %v1431_v60, %v1253_v53  ;;  %v1474_v1 = vadd.f32 %v1473_v61, %v1261_v54  ;;  %v1433_v2 = vpop.f32.mrb[7].mxu0  ;;  %v3330_v3 = vpop.f32.mrb[7].mxu1 }
 0x241   : > { %v1434_v27 = vadd.f32 %v1433_v2, %v1257_v57 }
 0x242   : > { %v1477_v5 = vpack.c.bf16 %v1432_v0, %v1428_v62  ;;  %v4456_v24 = vpack.c.bf16 %v1474_v1, %v1471_v63 }
 0x243   : > { %v1480_v31 = vpack.c.bf16 %v1434_v27, %v1430_v4 }
 0x244   : > { %1479 = vst.msk [vmem:[#allocation3] sm:$0xff] %vm1478_vm2, %v1477_v5  ;;  %1483 = vst.msk [vmem:[#allocation5] sm:$0xff] %vm1478_vm2, %v4456_v24  ;;  %1485 = vrot.lane.b32.xlu1 %v1477_v5, %s3921_s24 }
 0x245   : > { %1481 = vst.msk [vmem:[#allocation4] sm:$0xff] %vm1478_vm2, %v1480_v31  ;;  %1491 = vrot.lane.b32.xlu0 %v1480_v31, %s3921_s24 }
 0x248   : > { %1522 = vrot.lane.b32.xlu1 %v1480_v31, %s3922_s21 }
 0x249   : > { %1507 = vrot.lane.b32.xlu0 %v1480_v31, %s3923_s4 }
 0x24b   : > { %v1532_v7 = vld [vmem:[#allocation3] sm:$0xff] }
 0x24c   : > { %1517 = vrot.lane.b32.xlu1 %v1477_v5, %s3922_s21  ;;  %v1536_v29 = vld [vmem:[#allocation4] sm:$0xff] }
 0x24d   : > { %1502 = vrot.lane.b32.xlu0 %v1477_v5, %s3923_s4  ;;  %v1544_v6 = vsel %vm1478_vm2, %v1536_v29, 0  ;;  %v1829_v23 = vld [vmem:[#allocation5] sm:$0xff] }
 0x24e   : > { %3332 = vmatpush3.bf16.xpose.msra.mxu0 %v1544_v6 }
 0x24f   : > { %3343 = vmatprep.subr.bf16.mxu0 %v3918_v18 }
 0x255   : > { %3334 = vmatmul.mubr.msk.bf16.vlgmr.msra.gmra.mrb[8].mxu0 %vm1478_vm2, %v1532_v7 }
 0x256   : > { %3345 = vmatprep.mubr.msk.bf16.mxu0 %vm3919_vm0, %v3918_v18 }
 0x2b6   : > { %v1486_v8 = vpop.permute.xlu1 %1485 }
 0x2b7   : > { %1489 = vst.msk [vmem:[#allocation3 + $0x8] sm:$0xff] %vm1478_vm2, %v1486_v8  ;;  %v1492_v9 = vpop.permute.xlu0 %1491 }
 0x2b8   : > { %1495 = vst.msk [vmem:[#allocation4 + $0x8] sm:$0xff] %vm1478_vm2, %v1492_v9 }
 0x2ba   : > { %v1523_v10 = vpop.permute.xlu1 %1522 }
 0x2bb   : > { %1526 = vst.msk [vmem:[#allocation4 + $0x18] sm:$0xff] %vm1478_vm2, %v1523_v10  ;;  %v1508_v11 = vpop.permute.xlu0 %1507 }
 0x2bc   : > { %1511 = vst.msk [vmem:[#allocation4 + $0x10] sm:$0xff] %vm1478_vm2, %v1508_v11 }
 0x2be   : > { %v1518_v12 = vpop.permute.xlu1 %1517  ;;  %v1533_v20 = vld [vmem:[#allocation3 + $0x8] sm:$0xff] }
 0x2bf   : > { %1521 = vst.msk [vmem:[#allocation3 + $0x18] sm:$0xff] %vm1478_vm2, %v1518_v12  ;;  %v1503_v13 = vpop.permute.xlu0 %1502  ;;  %v1537_v14 = vld [vmem:[#allocation4 + $0x8] sm:$0xff] }
 0x2c0   : > { %1506 = vst.msk [vmem:[#allocation3 + $0x10] sm:$0xff] %vm1478_vm2, %v1503_v13  ;;  %v1591_v15 = vsel %vm1478_vm2, %v1537_v14, 0 }
 0x2c1   : > { %3338 = vmatpush3.bf16.xpose.msra.mxu1 %v1591_v15 }
 0x2c2   : > { %3349 = vmatprep.subr.bf16.mxu1 %v3918_v18  ;;  %v1539_v19 = vld [vmem:[#allocation4 + $0x18] sm:$0xff] }
 0x2c3   : > { %v1538_v16 = vld [vmem:[#allocation4 + $0x10] sm:$0xff]  ;;  %v1685_v21 = vsel %vm1478_vm2, %v1539_v19, 0 }
 0x2c4   : > { %v1638_v17 = vsel %vm1478_vm2, %v1538_v16, 0 }
 0x2c5   : > { %3344 = vmatpush3.bf16.xpose.msra.mxu0 %v1638_v17 }
 0x2c6   : > { %3355 = vmatprep.subr.bf16.mxu0 %v3918_v18  ;;  %v1535_v25 = vld [vmem:[#allocation3 + $0x18] sm:$0xff] }
 0x2c7   : > { %v1534_v22 = vld [vmem:[#allocation3 + $0x10] sm:$0xff] }
 0x2c8   : > { %3340 = vmatmul.mubr.msk.bf16.vlgmr.msra.gmra.mrb[8].mxu1 %vm1478_vm2, %v1533_v20 }
 0x2c9   : > { %3350 = vmatpush3.bf16.xpose.msra.mxu1 %v1685_v21  ;;  %3351 = vmatprep.mubr.msk.bf16.mxu1 %vm3919_vm0, %v3918_v18 }
 0x2ca   : > { %3361 = vmatprep.subr.bf16.mxu1 %v3918_v18 }
 0x2cc   : > { %3346 = vmatmul.mubr.msk.bf16.vlgmr.msra.gmra.mrb[12].mxu0 %vm1478_vm2, %v1534_v22 }
 0x2cd   : > { %3356 = vmatpush3.bf16.msra.mxu0 %v1829_v23  ;;  %3357 = vmatprep.mubr.msk.bf16.mxu0 %vm3919_vm0, %v3918_v18 }
 0x2ce   : > { %3367 = vmatprep.subr.bf16.mxu0 %v3918_v18 }
 0x2d0   : > { %3352 = vmatmul.mubr.msk.bf16.vlgmr.msra.gmra.mrb[12].mxu1 %vm1478_vm2, %v1535_v25 }
 0x2d1   : > { %3363 = vmatprep.mubr.msk.bf16.mxu1 %vm3919_vm0, %v3918_v18 }
 0x328   : > { %v1580_v26 = vpop.f32.mrb[8].mxu0 }
 0x329   : > { %v1728_v28 = vmul.f32 0.17677669, %v1580_v26  ;;  %v3335_v30 = vpop.f32.mrb[9].mxu0 }
 0x32a   : > { %v1583_v32 = vpop.f32.mrb[10].mxu0 }
 0x32b   : > { %v1729_v33 = vmul.f32 0.17677669, %v1583_v32  ;;  %v3336_v34 = vpop.f32.mrb[11].mxu0  ;;  %v1737_v35 = vsel %vm1736_vm3, %v1728_v28, -inf }
 0x32c   : > { %1738 = vmax.xlane.f32.xlu0 %v1737_v35 }
 0x32d   : > { %v1740_v36 = vsel %vm1736_vm3, %v1729_v33, -inf }
 0x32e   : > { %1741 = vmax.xlane.f32.xlu1 %v1740_v36 }
 0x39b   : > { %v1627_v37 = vpop.f32.mrb[8].mxu1 }
 0x39c   : > { %v1730_v38 = vmul.f32 0.17677669, %v1627_v37  ;;  %v3341_v39 = vpop.f32.mrb[9].mxu1 }
 0x39d   : > { %v1630_v40 = vpop.f32.mrb[10].mxu1 }
 0x39e   : > { %v1731_v41 = vmul.f32 0.17677669, %v1630_v40  ;;  %v3342_v42 = vpop.f32.mrb[11].mxu1  ;;  %v1743_v43 = vsel %vm1736_vm3, %v1730_v38, -inf }
 0x39f   : > { %1744 = vmax.xlane.f32.xlu0 %v1743_v43  ;;  %v1674_v44 = vpop.f32.mrb[12].mxu0 }
 0x3a0   : > { %v1732_v45 = vmul.f32 0.17677669, %v1674_v44  ;;  %v3347_v46 = vpop.f32.mrb[13].mxu0  ;;  %v1746_v50 = vsel %vm1736_vm3, %v1731_v41, -inf }
 0x3a1   : > { %v1677_v47 = vpop.f32.mrb[14].mxu0 }
 0x3a2   : > { %v1733_v48 = vmul.f32 0.17677669, %v1677_v47  ;;  %v3348_v49 = vpop.f32.mrb[15].mxu0  ;;  %v1749_v51 = vsel %vm1736_vm3, %v1732_v45, -inf }
 0x3a3   : > { %v1721_v52 = vpop.f32.mrb[12].mxu1  ;;  %1747 = vmax.xlane.f32.xlu0 %v1746_v50  ;;  %1750 = vmax.xlane.f32.xlu1 %v1749_v51 }
 0x3a4   : > { %v1734_v53 = vmul.f32 0.17677669, %v1721_v52  ;;  %v3353_v54 = vpop.f32.mrb[13].mxu1  ;;  %v1752_v59 = vsel %vm1736_vm3, %v1733_v48, -inf }
 0x3a5   : > { %v1724_v55 = vpop.f32.mrb[14].mxu1 }
 0x3a6   : > { %v1735_v56 = vmul.f32 0.17677669, %v1724_v55  ;;  %v3354_v57 = vpop.f32.mrb[15].mxu1  ;;  %v1755_v58 = vsel %vm1736_vm3, %v1734_v53, -inf }
 0x3a7   : > { %1756 = vmax.xlane.f32.xlu1 %v1755_v58  ;;  %1753 = vmax.xlane.f32.xlu0 %v1752_v59 }
 0x3a8   : > { %v1758_v60 = vsel %vm1736_vm3, %v1735_v56, -inf }
 0x3ab   : > { %1759 = vmax.xlane.f32.xlu0 %v1758_v60 }
 0x3b8   : > { %1497 = vrot.lane.b32.xlu1 %v4456_v24, %s3921_s24 }
 0x3b9   : > { %v1739_v0 = vpop.xlane.xlu0 %1738 }
 0x3ba   : > { %v1761_v1 = vsub.f32 %v1728_v28, %v1739_v0 }
 0x3bb   : > { %v1742_v61 = vpop.xlane.xlu1 %1741 }
 0x3bc   : > { %v1762_v62 = vsub.f32 %v1729_v33, %v1742_v61  ;;  %v1769_v3 = vmul.f32 1.442695, %v1761_v1 }
 0x3be   : > { %v1771_v63 = vmul.f32 1.442695, %v1762_v62 }
 0x3c0   : > { %3662 = vpow2.f32 %v1771_v63 }
 0x3c1   : > { %3664 = vpow2.f32 %v1769_v3 }
 0x3ca   : > { %v4505_v2 = vpop.eup %3662 }
 0x3cb   : > { %v1788_v4 = vsel %vm1736_vm3, %v4505_v2, 0.0  ;;  %v3665_v27 = vpop.eup %3664 }
 0x3cc   : > { %1789 = vadd.xlane.f32.xlu0 %v1788_v4  ;;  %v1785_v5 = vsel %vm1736_vm3, %v3665_v27, 0.0 }
 0x3dc   : > { %1786 = vadd.xlane.f32.xlu1 %v1785_v5 }
 0x42c   : > { %v1745_v31 = vpop.xlane.xlu0 %1744 }
 0x42d   : > { %v1763_v29 = vsub.f32 %v1730_v38, %v1745_v31 }
 0x42f   : > { %v1773_v6 = vmul.f32 1.442695, %v1763_v29  ;;  %v3646_v29 = vld [vmem:[%s4943_s26] sm:$0xff]  }
 0x430   : > { %v1748_v7 = vpop.xlane.xlu0 %1747  ;;  %v1751_v8 = vpop.xlane.xlu1 %1750 }
 0x431   : > { %3666 = vpow2.f32 %v1773_v6  ;;  %v1764_v9 = vsub.f32 %v1731_v41, %v1748_v7  ;;  %v1765_v10 = vsub.f32 %v1732_v45, %v1751_v8  ;;  %v3647_v6 = vld [vmem:[%s4944_s3 + $0x8] sm:$0xff]   ;;  %v3648_v7 = vld [vmem:[%s4944_s3 + $0x10] sm:$0xff]   ;;  %v3649_v8 = vld [vmem:[%s4944_s3 + $0x18] sm:$0xff]  }
 0x433   : > { %v1775_v11 = vmul.f32 1.442695, %v1764_v9  ;;  %v1777_v12 = vmul.f32 1.442695, %v1765_v10 }
 0x434   : > { %v1757_v13 = vpop.xlane.xlu1 %1756  ;;  %v1754_v14 = vpop.xlane.xlu0 %1753 }
 0x435   : > { %3668 = vpow2.f32 %v1775_v11  ;;  %v1767_v15 = vsub.f32 %v1734_v53, %v1757_v13  ;;  %v1766_v16 = vsub.f32 %v1733_v48, %v1754_v14  ;;  %v3650_v13 = vld [vmem:[%s4944_s3 + $0x20] sm:$0xff]   ;;  %v3651_v14 = vld [vmem:[%s4944_s3 + $0x28] sm:$0xff]  }
 0x436   : > { %3670 = vpow2.f32 %v1777_v12 }
 0x437   : > { %v1781_v17 = vmul.f32 1.442695, %v1767_v15  ;;  %v1779_v19 = vmul.f32 1.442695, %v1766_v16  ;;  %v3652_v15 = vld [vmem:[%s4944_s3 + $0x30] sm:$0xff]  }
 0x438   : > { %v1498_v20 = vpop.permute.xlu1 %1497  ;;  %v1760_v21 = vpop.xlane.xlu0 %1759 }
 0x439   : > { %3672 = vpow2.f32 %v1781_v17  ;;  %1501 = vst.msk [vmem:[#allocation5 + $0x8] sm:$0xff] %vm1478_vm2, %v1498_v20  ;;  %v1768_v22 = vsub.f32 %v1735_v56, %v1760_v21 }
 0x43a   : > { %3674 = vpow2.f32 %v1779_v19 }
 0x43b   : > { %v3667_v23 = vpop.eup %3666  ;;  %v1783_v25 = vmul.f32 1.442695, %v1768_v22  ;;  %v3653_v22 = vld [vmem:[%s4944_s3 + $0x38] sm:$0xff]  }
 0x43c   : > { %v1791_v26 = vsel %vm1736_vm3, %v3667_v23, 0.0 }
 0x43d   : > { %3676 = vpow2.f32 %v1783_v25  ;;  %1792 = vadd.xlane.f32.xlu1 %v1791_v26 }
 0x43f   : > { %v3669_v28 = vpop.eup %3668 }
 0x440   : > { %v3671_v30 = vpop.eup %3670  ;;  %v1830_v32 = vld [vmem:[#allocation5 + $0x8] sm:$0xff]  ;;  %v1794_v33 = vsel %vm1736_vm3, %v3669_v28, 0.0 }
 0x441   : > { %v1797_v34 = vsel %vm1736_vm3, %v3671_v30, 0.0  ;;  %3362 = vmatpush3.bf16.msra.mxu1 %v1830_v32  ;;  %1795 = vadd.xlane.f32.xlu0 %v1794_v33 }
 0x442   : > { %1798 = vadd.xlane.f32.xlu1 %v1797_v34  ;;  %3373 = vmatprep.subr.bf16.mxu1 %v3918_v18 }
 0x443   : > { %v3673_v35 = vpop.eup %3672 }
 0x444   : > { %v3675_v36 = vpop.eup %3674  ;;  %v1803_v37 = vsel %vm1736_vm3, %v3673_v35, 0.0 }
 0x445   : > { %v1800_v38 = vsel %vm1736_vm3, %v3675_v36, 0.0 }
 0x446   : > { %1804 = vadd.xlane.f32.xlu1 %v1803_v37  ;;  %1801 = vadd.xlane.f32.xlu0 %v1800_v38 }
 0x447   : > { %v3677_v39 = vpop.eup %3676 }
 0x448   : > { %v1806_v40 = vsel %vm1736_vm3, %v3677_v39, 0.0 }
 0x44a   : > { %1807 = vadd.xlane.f32.xlu0 %v1806_v40  ;;  %v3657_v40 = vld [vmem:[%s4946_s23 + $0x18] sm:$0xff]  }
 0x457   : > { %1527 = vrot.lane.b32.xlu1 %v4456_v24, %s3922_s21 }
 0x459   : > { %v1790_v41 = vpop.xlane.xlu0 %1789 }
 0x45a   : > { %3678 = vrcp.f32 %v1790_v41  ;;  %v3658_v41 = vld [vmem:[%s4946_s23 + $0x20] sm:$0xff]  }
 0x460   : > { %1512 = vrot.lane.b32.xlu0 %v4456_v24, %s3923_s4 }
 0x464   : > { %v3679_v43 = vpop.eup %3678 }
 0x465   : > { %v1812_v45 = vmul.f32 %v3679_v43, %v4505_v2 }
 0x469   : > { %v1787_v42 = vpop.xlane.xlu1 %1786 }
 0x46a   : > { %3680 = vrcp.f32 %v1787_v42  ;;  %v3659_v42 = vld [vmem:[%s4946_s23 + $0x28] sm:$0xff]  }
 0x474   : > { %v3681_v44 = vpop.eup %3680 }
 0x475   : > { %v1810_v46 = vmul.f32 %v3681_v44, %v3665_v27 }
 0x477   : > { %v1825_v47 = vpack.c.bf16 %v1812_v45, %v1810_v46 }
 0x479   : > { %3358 = vmatmul.mubr.msk.bf16.vlgmr.msra.gmra.mrb[16].mxu0 %vm1736_vm3, %v1825_v47 }
 0x47a   : > { %3369 = vmatprep.mubr.msk.bf16.mxu0 %vm3919_vm0, %v3918_v18 }
 0x4ca   : > { %v1793_v48 = vpop.xlane.xlu1 %1792 }
 0x4cb   : > { %3682 = vrcp.f32 %v1793_v48 }
 0x4ce   : > { %v1796_v49 = vpop.xlane.xlu0 %1795 }
 0x4cf   : > { %v1799_v50 = vpop.xlane.xlu1 %1798  ;;  %3684 = vrcp.f32 %v1796_v49 }
 0x4d0   : > { %3686 = vrcp.f32 %v1799_v50 }
 0x4d3   : > { %v1805_v24 = vpop.xlane.xlu1 %1804  ;;  %v1802_v51 = vpop.xlane.xlu0 %1801 }
 0x4d4   : > { %3688 = vrcp.f32 %v1802_v51 }
 0x4d5   : > { %3690 = vrcp.f32 %v1805_v24  ;;  %v3683_v52 = vpop.eup %3682 }
 0x4d6   : > { %v1814_v56 = vmul.f32 %v3683_v52, %v3667_v23  ;;  %v3654_v23 = vld [vmem:[%s4945_s25] sm:$0xff]  }
 0x4d7   : > { %v1528_v53 = vpop.permute.xlu1 %1527  ;;  %v1808_v54 = vpop.xlane.xlu0 %1807 }
 0x4d8   : > { %1531 = vst.msk [vmem:[#allocation5 + $0x18] sm:$0xff] %vm1478_vm2, %v1528_v53  ;;  %3692 = vrcp.f32 %v1808_v54 }
 0x4d9   : > { %v3685_v55 = vpop.eup %3684 }
 0x4da   : > { %v1816_v57 = vmul.f32 %v3685_v55, %v3669_v28  ;;  %v3687_v60 = vpop.eup %3686  ;;  %v3655_v28 = vld [vmem:[%s4946_s23 + $0x8] sm:$0xff]  }
 0x4db   : > { %v1513_v58 = vpop.permute.xlu0 %1512  ;;  %v1818_v2 = vmul.f32 %v3687_v60, %v3671_v30  ;;  %v3102_v60 = vld [vmem:[%s4947_s28] ss:$0 sm:$0xff] }
 0x4dc   : > { %1516 = vst.msk [vmem:[#allocation5 + $0x10] sm:$0xff] %vm1478_vm2, %v1513_v58  ;;  %v1826_v59 = vpack.c.bf16 %v1816_v57, %v1814_v56  ;;  %v3660_v58 = vld [vmem:[%s4946_s23 + $0x30] sm:$0xff]  }
 0x4de   : > { %3364 = vmatmul.mubr.msk.bf16.vlgmr.msra.gmra.mrb[16].mxu1 %vm1736_vm3, %v1826_v59  ;;  %v3689_v61 = vpop.eup %3688  ;;  %v3661_v59 = vld [vmem:[%s4946_s23 + $0x38] sm:$0xff]  }
 0x4df   : > { %v1832_v62 = vld [vmem:[#allocation5 + $0x18] sm:$0xff]  ;;  %3375 = vmatprep.mubr.msk.bf16.mxu1 %vm3919_vm0, %v3918_v18  ;;  %v3691_v63 = vpop.eup %3690  ;;  %v1820_v0 = vmul.f32 %v3689_v61, %v3675_v36 }
 0x4e0   : > { %3374 = vmatpush3.bf16.msra.mxu1 %v1832_v62  ;;  %v1822_v3 = vmul.f32 %v3691_v63, %v3673_v35 }
 0x4e1   : > { %3399 = vmatprep.subr.bf16.mxu1 %v3918_v18  ;;  %v1827_v5 = vpack.c.bf16 %v1820_v0, %v1818_v2 }
 0x4e2   : > { %v3693_v1 = vpop.eup %3692 }
 0x4e3   : > { %v1824_v4 = vmul.f32 %v3693_v1, %v3677_v39  ;;  %v1831_v27 = vld [vmem:[#allocation5 + $0x10] sm:$0xff]  ;;  %v3656_v39 = vld [vmem:[%s4946_s23 + $0x10] sm:$0xff]  }
 0x4e4   : > { %3368 = vmatpush3.bf16.msra.mxu0 %v1831_v27 }
 0x4e5   : > { %v1828_v31 = vpack.c.bf16 %v1824_v4, %v1822_v3  ;;  %3379 = vmatprep.subr.bf16.mxu0 %v3918_v18 }
 0x4e7   : > { %3370 = vmatmul.mubr.msk.bf16.vlgmr.msra.gmra.mrb[20].mxu0 %vm1736_vm3, %v1827_v5  ;;  %3376 = vmatmul.mubr.msk.bf16.vlgmr.msra.gmra.mrb[20].mxu1 %vm1736_vm3, %v1828_v31 }
 0x4e8   : > { %3395 = vmatprep.mubr.msk.bf16.mxu0 %vm3919_vm0, %v3918_v18  ;;  %3415 = vmatprep.mubr.msk.bf16.mxu1 %vm3919_vm0, %v3918_v18 }
 0x4e9   : > { %3380 = vmatpush3.bf16.msra.mxu0 %v3646_v29  ;;  %3400 = vmatpush3.bf16.msra.mxu1 %v3654_v23 }
 0x4ea   : > { %3381 = vmatprep.subr.bf16.mxu0 %v3918_v18  ;;  %3401 = vmatprep.subr.bf16.mxu1 %v3918_v18 }
 0x4ed   : > { %3382 = vmatpush3.bf16.msra.mxu0 %v3647_v6  ;;  %3402 = vmatpush3.bf16.msra.mxu1 %v3655_v28 }
 0x4ee   : > { %3383 = vmatprep.subr.bf16.mxu0 %v3918_v18  ;;  %3403 = vmatprep.subr.bf16.mxu1 %v3918_v18 }
 0x4f1   : > { %3384 = vmatpush3.bf16.msra.mxu0 %v3648_v7  ;;  %3404 = vmatpush3.bf16.msra.mxu1 %v3656_v39 }
 0x4f2   : > { %3385 = vmatprep.subr.bf16.mxu0 %v3918_v18  ;;  %3405 = vmatprep.subr.bf16.mxu1 %v3918_v18 }
 0x4f5   : > { %3386 = vmatpush3.bf16.msra.mxu0 %v3649_v8  ;;  %3406 = vmatpush3.bf16.msra.mxu1 %v3657_v40 }
 0x4f6   : > { %3387 = vmatprep.subr.bf16.mxu0 %v3918_v18  ;;  %3407 = vmatprep.subr.bf16.mxu1 %v3918_v18 }
 0x4f9   : > { %3388 = vmatpush3.bf16.msra.mxu0 %v3650_v13  ;;  %3408 = vmatpush3.bf16.msra.mxu1 %v3658_v41 }
 0x4fa   : > { %3389 = vmatprep.subr.bf16.mxu0 %v3918_v18  ;;  %3409 = vmatprep.subr.bf16.mxu1 %v3918_v18 }
 0x4fd   : > { %3390 = vmatpush3.bf16.msra.mxu0 %v3651_v14  ;;  %3410 = vmatpush3.bf16.msra.mxu1 %v3659_v42 }
 0x4fe   : > { %3391 = vmatprep.subr.bf16.mxu0 %v3918_v18  ;;  %3411 = vmatprep.subr.bf16.mxu1 %v3918_v18 }
 0x501   : > { %3392 = vmatpush3.bf16.msra.mxu0 %v3652_v15  ;;  %3412 = vmatpush3.bf16.msra.mxu1 %v3660_v58 }
 0x502   : > { %3393 = vmatprep.subr.bf16.mxu0 %v3918_v18  ;;  %3413 = vmatprep.subr.bf16.mxu1 %v3918_v18  ;;  %v3111_v18 = vld [vmem:[%s4948_s2] ss:$0 sm:$0xff] }
 0x505   : > { %3394 = vmatpush3.bf16.msra.mxu0 %v3653_v22  ;;  %3414 = vmatpush3.bf16.msra.mxu1 %v3661_v59 }
 0x54c   : > { %v4554_v9 = vpop.f32.mrb[16].mxu0 }
 0x54d   : > { %v3359_v10 = vpop.f32.mrb[17].mxu0 }
 0x54e   : > { %v4556_v11 = vpop.f32.mrb[18].mxu0 }
 0x54f   : > { %v3360_v12 = vpop.f32.mrb[19].mxu0 }
 0x5b1   : > { %v1914_v16 = vpop.f32.mrb[16].mxu1 }
 0x5b2   : > { %v3365_v17 = vpop.f32.mrb[17].mxu1 }
 0x5b3   : > { %v1917_v19 = vpop.f32.mrb[18].mxu1 }
 0x5b4   : > { %v3583_v20 = vpack.i.bf16 %v1917_v19, %v1914_v16  ;;  %v3366_v21 = vpop.f32.mrb[19].mxu1 }
 0x5b6   : > { %3584 = vrot.lane.b32.xlu1 %v3583_v20, %s3922_s21 }
 0x5ba   : > { %v1958_v25 = vpop.f32.mrb[20].mxu0  ;;  %v2002_v26 = vpop.f32.mrb[20].mxu1 }
 0x5bb   : > { %v3371_v30 = vpop.f32.mrb[21].mxu0  ;;  %v3377_v32 = vpop.f32.mrb[21].mxu1 }
 0x5bc   : > { %v1961_v33 = vpop.f32.mrb[22].mxu0  ;;  %v2005_v34 = vpop.f32.mrb[22].mxu1 }
 0x5bd   : > { %v3588_v35 = vpack.i.bf16 %v1961_v33, %v1958_v25  ;;  %v3593_v36 = vpack.i.bf16 %v2005_v34, %v2002_v26  ;;  %v3372_v37 = vpop.f32.mrb[23].mxu0  ;;  %v3378_v38 = vpop.f32.mrb[23].mxu1 }
 0x5bf   : > { %3594 = vrot.lane.b32.xlu1 %v3593_v36, %s3921_s24  ;;  %3589 = vrot.lane.b32.xlu0 %v3588_v35, %s3923_s4 }
 0x628   : > { %v3585_v43 = vpop.permute.xlu1 %3584 }
 0x629   : > { %v3587_v44 = vunpack.i.h.bf16 %v3585_v43  ;;  %v3586_v45 = vunpack.i.l.bf16 %v3585_v43 }
 0x62b   : > { %v2033_v51 = vsel %vm1478_vm2, %v4554_v9, %v3586_v45  ;;  %v2034_v52 = vsel %vm1478_vm2, %v4556_v11, %v3587_v44 }
 0x631   : > { %v3595_v46 = vpop.permute.xlu1 %3594  ;;  %v3590_v47 = vpop.permute.xlu0 %3589 }
 0x632   : > { %v3597_v48 = vunpack.i.h.bf16 %v3595_v46  ;;  %v3596_v49 = vunpack.i.l.bf16 %v3595_v46  ;;  %v3592_v50 = vunpack.i.h.bf16 %v3590_v47  ;;  %v3591_v24 = vunpack.i.l.bf16 %v3590_v47 }
 0x634   : > { %v2037_v53 = vsel %vm2035_vm4, %v2034_v52, %v3592_v50  ;;  %v2036_v54 = vsel %vm2035_vm4, %v2033_v51, %v3591_v24 }
 0x635   : > { %v2040_v55 = vsel %vm2038_vm5, %v2037_v53, %v3597_v48  ;;  %v2039_v56 = vsel %vm2038_vm5, %v2036_v54, %v3596_v49 }
 0x636   : > { %v2041_v57 = vpack.c.bf16 %v2040_v55, %v2039_v56 }
 0x638   : > { %3396 = vmatmul.mubr.bf16.vlgmr.msra.gmra.mrb[24].mxu0 %v2041_v57 }
 0x70b   : > { %v2147_v61 = vpop.f32.mrb[24].mxu0 }
 0x70c   : > { %v3397_v62 = vpop.f32.mrb[25].mxu0  ;;  %v2148_v0 = vadd.f32 %v3102_v60, %v2147_v61 }
 0x70d   : > { %v2150_v63 = vpop.f32.mrb[26].mxu0 }
 0x70e   : > { %v2151_v1 = vadd.f32 %v3102_v60, %v2150_v63  ;;  %v3398_v2 = vpop.f32.mrb[27].mxu0 }
 0x710   : > { %v2154_v3 = vpack.c.bf16 %v2151_v1, %v2148_v0 }
 0x712   : > { %3416 = vmatmul.mubr.bf16.vlgmr.msra.gmra.mrb[24].mxu1 %v2154_v3 }
 0x7e5   : > { %v2260_v4 = vpop.f32.mrb[24].mxu1 }
 0x7e6   : > { %v3417_v27 = vpop.f32.mrb[25].mxu1  ;;  %v2261_v31 = vadd.f32 %v3111_v18, %v2260_v4 }
 0x7e7   : > { %v2263_v5 = vpop.f32.mrb[26].mxu1 }
 0x7e8   : > { %v2264_v29 = vadd.f32 %v3111_v18, %v2263_v5  ;;  %v3418_v6 = vpop.f32.mrb[27].mxu1 }
 0x7ea   : > { %v2267_v7 = vpack.c.bf16 %v2261_v31, %v2264_v29 }
 0x7ec   : > { %2268 = vst [vmem:[#allocation2] sm:$0xff] %v2267_v7 }
 0x7ed PF: > { %v3694_v8 = vld [vmem:[%s4248_s14] sm:$0xff]   ;;  %v3924_v9 = vmov 0.0   ;;  %v3695_v10 = vld [vmem:[%s4248_s14 + $0x8] sm:$0xff]   ;;  %vm3925_vm6 = vmmov 0   ;;  %v3696_v11 = vld [vmem:[%s4248_s14 + $0x10] sm:$0xff]   ;;  %v3926_v38 = vmov 0   ;;  %v2538_v57 = vlaneseq }
 0x7ee   : > { %3419 = vmatprep.subr.bf16.mxu0 %v3924_v9  ;;  %3435 = vmatprep.mubr.msk.bf16.mxu0 %vm3925_vm6, %v3924_v9  ;;  %v3702_v12 = vld [vmem:[%s4246_s11 + $0x4] ss:$8 sps:$4 sm:$0xff]   ;;  %v3704_v13 = vld [vmem:[%s4246_s11] ss:$8 sps:$4 sm:$0xff]   ;;  %v3705_v15 = vld [vmem:[%s4246_s11 + $0x14] ss:$8 sps:$4 sm:$0xff]  }
 0x7ef   : > { %3420 = vmatpush3.bf16.msra.mxu0 %v3694_v8  ;;  %v3697_v14 = vld [vmem:[%s4248_s14 + $0x18] sm:$0xff]   ;;  %2491 = vmatprep.subr.bf16.mxu1 %v3702_v12  ;;  %v3707_v16 = vld [vmem:[%s4246_s11 + $0x10] ss:$8 sps:$4 sm:$0xff]   ;;  %v3711_v26 = vld [vmem:[%s4246_s11 + $0x34] ss:$8 sps:$4 sm:$0xff]   ;;  %v2539_v59 = vshrl.u32 %v2538_v57, 7 }
 0x7f0   : > { %3421 = vmatprep.subr.bf16.mxu0 %v3924_v9  ;;  %v3698_v17 = vld [vmem:[%s4248_s14 + $0x20] sm:$0xff]   ;;  %2492 = vmatpush1.bf16.msra.mxu1 %v3704_v13  ;;  %v3699_v20 = vld [vmem:[%s4248_s14 + $0x28] sm:$0xff]   ;;  %v3700_v21 = vld [vmem:[%s4248_s14 + $0x30] sm:$0xff]   ;;  %v3927_v55 = vmov 1966171168   ;;  %vm2553_vm7 = vcmp.lt.s32.totalorder %v2538_v57, 256 }
 0x7f1   : > { %v3708_v19 = vld [vmem:[%s4246_s11 + $0x24] ss:$8 sps:$4 sm:$0xff]   ;;  %2493 = vmatprep.subr.bf16.mxu1 %v3705_v15  ;;  %v3710_v25 = vld [vmem:[%s4246_s11 + $0x20] ss:$8 sps:$4 sm:$0xff]   ;;  %v3713_v28 = vld [vmem:[%s4246_s11 + $0x30] ss:$8 sps:$4 sm:$0xff]   ;;  %2523 = vmatprep.mubr.bf16.mxu1 %v3926_v38  ;;  %v2536_v56 = vunpack.c.l.s4 %v3927_v55 }
 0x7f2   : > { %v3701_v22 = vld [vmem:[%s4248_s14 + $0x38] sm:$0xff]   ;;  %v3717_v33 = vld [vmem:[%s4246_s11 + $0x54] ss:$8 sps:$4 sm:$0xff]   ;;  %v3719_v34 = vld [vmem:[%s4246_s11 + $0x50] ss:$8 sps:$4 sm:$0xff]   ;;  %p3145_p0 = scmp.ne.s32.totalorder %s3900_s6, 1 }
 0x7f3   : > { %3422 = vmatpush3.bf16.msra.mxu0 %v3695_v10  ;;  %v2269_v23 = vld [vmem:[#allocation2] sm:$0xff]  ;;  %v3723_v37 = vld [vmem:[%s4246_s11 + $0x74] ss:$8 sps:$4 sm:$0xff]   ;;  %v3725_v39 = vld [vmem:[%s4246_s11 + $0x70] ss:$8 sps:$4 sm:$0xff]   ;;  %v2537_v58 = vunpack.c.0.s8 %v2536_v56  ;;  %s4949_s20 = sld [smem:[#allocation46_spill]] (!%p3145_p0) }
 0x7f4   : > { %3423 = vmatprep.subr.bf16.mxu0 %v3924_v9  ;;  %2494 = vmatpush1.bf16.msra.mxu1 %v3707_v16  ;;  %v3714_v30 = vld [vmem:[%s4246_s11 + $0x44] ss:$8 sps:$4 sm:$0xff]   ;;  %v3716_v32 = vld [vmem:[%s4246_s11 + $0x40] ss:$8 sps:$4 sm:$0xff]   ;;  %v3928_v6 = vmov (!%p3145_p0), 0.0   ;;  %s4950_s28 = sld [smem:[#allocation45_spill]] (!%p3145_p0) }
 0x7f5   : > { %2495 = vmatprep.subr.bf16.mxu1 %v3708_v19  ;;  %v3720_v35 = vld [vmem:[%s4246_s11 + $0x64] ss:$8 sps:$4 sm:$0xff]   ;;  %v3722_v36 = vld [vmem:[%s4246_s11 + $0x60] ss:$8 sps:$4 sm:$0xff]   ;;  %v2540_v61 = vsub.s32 %v2537_v58, %v2539_v59  ;;  %s4951_s2 = sld [smem:[#allocation48_spill]] (!%p3145_p0)  ;;  %vm3929_vm8 = vmmov (!%p3145_p0), 0  }
 0x7f6   : > { %v3120_v40 = vld [vmem:[%s919_s29] ss:$0 sm:$0xff]  ;;  %v2393_v3 = vld [vmem:[#allocation6] sm:$0x3]  ;;  %s4953_s4 = sld [smem:[#allocation47_spill]] (!%p3145_p0)  ;;  %vm2781_vm9 = vcmask (!%p3145_p0), 523264  }
 0x7f7   : > { %3424 = vmatpush3.bf16.msra.mxu0 %v3696_v11  ;;  %s4954_s26 = sld [smem:[#allocation49_spill]] (!%p3145_p0)  ;;  %vm2825_vm10 = vcmask (!%p3145_p0), 8192  }
 0x7f8   : > { %3425 = vmatprep.subr.bf16.mxu0 %v3924_v9  ;;  %2496 = vmatpush1.bf16.msra.mxu1 %v3710_v25 }
 0x7f9   : > { %2497 = vmatprep.subr.bf16.mxu1 %v3711_v26  ;;  %v3726_v27 = vld [vmem:[%s4949_s20 + $0x40] sm:$0xff] (!%p3145_p0)   ;;  %v3728_v31 = vld [vmem:[%s4949_s20 + $0x48] sm:$0xff] (!%p3145_p0)   ;;  %v3730_v7 = vld [vmem:[%s4949_s20 + $0x50] sm:$0xff] (!%p3145_p0)   ;;  %v2567_v26 = vsub.s32 (!%p3145_p0), 0, %v2539_v59 }
 0x7fa   : > { %v3727_v5 = vld [vmem:[%s4949_s20] sm:$0xff] (!%p3145_p0)   ;;  %v3729_v29 = vld [vmem:[%s4949_s20 + $0x8] sm:$0xff] (!%p3145_p0)   ;;  %v3731_v8 = vld [vmem:[%s4949_s20 + $0x10] sm:$0xff] (!%p3145_p0)  }
 0x7fb   : > { %3426 = vmatpush3.bf16.msra.mxu0 %v3697_v14  ;;  %v3733_v10 = vld [vmem:[%s4949_s20 + $0x18] sm:$0xff] (!%p3145_p0)   ;;  %v3734_v11 = vld [vmem:[%s4949_s20 + $0x60] sm:$0xff] (!%p3145_p0)   ;;  %v3736_v13 = vld [vmem:[%s4949_s20 + $0x68] sm:$0xff] (!%p3145_p0)   ;;  %s4952_s14 = smov (!%p3145_p0), %s4951_s2 }
 0x7fc   : > { %3427 = vmatprep.subr.bf16.mxu0 %v3924_v9  ;;  %2498 = vmatpush1.bf16.msra.mxu1 %v3713_v28  ;;  %v3735_v12 = vld [vmem:[%s4949_s20 + $0x20] sm:$0xff] (!%p3145_p0)   ;;  %v3739_v28 = vld [vmem:[%s4949_s20 + $0x30] sm:$0xff] (!%p3145_p0)  }
 0x7fd   : > { %2499 = vmatprep.subr.bf16.mxu1 %v3714_v30  ;;  %v2561_v15 = vld [vmem:[%s4950_s28] sm:$0x3] (!%p3145_p0) }
 0x7fe   : > { %v3742_v19 = vld [vmem:[%s4951_s2] sm:$0xff] (!%p3145_p0)  }
 0x7ff   : > { %3428 = vmatpush3.bf16.msra.mxu0 %v3698_v17  ;;  %v2571_v17 = vsub.s32 (!%p3145_p0), 1, %v2539_v59 }
 0x800   : > { %3429 = vmatprep.subr.bf16.mxu0 %v3924_v9  ;;  %2500 = vmatpush1.bf16.msra.mxu1 %v3716_v32  ;;  %v3740_v32 = vld [vmem:[%s4949_s20 + $0x78] sm:$0xff] (!%p3145_p0)  }
 0x801   : > { %2501 = vmatprep.subr.bf16.mxu1 %v3717_v33 }
 0x803   : > { %3430 = vmatpush3.bf16.msra.mxu0 %v3699_v20  ;;  %v3737_v20 = vld [vmem:[%s4949_s20 + $0x28] sm:$0xff] (!%p3145_p0)  }
 0x804   : > { %3431 = vmatprep.subr.bf16.mxu0 %v3924_v9  ;;  %2502 = vmatpush1.bf16.msra.mxu1 %v3719_v34  ;;  %v3741_v34 = vld [vmem:[%s4949_s20 + $0x38] sm:$0xff] (!%p3145_p0)  }
 0x805   : > { %2503 = vmatprep.subr.bf16.mxu1 %v3720_v35 }
 0x807   : > { %3432 = vmatpush3.bf16.msra.mxu0 %v3700_v21 }
 0x808   : > { %3433 = vmatprep.subr.bf16.mxu0 %v3924_v9  ;;  %2504 = vmatpush1.bf16.msra.mxu1 %v3722_v36  ;;  %v3732_v9 = vld [vmem:[%s4949_s20 + $0x58] sm:$0xff] (!%p3145_p0)   ;;  %v3744_v36 = vld [vmem:[%s4952_s14 + $0x10] sm:$0xff] (!%p3145_p0)  }
 0x809   : > { %2505 = vmatprep.subr.bf16.mxu1 %v3723_v37  ;;  %v3745_v37 = vld [vmem:[%s4952_s14 + $0x18] sm:$0xff] (!%p3145_p0)  }
 0x80b   : > { %3434 = vmatpush3.bf16.msra.mxu0 %v3701_v22  ;;  %v3743_v22 = vld [vmem:[%s4952_s14 + $0x8] sm:$0xff] (!%p3145_p0)  }
 0x80c   : > { %2506 = vmatpush1.bf16.msra.mxu1 %v3725_v39  ;;  %3244 = vmatprep.subr.bf16.mxu0 (!%p3145_p0), %v3726_v27  ;;  %v2609_v39 = vld [vmem:[%s4953_s4] sm:$0x1] (!%p3145_p0) }
 0x80d   : > { %3439 = vmatprep.subr.bf16.mxu1 (!%p3145_p0), %v3928_v6 }
 0x80e   : > { %3436 = vmatmul.mubr.bf16.vlgmr.msra.gmra.mrb[0].mxu0 %v2269_v23  ;;  %v3738_v23 = vld [vmem:[%s4949_s20 + $0x70] sm:$0xff] (!%p3145_p0)  }
 0x80f   : > { %3245 = vmatpush3.bf16.msra.mxu0 (!%p3145_p0), %v3727_v5 }
 0x810   : > { %3246 = vmatprep.subr.bf16.mxu0 (!%p3145_p0), %v3728_v31 }
 0x813   : > { %3247 = vmatpush3.bf16.msra.mxu0 (!%p3145_p0), %v3729_v29 }
 0x814   : > { %3248 = vmatprep.subr.bf16.mxu0 (!%p3145_p0), %v3730_v7 }
 0x817   : > { %3249 = vmatpush3.bf16.msra.mxu0 (!%p3145_p0), %v3731_v8 }
 0x818   : > { %3250 = vmatprep.subr.bf16.mxu0 (!%p3145_p0), %v3732_v9 }
 0x81b   : > { %3251 = vmatpush3.bf16.msra.mxu0 (!%p3145_p0), %v3733_v10 }
 0x81c   : > { %3252 = vmatprep.subr.bf16.mxu0 (!%p3145_p0), %v3734_v11 }
 0x81f   : > { %3253 = vmatpush3.bf16.msra.mxu0 (!%p3145_p0), %v3735_v12 }
 0x820   : > { %3254 = vmatprep.subr.bf16.mxu0 (!%p3145_p0), %v3736_v13 }
 0x823   : > { %3255 = vmatpush3.bf16.msra.mxu0 (!%p3145_p0), %v3737_v20 }
 0x824   : > { %3256 = vmatprep.subr.bf16.mxu0 (!%p3145_p0), %v3738_v23 }
 0x827   : > { %3257 = vmatpush3.bf16.msra.mxu0 (!%p3145_p0), %v3739_v28 }
 0x828   : > { %3258 = vmatprep.subr.bf16.mxu0 (!%p3145_p0), %v3740_v32 }
 0x82b   : > { %3259 = vmatpush3.bf16.msra.mxu0 (!%p3145_p0), %v3741_v34 }
 0x8e1   : > { %v2375_v41 = vpop.f32.mrb[0].mxu0 }
 0x8e2   : > { %v2376_v42 = vadd.f32 %v3120_v40, %v2375_v41  ;;  %v3437_v43 = vpop.f32.mrb[1].mxu0 }
 0x8e3   : > { %v2378_v44 = vpop.f32.mrb[2].mxu0 }
 0x8e4   : > { %2382 = vst [vmem:[%s4250_s22] sm:$0xff] %v2376_v42  ;;  %v2379_v45 = vadd.f32 %v3120_v40, %v2378_v44  ;;  %v3438_v46 = vpop.f32.mrb[3].mxu0 }
 0x8e6   : > { %2383 = vst [vmem:[%s4250_s22 + $0x8] sm:$0xff] %v2379_v45  ;;  %v2384_v47 = vadd.f32 %v2379_v45, %v2376_v42 }
 0x8e8   : > { %v2385_v48 = vrot.slane %v2384_v47, 4 }
 0x8ea   : > { %v2386_v49 = vadd.f32 %v2385_v48, %v2384_v47  ;;  %v2756_v47 = vld [vmem:[%s4954_s26] sm:$0x1] (!%p3145_p0) }
 0x8ec   : > { %v2387_v50 = vrot.slane %v2386_v49, 2 }
 0x8ee   : > { %v2388_v24 = vadd.f32 %v2387_v50, %v2386_v49 }
 0x8f0   : > { %v2389_v51 = vrot.slane %v2388_v24, 1 }
 0x8f2   : > { %v2390_v52 = vadd.f32 %v2389_v51, %v2388_v24 }
 0x8f4   : > { %v2392_v53 = vmul.f32 0.0625, %v2390_v52 }
 0x8f6   : > { %v2394_v54 = vpack.c.bf16 %v2392_v53, %v2392_v53 }
 0x8f8   : > { %2524 = vmatmul.mubr.bf16.vlgmr.msra.gmra.mrb[0].mxu1 %v2394_v54 }
 0x8f9   : > { %3440 = vmatpush3.bf16.msra.mxu1 (!%p3145_p0), %v3742_v19  ;;  %3447 = vmatprep.mubr.msk.bf16.mxu1 (!%p3145_p0), %vm3929_vm8, %v3928_v6 }
 0x8fa   : > { %3441 = vmatprep.subr.bf16.mxu1 (!%p3145_p0), %v3928_v6 }
 0x8fd   : > { %3442 = vmatpush3.bf16.msra.mxu1 (!%p3145_p0), %v3743_v22 }
 0x8fe   : > { %3443 = vmatprep.subr.bf16.mxu1 (!%p3145_p0), %v3928_v6 }
 0x901   : > { %3444 = vmatpush3.bf16.msra.mxu1 (!%p3145_p0), %v3744_v36 }
 0x902   : > { %3445 = vmatprep.subr.bf16.mxu1 (!%p3145_p0), %v3928_v6 }
 0x905   : > { %3446 = vmatpush3.bf16.msra.mxu1 (!%p3145_p0), %v3745_v37 }
 0x9cb   : > { %v2525_v60 = vpop.f32.mrb[0].mxu1 }
 0x9cc   : > { %v2527_v62 = vpop.f32.mrb[1].mxu1 }
 0x9cd   : > { %v2534_v63 = vcombine.low %v2525_v60, %v2527_v62  ;;  %v2529_v0 = vpop.f32.mrb[2].mxu1 }
 0x9ce   : > { %v2530_v1 = vpop.f32.mrb[3].mxu1 }
 0x9cf   : > { %v2541_v2 = vrot.slane %v2534_v63, %v2540_v61  ;;  %2559 = sbr.rel (%p3145_p0) target bundleno = 3284 (0xcd4), region = 157 }
 0x9d1   : > { %v2548_v18 = vrot.slane %v2541_v2, %v2540_v61 }
 0x9d3   : > { %v2550_v4 = vadd.f32 %v2548_v18, %v2393_v3 }
 0x9d5   : > { %2555 = vst.msk [vmem:[#allocation6] sm:$0x3] %vm2553_vm7, %v2550_v4 }
 0x9dc   : > { %v2560_v14 = vld [vmem:[#allocation6] sm:$0x3] }
 0x9dd   : > { %v2562_v16 = vadd.f32 %v2561_v15, %v2560_v14 }
 0x9df   : > { %v2563_v21 = vmax.f32 %v2562_v16, 0.0 }
 0x9e1   : > { %v2572_v25 = vrot.slane %v2563_v21, %v2571_v17  ;;  %v2568_v33 = vrot.slane %v2563_v21, %v2567_v26 }
 0x9e3   : > { %v2576_v30 = vpack.c.bf16 %v2572_v25, %v2572_v25  ;;  %v2575_v35 = vpack.c.bf16 %v2568_v33, %v2568_v33 }
 0x9e5   : > { %2738 = vmatprep.mubr.bf16.mxu0 %v2576_v30 }
 0x9e6   : > { %2739 = vmatmul.mubr.bf16.vlgmr.msra.gmra.mrb[0].mxu0 %v2575_v35 }
 0xab9   : > { %v3260_v38 = vpop.f32.mrb[0].mxu0 }
 0xaba   : > { %v3261_v40 = vpop.f32.mrb[1].mxu0 }
 0xabb   : > { %v3262_v41 = vadd.f32 %v3261_v40, %v3260_v38  ;;  %v3263_v42 = vpop.f32.mrb[2].mxu0 }
 0xabc   : > { %v3264_v43 = vpop.f32.mrb[3].mxu0 }
 0xabd   : > { %v2741_v44 = vadd.f32 %v3262_v41, %v2609_v39 }
 0xabf   : > { %v2746_v45 = vmax.f32 %v2741_v44, 0.0 }
 0xac1   : > { %v2747_v46 = vpack.c.bf16 %v2746_v45, %v2746_v45 }
 0xac3   : > { %3448 = vmatmul.mubr.msk.bf16.vlgmr.msra.gmra.mrb[0].mxu1 %vm2781_vm9, %v2747_v46 }
 0xb96   : > { %v2819_v48 = vpop.f32.mrb[0].mxu1 }
 0xb97   : > { %v2820_v49 = vadd.f32 %v2819_v48, %v2756_v47  ;;  %v3449_v50 = vpop.f32.mrb[1].mxu1 }
 0xb98   : > { %v2822_v24 = vpop.f32.mrb[2].mxu1 }
 0xb99   : > { %v3450_v51 = vpop.f32.mrb[3].mxu1  ;;  %v2826_v52 = vsel %vm2825_vm10, %v2820_v49, -inf }
 0xb9a   : > { %2827 = vmax.xlane.f32.xlu0 %v2826_v52 }
 0xc27   : > { %v2828_v53 = vpop.xlane.xlu0 %2827 }
 0xc28   : > { %v2829_v54 = vsub.f32 %v2820_v49, %v2828_v53 }
 0xc2a   : > { %v2830_v55 = vmul.f32 1.442695, %v2829_v54 }
 0xc2c   : > { %3746 = vpow2.f32 %v2830_v55 }
 0xc36   : > { %v3747_v56 = vpop.eup %3746 }
 0xc37   : > { %v2832_v57 = vsel %vm2825_vm10, %v3747_v56, 0.0 }
 0xc38   : > { %2833 = vadd.xlane.f32.xlu0 %v2832_v57 }
 0xcc5   : > { %v2834_v58 = vpop.xlane.xlu0 %2833 }
 0xcc6   : > { %3748 = vrcp.f32 %v2834_v58 }
 0xcd0   : > { %v3749_v59 = vpop.eup %3748 }
 0xcd1   : > { %v2836_v60 = vmul.f32 %v3749_v59, %v3747_v56 }
 0xcd3   : > { %2837 = vst.msk [vmem:[%s4254_s7] sm:$0x1] %vm2825_vm10, %v2836_v60 }
 0xcd4 PF: > { %s3168_s21 = sshll.u32 %s3904_s27, 2  ;;  %s2857_s28 = sshll.u32 %s4250_s22, 4  ;;  %s4726_s28 = int_to_ptr.vmem [resolvable:$true] %s2857_s28 }
 0xcd5   : > { %s2854_s1 = sadd.s32 %s3900_s6, %s3168_s21  ;;  %s4955_s24 = sld [smem:[#allocation50_spill]] }
 0xcd6   : > { %s3169_s18 = sshll.u32 %s2854_s1, 7  ;;  %s4957_s17 = sand.u32 1, %s3884_s5  }
 0xcd7   : > { %s4735_s4 = scalar_lea.sflag [#allocation9], %s4957_s17  ;;  %s3750_s25 = scalar_lea.vmem %s4726_s28, 256 }
 0xcd8   : > { %p3751_p1 = scmp.ne.s32.totalorder %s4726_s28, %s3750_s25  ;;  %s3930_s6 = smov [#allocation8]  }
 0xcd9   : > { %s3754_s22 = sshll.u32 %s3930_s6, 4  ;;  %s3755_s22 = int_to_ptr.vmem [resolvable:$false] %s3754_s22 }
 0xcda   : > { %p3752_p5 = pnand %p3751_p1, %p4155_p10  ;;  %s3756_s13 = scalar_lea.vmem %s3755_s22, 512 }
 0xcdb   : > { %s4956_s11 = smov %s4955_s24  ;;  %s4731_s29 = scalar_lea.hbm %s4955_s24, %s3169_s18 }
 0xcdc   : > { %p3753_p3 = pneg %p3752_p5  ;;  %p3757_p6 = scmp.lt.s32.totalorder %s4726_s28, %s3755_s22 }
 0xcdd   : > { %p3758_p7 = scmp.lt.s32.totalorder %s3756_s13, %s3750_s25 }
 0xcdf   : > { %p3759_p8 = por %p3758_p7, %p3757_p6 }
 0xce1   : > { %p3760_p9 = pnand %p3759_p8, %p3753_p3 }
 0xce3   : > { %3763 = shalt.err (!%p3760_p9)
}
 0xce4   : > { %s3764_s26 = scalar_lea.hbm %s4731_s29, 256  ;;  %s3768_s18 = scalar_lea.hbm %s4956_s11, 1024 }
 0xce5   : > { %p3765_p11 = scmp.ne.s32.totalorder %s4731_s29, %s3764_s26  ;;  %p3769_p1 = scmp.lt.u32.totalorder %s4731_s29, %s4956_s11 }
 0xce6   : > { %p3770_p5 = scmp.lt.u32.totalorder %s3768_s18, %s3764_s26  ;;  %p3772_p6 = scmp.lt.u32.totalorder %s3764_s26, %s4731_s29 }
 0xce7   : > { %p3766_p12 = pnand %p3765_p11, %p4155_p10 }
 0xce8   : > { %p3771_p3 = por %p3770_p5, %p3769_p1 }
 0xce9   : > { %p3767_p0 = pneg %p3766_p12 }
 0xcea   : > { %p3773_p7 = por %p3772_p6, %p3771_p3 }
 0xcec   : > { %p3774_p8 = pnand %p3773_p7, %p3767_p0 }
 0xcee   : > { %3777 = shalt.err (!%p3774_p8)
}
 0xcef   : > { %s3931_s24 = smov 128   ;;  %s3932_s25 = smov 256  }
 0xcf0   : > { %s3933_s6 = smov 8   ;;  %s3170_s22 = sshll.u32 %s3904_s27, 4 }
 0xcf1   : > { %3452 = dma.vmem_to_hbm [thread:$0]  (%p4155_p10), %s4726_s28, 256, %s4731_s29, %s4735_s4, %s3931_s24, %s3932_s25, %s3933_s6  }
 0xcf2   : > { %s4959_s26 = sld [smem:[#allocation51_spill]]  ;;  %s2873_s10 = sshll.u32 %s4254_s7, 4  ;;  %s2874_s10 = int_to_ptr.vmem [resolvable:$true] %s2873_s10 }
 0xcf3   : > { %s4961_s2 = sand.u32 1, %s3872_s30   ;;  %s3778_s3 = scalar_lea.vmem %s2874_s10, 16 }
 0xcf4   : > { %s2844_s0 = scalar_lea.sflag [#allocation11], %s4961_s2  ;;  %p3779_p9 = scmp.ne.s32.totalorder %s2874_s10, %s3778_s3 }
 0xcf5   : > { %s3934_s8 = smov [#allocation10]  }
 0xcf6   : > { %p3780_p11 = pnand %p3779_p9, %p4176_p2  ;;  %s3782_s9 = sshll.u32 %s3934_s8, 4  ;;  %s3783_s9 = int_to_ptr.vmem [resolvable:$false] %s3782_s9 }
 0xcf7   : > { %s3784_s12 = scalar_lea.vmem %s3783_s9, 32  ;;  %p3785_p10 = scmp.lt.s32.totalorder %s2874_s10, %s3783_s9 }
 0xcf8   : > { %s4960_s18 = smov %s4959_s26  ;;  %s4763_s1 = scalar_lea.hbm %s4959_s26, %s3170_s22 }
 0xcf9   : > { %p3781_p12 = pneg %p3780_p11  ;;  %p3786_p0 = scmp.lt.s32.totalorder %s3784_s12, %s3778_s3 }
 0xcfb   : > { %p3787_p1 = por %p3786_p0, %p3785_p10 }
 0xcfd   : > { %p3788_p5 = pnand %p3787_p1, %p3781_p12 }
 0xcff   : > { %3791 = shalt.err (!%p3788_p5)
}
 0xd00   : > { %s3792_s27 = scalar_lea.hbm %s4763_s1, 16  ;;  %s3796_s8 = scalar_lea.hbm %s4960_s18, 32 }
 0xd01   : > { %p3793_p3 = scmp.ne.s32.totalorder %s4763_s1, %s3792_s27  ;;  %p3797_p8 = scmp.lt.u32.totalorder %s4763_s1, %s4960_s18 }
 0xd02   : > { %p3798_p9 = scmp.lt.u32.totalorder %s3796_s8, %s3792_s27  ;;  %p3800_p12 = scmp.lt.u32.totalorder %s3792_s27, %s4763_s1 }
 0xd03   : > { %p3794_p6 = pnand %p3793_p3, %p4176_p2 }
 0xd04   : > { %p3799_p11 = por %p3798_p9, %p3797_p8 }
 0xd05   : > { %p3795_p7 = pneg %p3794_p6 }
 0xd06   : > { %p3801_p10 = por %p3800_p12, %p3799_p11 }
 0xd08   : > { %p3802_p0 = pnand %p3801_p10, %p3795_p7 }
 0xd0a   : > { %3805 = shalt.err (!%p3802_p0)
}
 0xd0b   : > { %3453 = dma.vmem_to_hbm [thread:$0]  (%p4176_p2), %s2874_s10, 16, %s4763_s1, %s2844_s0  }
 0xd0c PF: > { %s4962_s3 = sld [smem:[#allocation21_spill]]  ;;  %s4963_s4 = sld [smem:[#allocation16_spill]] }
 0xd12   : > { %p3463_p1 = scmp.ge.s32.totalorder %s4962_s3, 2  ;;  %s2885_s25 = sand.u32 1, %s4963_s4  }
 0xd13   : > { %s2886_s6 = scalar_lea.sflag [#allocation9], %s2885_s25 }
 0xd14   : > { %p3457_p5 = pnand %p3463_p1, %p4162_p13 }
 0xd16   : > { %3859 = dma.done.wait (!%p3457_p5), %s2886_s6, 256  }
 0xd17   : > { %3861 = vsyncadd (!%p3457_p5), %s2886_s6, 4294967040  ;;  %s4965_s22 = sld [smem:[#allocation14_spill]]  ;;  %p3460_p3 = pnand %p3463_p1, %p4180_p4 }
 0xd1d   : > { %s2894_s21 = sand.u32 1, %s4965_s22  }
 0xd1e   : > { %s2895_s26 = scalar_lea.sflag [#allocation11], %s2894_s21 }
 0xd1f   : > { %3863 = dma.done.wait (!%p3460_p3), %s2895_s26, 16  }
 0xd20   : > { %3865 = vsyncadd (!%p3460_p3), %s2895_s26, 4294967280  ;;  %s40_s29 = sadd.s32 1, %s4962_s3   ;;  %s4968_s17 = sld [smem:[#allocation15_spill]] }
 0xd21   : > { %p4793_p2 = scmp.ge.s32.totalorder %s40_s29, 6   ;;  %s4969_s24 = sld [smem:[#allocation27_spill]] }
 0xd22   : > { %s4970_s1 = sld [smem:[#allocation17_spill]]  ;;  %s4971_s10 = sld [smem:[#allocation25_spill]] }
 0xd23   : > { %s4972_s26 = sld [smem:[#allocation18_spill]]  ;;  %s4973_s2 = sld [smem:[#allocation24_spill]] }
 0xd24   : > { %s4974_s6 = sld [smem:[#allocation19_spill]]  ;;  %s4975_s27 = sld [smem:[#allocation20_spill]] }
 0xd25   : > { %s4976_s7 = sld [smem:[#allocation22_spill]]  ;;  %s4977_s28 = sld [smem:[#allocation23_spill]] }
 0xd26   : > { %s4978_s4 = smov %s3872_s30  ;;  %s4979_s30 = smov %s4968_s17 }
 0xd27   : > { %s4980_s25 = smov %s3884_s5  ;;  %39 = sbr.rel (!%p4793_p2) target bundleno = 33 (0x21), region = 238 }
 0xd28   : > { %s4981_s5 = smov %s4970_s1  ;;  %s4982_s1 = smov %s4971_s10 }
 0xd2e   :  { %2899 = vsyncpa [#allocation9], 1 }
 0xd2f   :  { %2901 = vsyncpa [#allocation9 + $0x1], 1 }
 0xd30   :  { %2902 = vsyncpa [#allocation11], 1 }
 0xd31   :  { %2904 = vsyncpa [#allocation11 + $0x1], 1 }

</bundles_post_ra>
